<compile_context>
chip_gen: v7x
topology: tpu7x:2x2x1
jax: 0.10.0
libtpu: 0.0.40
codegen_flags: <defaults>
</compile_context>

<pallas_src>
import jax
import jax.numpy as jnp
from jax.experimental import pallas as pl
from jax.experimental.pallas import tpu as pltpu


# -----------------------------------------------------------------------------
# Fused MIRB1 forward (one pallas_call)
# -----------------------------------------------------------------------------
def mirb1_forward(x_nchw, stage_params, wl, bl):
    """x_nchw: (N, C, H, W) f32.  Returns (N, C, H, W)."""
    N, C, H, W = x_nchw.shape
    HW = H * W
    P = W + 1          # flat halo width on each side of the depthwise scratch
    R = 2 * C          # stacked rows for a fused branch pair

    x2 = x_nchw.reshape(N, C, HW)   # free: channels on sublanes, spatial on lanes

    def kernel(x_ref, wg_ref, bg_ref, kd_ref, bd_ref, wp_ref, bp_ref,
               wl_ref, bl_ref, o_ref, pad_ref):
        # Zero only the halo columns of the depthwise scratch; the interior is
        # overwritten every stage.
        zero_col = jnp.zeros((R, P), jnp.float32)
        pad_ref[:, 0:P] = zero_col
        pad_ref[:, P + HW:P + HW + P] = zero_col

        # W-boundary masks for the flattened-spatial shifts (hoisted once).
        w_idx = jax.lax.broadcasted_iota(jnp.int32, (1, HW), 1) % W
        mask_l = jnp.where(w_idx > 0, 1.0, 0.0).astype(jnp.float32)      # reads w-1
        mask_r = jnp.where(w_idx < W - 1, 1.0, 0.0).astype(jnp.float32)  # reads w+1

        def conv_pair(inp, s):
            # --- fused 1x1 group convs of both branches (dense stacked matmul)
            t = jnp.dot(wg_ref[s], inp,
                        preferred_element_type=jnp.float32) + bg_ref[s]   # (R, HW)

            # --- fused 3x3 depthwise conv, padding=1 (9 shifted lane slices)
            pad_ref[:, P:P + HW] = t
            kd = kd_ref[s]                                                # (R, 9)
            acc = jnp.zeros((R, HW), jnp.float32)
            for tap in range(9):
                dh = tap // 3 - 1
                dw = tap % 3 - 1
                start = P + dh * W + dw
                term = pad_ref[:, start:start + HW] * kd[:, tap:tap + 1]
                if dw == -1:
                    term = term * mask_l
                elif dw == 1:
                    term = term * mask_r
                acc = acc + term
            d = acc + bd_ref[s]                                           # (R, HW)

            # --- fused 1x1 point convs (block-diagonal -> concatenated output)
            y = jnp.dot(wp_ref[s], d,
                        preferred_element_type=jnp.float32) + bp_ref[s]   # (C, HW)
            # --- LeakyReLU(0.2)
            return jnp.where(y >= 0.0, y, 0.2 * y)

        x = x_ref[0]                         # (C, HW)
        h = conv_pair(x, 0)                  # cat([c1_1, c2_1])
        h = conv_pair(h, 1)                  # cat([c1_2, c2_2])
        h = conv_pair(h, 2)                  # cat([c1_4, c2_4])
        out = jnp.dot(wl_ref[...], h,
                      preferred_element_type=jnp.float32) + bl_ref[...] + x
        o_ref[0] = out.astype(o_ref.dtype)

    out2 = pl.pallas_call(
        kernel,
        out_shape=jax.ShapeDtypeStruct((N, C, HW), x_nchw.dtype),
        grid_spec=pltpu.PrefetchScalarGridSpec(
            num_scalar_prefetch=0,
            grid=(N,),
            in_specs=[
                pl.BlockSpec((1, C, HW), lambda n: (n, 0, 0)),   # x
                pl.BlockSpec((3, R, C), lambda n: (0, 0, 0)),    # wg (pair-stacked)
                pl.BlockSpec((3, R, 1), lambda n: (0, 0, 0)),    # bg
                pl.BlockSpec((3, R, 9), lambda n: (0, 0, 0)),    # kd (depthwise taps)
                pl.BlockSpec((3, R, 1), lambda n: (0, 0, 0)),    # bd
                pl.BlockSpec((3, C, R), lambda n: (0, 0, 0)),    # wp (block-diag)
                pl.BlockSpec((3, C, 1), lambda n: (0, 0, 0)),    # bp
                pl.BlockSpec((C, C), lambda n: (0, 0)),          # conv_last weight
                pl.BlockSpec((C, 1), lambda n: (0, 0)),          # conv_last bias
            ],
            out_specs=pl.BlockSpec((1, C, HW), lambda n: (n, 0, 0)),
            scratch_shapes=[pltpu.VMEM((R, HW + 2 * P), jnp.float32)],
        ),
        compiler_params=pltpu.CompilerParams(
            dimension_semantics=("parallel",)),
    )(x2, stage_params["wg"], stage_params["bg"], stage_params["kd"],
      stage_params["bd"], stage_params["wp"], stage_params["bp"], wl, bl)

    return out2.reshape(N, C, H, W)


# -----------------------------------------------------------------------------
# Parameter setup (plain JAX glue)
# -----------------------------------------------------------------------------
def weight_norm_conv_params(key, out_ch, in_ch_per_group, kh, kw):
    """Deterministic weight-norm conv params: W = g * v / ||v|| (per out-chan)."""
    kv, kg, kb = jax.random.split(key, 3)
    v = jax.random.normal(kv, (out_ch, in_ch_per_group, kh, kw), jnp.float32) * 0.2
    norm = jnp.sqrt(jnp.sum(v * v, axis=(1, 2, 3), keepdims=True)) + 1e-12
    g = 0.5 + jax.random.uniform(kg, (out_ch, 1, 1, 1), jnp.float32)
    w = g * v / norm
    b = 0.05 * jax.random.normal(kb, (out_ch,), jnp.float32)
    return w, b


def make_convblock_raw(key, in_ch, out_ch, groups=3):
    k1, k2, k3 = jax.random.split(key, 3)
    wg, bg = weight_norm_conv_params(k1, in_ch, in_ch // groups, 1, 1)
    wd, bd = weight_norm_conv_params(k2, in_ch, 1, 3, 3)
    wp, bp = weight_norm_conv_params(k3, out_ch, in_ch, 1, 1)
    return dict(wg=wg, bg=bg, wd=wd, bd=bd, wp=wp, bp=bp)


def expand_group_weight_left(w2d, groups):
    """(Cout, Cin//groups) torch 1x1 group-conv weight -> dense (Cout, Cin)."""
    cout, cpg = w2d.shape
    cin = groups * cpg
    gs_out = cout // groups
    dense = jnp.zeros((cout, cin), w2d.dtype)
    for g in range(groups):
        dense = dense.at[g * gs_out:(g + 1) * gs_out,
                         g * cpg:(g + 1) * cpg].set(w2d[g * gs_out:(g + 1) * gs_out, :])
    return dense


def fuse_pair(raw_a, raw_b, groups=3):
    """Fuse (conv3_x, convd_x) into stacked / block-diagonal weights."""
    C = raw_a["wg"].shape[0]
    cout = raw_a["wp"].shape[0]
    wg = jnp.concatenate([
        expand_group_weight_left(raw_a["wg"][:, :, 0, 0], groups),
        expand_group_weight_left(raw_b["wg"][:, :, 0, 0], groups)], axis=0)   # (2C, C)
    bg = jnp.concatenate([raw_a["bg"], raw_b["bg"]]).reshape(2 * C, 1)
    kd = jnp.concatenate([raw_a["wd"].reshape(C, 9),
                          raw_b["wd"].reshape(C, 9)], axis=0)                 # (2C, 9)
    bd = jnp.concatenate([raw_a["bd"], raw_b["bd"]]).reshape(2 * C, 1)
    wp = jnp.zeros((2 * cout, 2 * C), jnp.float32)
    wp = wp.at[:cout, :C].set(raw_a["wp"][:, :, 0, 0])
    wp = wp.at[cout:, C:].set(raw_b["wp"][:, :, 0, 0])                        # (2cout, 2C)
    bp = jnp.concatenate([raw_a["bp"], raw_b["bp"]]).reshape(2 * cout, 1)
    return dict(wg=wg, bg=bg, kd=kd, bd=bd, wp=wp, bp=bp)


# -----------------------------------------------------------------------------
# Pure-JAX reference (NCHW, original torch-layout weights)
# -----------------------------------------------------------------------------
def conv2d_ref(x, w, b, groups=1, padding=0):
    y = jax.lax.conv_general_dilated(
        x, w, window_strides=(1, 1),
        padding=[(padding, padding), (padding, padding)],
        dimension_numbers=("NCHW", "OIHW", "NCHW"),
        feature_group_count=groups,
        precision=jax.lax.Precision.HIGHEST)
    return y + b.reshape(1, -1, 1, 1)


def convblock_ref(x, raw):
    y = conv2d_ref(x, raw["wg"], raw["bg"], groups=3)
    y = conv2d_ref(y, raw["wd"], raw["bd"], groups=y.shape[1], padding=1)
    y = conv2d_ref(y, raw["wp"], raw["bp"])
    return jnp.where(y >= 0, y, 0.2 * y)


def mirb1_ref(x, raw, wl_raw, bl_raw):
    c1 = convblock_ref(x, raw["conv3_1"]); c2 = convblock_ref(x, raw["convd_1"])
    cat1 = jnp.concatenate([c1, c2], axis=1)
    c1 = convblock_ref(cat1, raw["conv3_2"]); c2 = convblock_ref(cat1, raw["convd_2"])
    cat2 = jnp.concatenate([c1, c2], axis=1)
    c1 = convblock_ref(cat2, raw["conv3_3"]); c2 = convblock_ref(cat2, raw["convd_3"])
    cat3 = jnp.concatenate([c1, c2], axis=1)
    return conv2d_ref(cat3, wl_raw, bl_raw) + x


# -----------------------------------------------------------------------------
if __name__ == "__main__":
    key = jax.random.PRNGKey(0)
    # n_feats must be divisible by 6 (groups=3 inside ConvBlock, c_out = n_feats // 2)
    N, C, H, W = 2, 12, 16, 16
    c_out = C // 2

    kx, kp = jax.random.split(key)
    x = jax.random.normal(kx, (N, C, H, W), jnp.float32)   # PyTorch NCHW layout

    names = ["conv3_1", "convd_1", "conv3_2", "convd_2", "conv3_3", "convd_3"]
    keys = jax.random.split(kp, 7)
    raw = {name: make_convblock_raw(k, C, c_out) for name, k in zip(names, keys[:6])}
    wl_raw, bl_raw = weight_norm_conv_params(keys[6], C, C, 1, 1)

    # Fuse each (conv3_x, convd_x) branch pair, then stack the 3 stages.
    pairs = [fuse_pair(raw["conv3_1"], raw["convd_1"]),
             fuse_pair(raw["conv3_2"], raw["convd_2"]),
             fuse_pair(raw["conv3_3"], raw["convd_3"])]
    stage_params = {k: jnp.stack([p[k] for p in pairs], axis=0) for k in pairs[0]}
    wl = wl_raw[:, :, 0, 0]          # (C, C)
    bl = bl_raw.reshape(C, 1)        # (C, 1)

    out = mirb1_forward(x, stage_params, wl, bl)
    out = jax.block_until_ready(out)

    ref = mirb1_ref(x, raw, wl_raw, bl_raw)
    assert out.shape == ref.shape == (N, C, H, W)
    max_err = float(jnp.max(jnp.abs(out - ref)))
    assert jnp.allclose(out, ref, rtol=2e-3, atol=2e-3), (
        "mismatch: max abs err = %g" % max_err)

    print("KERNEL_OK")
</pallas_src>

<mosaic_0001>
module attributes {stable_mosaic.version = 11 : i64} {
  func.func @kernel(%arg0: i32, %arg1: memref<1x12x256xf32, #tpu.memory_space<vmem>>, %arg2: memref<3x24x12xf32, #tpu.memory_space<vmem>>, %arg3: memref<3x24x1xf32, #tpu.memory_space<vmem>>, %arg4: memref<3x24x9xf32, #tpu.memory_space<vmem>>, %arg5: memref<3x24x1xf32, #tpu.memory_space<vmem>>, %arg6: memref<3x12x24xf32, #tpu.memory_space<vmem>>, %arg7: memref<3x12x1xf32, #tpu.memory_space<vmem>>, %arg8: memref<12x12xf32, #tpu.memory_space<vmem>>, %arg9: memref<12x1xf32, #tpu.memory_space<vmem>>, %arg10: memref<1x12x256xf32, #tpu.memory_space<vmem>>, %arg11: memref<24x290xf32, #tpu.memory_space<vmem>>) attributes {dimension_semantics = [#tpu.dimension_semantics<parallel>], iteration_bounds = array<i64: 2>, scalar_prefetch = 0 : i64, scratch_operands = 1 : i64, tpu.core_type = #tpu.core_type<tc>, window_params = [{transform_indices = @transform_0, window_bounds = array<i64: 1, 12, 256>}, {pipeline_mode = #tpu.pipeline_mode<synchronous>, transform_indices = @transform_1, window_bounds = array<i64: 3, 24, 12>}, {pipeline_mode = #tpu.pipeline_mode<synchronous>, transform_indices = @transform_2, window_bounds = array<i64: 3, 24, 1>}, {pipeline_mode = #tpu.pipeline_mode<synchronous>, transform_indices = @transform_3, window_bounds = array<i64: 3, 24, 9>}, {pipeline_mode = #tpu.pipeline_mode<synchronous>, transform_indices = @transform_4, window_bounds = array<i64: 3, 24, 1>}, {pipeline_mode = #tpu.pipeline_mode<synchronous>, transform_indices = @transform_5, window_bounds = array<i64: 3, 12, 24>}, {pipeline_mode = #tpu.pipeline_mode<synchronous>, transform_indices = @transform_6, window_bounds = array<i64: 3, 12, 1>}, {pipeline_mode = #tpu.pipeline_mode<synchronous>, transform_indices = @transform_7, window_bounds = array<i64: 12, 12>}, {pipeline_mode = #tpu.pipeline_mode<synchronous>, transform_indices = @transform_8, window_bounds = array<i64: 12, 1>}, {transform_indices = @transform_9, window_bounds = array<i64: 1, 12, 256>}]} {
    %cst = arith.constant 0.000000e+00 : f32
    %0 = vector.broadcast %cst : f32 to vector<24x17xf32>
    %c0 = arith.constant 0 : index
    %c0_0 = arith.constant 0 : index
    %1 = vector.load %arg11[%c0, %c0_0] : memref<24x290xf32, #tpu.memory_space<vmem>>, vector<24x17xf32>
    tpu.vector_store %arg11[%c0, %c0_0], %0 {strides = array<i32>} : memref<24x290xf32, #tpu.memory_space<vmem>>, vector<24x17xf32>,
    %c0_1 = arith.constant 0 : index
    %c273 = arith.constant 273 : index
    %2 = vector.load %arg11[%c0_1, %c273] : memref<24x290xf32, #tpu.memory_space<vmem>>, vector<24x17xf32>
    tpu.vector_store %arg11[%c0_1, %c273], %0 {strides = array<i32>} : memref<24x290xf32, #tpu.memory_space<vmem>>, vector<24x17xf32>,
    %3 = tpu.iota {dimensions = array<i32: 1>} : vector<1x256xi32>
    %c16_i32 = arith.constant 16 : i32
    %c0_i32 = arith.constant 0 : i32
    %4 = arith.cmpi eq, %c16_i32, %c0_i32 : i32
    %c1_i32 = arith.constant 1 : i32
    %5 = arith.select %4, %c1_i32, %c16_i32 : i32
    %6 = vector.broadcast %5 : i32 to vector<1x256xi32>
    %7 = arith.remsi %3, %6 : vector<1x256xi32>
    %c0_i32_2 = arith.constant 0 : i32
    %8 = vector.broadcast %c0_i32_2 : i32 to vector<1x256xi32>
    %9 = arith.cmpi ne, %7, %8 : vector<1x256xi32>
    %c0_i32_3 = arith.constant 0 : i32
    %10 = vector.broadcast %c0_i32_3 : i32 to vector<1x256xi32>
    %11 = arith.cmpi slt, %7, %10 : vector<1x256xi32>
    %c0_i32_4 = arith.constant 0 : i32
    %12 = arith.cmpi slt, %5, %c0_i32_4 : i32
    %13 = vector.broadcast %12 : i1 to vector<1x256xi1>
    %14 = vector.broadcast %13 : vector<1x256xi1> to vector<1x256xi1>
    %15 = arith.xori %11, %14 : vector<1x256xi1>
    %16 = arith.andi %15, %9 : vector<1x256xi1>
    %17 = vector.broadcast %5 : i32 to vector<1x256xi32>
    %18 = arith.addi %7, %17 : vector<1x256xi32>
    %19 = arith.select %16, %18, %7 : vector<1x256xi1>, vector<1x256xi32>
    %c0_i32_5 = arith.constant 0 : i32
    %20 = vector.broadcast %c0_i32_5 : i32 to vector<1x256xi32>
    %21 = arith.cmpi sgt, %19, %20 : vector<1x256xi32>
    %cst_6 = arith.constant 1.000000e+00 : f32
    %cst_7 = arith.constant 0.000000e+00 : f32
    %22 = vector.broadcast %cst_6 : f32 to vector<1x256xf32>
    %23 = vector.broadcast %cst_7 : f32 to vector<1x256xf32>
    %24 = arith.select %21, %22, %23 : vector<1x256xi1>, vector<1x256xf32>
    %c15_i32 = arith.constant 15 : i32
    %25 = vector.broadcast %c15_i32 : i32 to vector<1x256xi32>
    %26 = arith.cmpi slt, %19, %25 : vector<1x256xi32>
    %cst_8 = arith.constant 1.000000e+00 : f32
    %cst_9 = arith.constant 0.000000e+00 : f32
    %27 = vector.broadcast %cst_8 : f32 to vector<1x256xf32>
    %28 = vector.broadcast %cst_9 : f32 to vector<1x256xf32>
    %29 = arith.select %26, %27, %28 : vector<1x256xi1>, vector<1x256xf32>
    %c0_10 = arith.constant 0 : index
    %c0_11 = arith.constant 0 : index
    %c0_12 = arith.constant 0 : index
    %30 = vector.load %arg1[%c0_10, %c0_11, %c0_12] : memref<1x12x256xf32, #tpu.memory_space<vmem>>, vector<1x12x256xf32>
    %31 = vector.shape_cast %30 : vector<1x12x256xf32> to vector<12x256xf32>
    %c0_13 = arith.constant 0 : index
    %c0_14 = arith.constant 0 : index
    %c0_15 = arith.constant 0 : index
    %32 = vector.load %arg2[%c0_13, %c0_14, %c0_15] : memref<3x24x12xf32, #tpu.memory_space<vmem>>, vector<1x24x12xf32>
    %33 = vector.shape_cast %32 : vector<1x24x12xf32> to vector<24x12xf32>
    %cst_16 = arith.constant dense<0.000000e+00> : vector<24x256xf32>
    %34 = tpu.matmul %33, %31, %cst_16 {dimension_numbers = #tpu.dot_dimension_numbers<[1], [0], [0], [1], [0, 0, 1, 1], [], []>} : vector<24x12xf32>, vector<12x256xf32>, vector<24x256xf32> -> vector<24x256xf32>
    %c0_17 = arith.constant 0 : index
    %c0_18 = arith.constant 0 : index
    %c0_19 = arith.constant 0 : index
    %35 = vector.load %arg3[%c0_17, %c0_18, %c0_19] : memref<3x24x1xf32, #tpu.memory_space<vmem>>, vector<1x24x1xf32>
    %36 = vector.shape_cast %35 : vector<1x24x1xf32> to vector<24x1xf32>
    %37 = vector.broadcast %36 : vector<24x1xf32> to vector<24x256xf32>
    %38 = arith.addf %34, %37 : vector<24x256xf32>
    %c0_20 = arith.constant 0 : index
    %c17 = arith.constant 17 : index
    %39 = vector.load %arg11[%c0_20, %c17] : memref<24x290xf32, #tpu.memory_space<vmem>>, vector<24x256xf32>
    tpu.vector_store %arg11[%c0_20, %c17], %38 {strides = array<i32>} : memref<24x290xf32, #tpu.memory_space<vmem>>, vector<24x256xf32>,
    %c0_21 = arith.constant 0 : index
    %c0_22 = arith.constant 0 : index
    %c0_23 = arith.constant 0 : index
    %40 = vector.load %arg4[%c0_21, %c0_22, %c0_23] : memref<3x24x9xf32, #tpu.memory_space<vmem>>, vector<1x24x9xf32>
    %41 = vector.shape_cast %40 : vector<1x24x9xf32> to vector<24x9xf32>
    %cst_24 = arith.constant 0.000000e+00 : f32
    %42 = vector.broadcast %cst_24 : f32 to vector<24x256xf32>
    %c0_25 = arith.constant 0 : index
    %c0_26 = arith.constant 0 : index
    %43 = vector.load %arg11[%c0_25, %c0_26] : memref<24x290xf32, #tpu.memory_space<vmem>>, vector<24x256xf32>
    %44 = vector.extract_strided_slice %41 {offsets = [0, 0], sizes = [24, 1], strides = [1, 1]} : vector<24x9xf32> to vector<24x1xf32>
    %45 = vector.broadcast %44 : vector<24x1xf32> to vector<24x256xf32>
    %46 = arith.mulf %43, %45 : vector<24x256xf32>
    %47 = vector.broadcast %24 : vector<1x256xf32> to vector<24x256xf32>
    %48 = arith.mulf %46, %47 : vector<24x256xf32>
    %49 = arith.addf %42, %48 : vector<24x256xf32>
    %c0_27 = arith.constant 0 : index
    %c1 = arith.constant 1 : index
    %50 = vector.load %arg11[%c0_27, %c1] : memref<24x290xf32, #tpu.memory_space<vmem>>, vector<24x256xf32>
    %51 = vector.extract_strided_slice %41 {offsets = [0, 1], sizes = [24, 1], strides = [1, 1]} : vector<24x9xf32> to vector<24x1xf32>
    %52 = vector.broadcast %51 : vector<24x1xf32> to vector<24x256xf32>
    %53 = arith.mulf %50, %52 : vector<24x256xf32>
    %54 = arith.addf %49, %53 : vector<24x256xf32>
    %c0_28 = arith.constant 0 : index
    %c2 = arith.constant 2 : index
    %55 = vector.load %arg11[%c0_28, %c2] : memref<24x290xf32, #tpu.memory_space<vmem>>, vector<24x256xf32>
    %56 = vector.extract_strided_slice %41 {offsets = [0, 2], sizes = [24, 1], strides = [1, 1]} : vector<24x9xf32> to vector<24x1xf32>
    %57 = vector.broadcast %56 : vector<24x1xf32> to vector<24x256xf32>
    %58 = arith.mulf %55, %57 : vector<24x256xf32>
    %59 = vector.broadcast %29 : vector<1x256xf32> to vector<24x256xf32>
    %60 = arith.mulf %58, %59 : vector<24x256xf32>
    %61 = arith.addf %54, %60 : vector<24x256xf32>
    %c0_29 = arith.constant 0 : index
    %c16 = arith.constant 16 : index
    %62 = vector.load %arg11[%c0_29, %c16] : memref<24x290xf32, #tpu.memory_space<vmem>>, vector<24x256xf32>
    %63 = vector.extract_strided_slice %41 {offsets = [0, 3], sizes = [24, 1], strides = [1, 1]} : vector<24x9xf32> to vector<24x1xf32>
    %64 = vector.broadcast %63 : vector<24x1xf32> to vector<24x256xf32>
    %65 = arith.mulf %62, %64 : vector<24x256xf32>
    %66 = vector.broadcast %24 : vector<1x256xf32> to vector<24x256xf32>
    %67 = arith.mulf %65, %66 : vector<24x256xf32>
    %68 = arith.addf %61, %67 : vector<24x256xf32>
    %c0_30 = arith.constant 0 : index
    %c17_31 = arith.constant 17 : index
    %69 = vector.load %arg11[%c0_30, %c17_31] : memref<24x290xf32, #tpu.memory_space<vmem>>, vector<24x256xf32>
    %70 = vector.extract_strided_slice %41 {offsets = [0, 4], sizes = [24, 1], strides = [1, 1]} : vector<24x9xf32> to vector<24x1xf32>
    %71 = vector.broadcast %70 : vector<24x1xf32> to vector<24x256xf32>
    %72 = arith.mulf %69, %71 : vector<24x256xf32>
    %73 = arith.addf %68, %72 : vector<24x256xf32>
    %c0_32 = arith.constant 0 : index
    %c18 = arith.constant 18 : index
    %74 = vector.load %arg11[%c0_32, %c18] : memref<24x290xf32, #tpu.memory_space<vmem>>, vector<24x256xf32>
    %75 = vector.extract_strided_slice %41 {offsets = [0, 5], sizes = [24, 1], strides = [1, 1]} : vector<24x9xf32> to vector<24x1xf32>
    %76 = vector.broadcast %75 : vector<24x1xf32> to vector<24x256xf32>
    %77 = arith.mulf %74, %76 : vector<24x256xf32>
    %78 = vector.broadcast %29 : vector<1x256xf32> to vector<24x256xf32>
    %79 = arith.mulf %77, %78 : vector<24x256xf32>
    %80 = arith.addf %73, %79 : vector<24x256xf32>
    %c0_33 = arith.constant 0 : index
    %c32 = arith.constant 32 : index
    %81 = vector.load %arg11[%c0_33, %c32] : memref<24x290xf32, #tpu.memory_space<vmem>>, vector<24x256xf32>
    %82 = vector.extract_strided_slice %41 {offsets = [0, 6], sizes = [24, 1], strides = [1, 1]} : vector<24x9xf32> to vector<24x1xf32>
    %83 = vector.broadcast %82 : vector<24x1xf32> to vector<24x256xf32>
    %84 = arith.mulf %81, %83 : vector<24x256xf32>
    %85 = vector.broadcast %24 : vector<1x256xf32> to vector<24x256xf32>
    %86 = arith.mulf %84, %85 : vector<24x256xf32>
    %87 = arith.addf %80, %86 : vector<24x256xf32>
    %c0_34 = arith.constant 0 : index
    %c33 = arith.constant 33 : index
    %88 = vector.load %arg11[%c0_34, %c33] : memref<24x290xf32, #tpu.memory_space<vmem>>, vector<24x256xf32>
    %89 = vector.extract_strided_slice %41 {offsets = [0, 7], sizes = [24, 1], strides = [1, 1]} : vector<24x9xf32> to vector<24x1xf32>
    %90 = vector.broadcast %89 : vector<24x1xf32> to vector<24x256xf32>
    %91 = arith.mulf %88, %90 : vector<24x256xf32>
    %92 = arith.addf %87, %91 : vector<24x256xf32>
    %c0_35 = arith.constant 0 : index
    %c34 = arith.constant 34 : index
    %93 = vector.load %arg11[%c0_35, %c34] : memref<24x290xf32, #tpu.memory_space<vmem>>, vector<24x256xf32>
    %94 = vector.extract_strided_slice %41 {offsets = [0, 8], sizes = [24, 1], strides = [1, 1]} : vector<24x9xf32> to vector<24x1xf32>
    %95 = vector.broadcast %94 : vector<24x1xf32> to vector<24x256xf32>
    %96 = arith.mulf %93, %95 : vector<24x256xf32>
    %97 = vector.broadcast %29 : vector<1x256xf32> to vector<24x256xf32>
    %98 = arith.mulf %96, %97 : vector<24x256xf32>
    %99 = arith.addf %92, %98 : vector<24x256xf32>
    %c0_36 = arith.constant 0 : index
    %c0_37 = arith.constant 0 : index
    %c0_38 = arith.constant 0 : index
    %100 = vector.load %arg5[%c0_36, %c0_37, %c0_38] : memref<3x24x1xf32, #tpu.memory_space<vmem>>, vector<1x24x1xf32>
    %101 = vector.shape_cast %100 : vector<1x24x1xf32> to vector<24x1xf32>
    %102 = vector.broadcast %101 : vector<24x1xf32> to vector<24x256xf32>
    %103 = arith.addf %99, %102 : vector<24x256xf32>
    %c0_39 = arith.constant 0 : index
    %c0_40 = arith.constant 0 : index
    %c0_41 = arith.constant 0 : index
    %104 = vector.load %arg6[%c0_39, %c0_40, %c0_41] : memref<3x12x24xf32, #tpu.memory_space<vmem>>, vector<1x12x24xf32>
    %105 = vector.shape_cast %104 : vector<1x12x24xf32> to vector<12x24xf32>
    %cst_42 = arith.constant dense<0.000000e+00> : vector<12x256xf32>
    %106 = tpu.matmul %105, %103, %cst_42 {dimension_numbers = #tpu.dot_dimension_numbers<[1], [0], [0], [1], [0, 0, 1, 1], [], []>} : vector<12x24xf32>, vector<24x256xf32>, vector<12x256xf32> -> vector<12x256xf32>
    %c0_43 = arith.constant 0 : index
    %c0_44 = arith.constant 0 : index
    %c0_45 = arith.constant 0 : index
    %107 = vector.load %arg7[%c0_43, %c0_44, %c0_45] : memref<3x12x1xf32, #tpu.memory_space<vmem>>, vector<1x12x1xf32>
    %108 = vector.shape_cast %107 : vector<1x12x1xf32> to vector<12x1xf32>
    %109 = vector.broadcast %108 : vector<12x1xf32> to vector<12x256xf32>
    %110 = arith.addf %106, %109 : vector<12x256xf32>
    %cst_46 = arith.constant 0.000000e+00 : f32
    %111 = vector.broadcast %cst_46 : f32 to vector<12x256xf32>
    %112 = arith.cmpf oge, %110, %111 : vector<12x256xf32>
    %cst_47 = arith.constant 2.000000e-01 : f32
    %113 = vector.broadcast %cst_47 : f32 to vector<12x256xf32>
    %114 = arith.mulf %113, %110 : vector<12x256xf32>
    %115 = arith.select %112, %110, %114 : vector<12x256xi1>, vector<12x256xf32>
    %c1_48 = arith.constant 1 : index
    %c0_49 = arith.constant 0 : index
    %c0_50 = arith.constant 0 : index
    %116 = vector.load %arg2[%c1_48, %c0_49, %c0_50] : memref<3x24x12xf32, #tpu.memory_space<vmem>>, vector<1x24x12xf32>
    %117 = vector.shape_cast %116 : vector<1x24x12xf32> to vector<24x12xf32>
    %cst_51 = arith.constant dense<0.000000e+00> : vector<24x256xf32>
    %118 = tpu.matmul %117, %115, %cst_51 {dimension_numbers = #tpu.dot_dimension_numbers<[1], [0], [0], [1], [0, 0, 1, 1], [], []>} : vector<24x12xf32>, vector<12x256xf32>, vector<24x256xf32> -> vector<24x256xf32>
    %c1_52 = arith.constant 1 : index
    %c0_53 = arith.constant 0 : index
    %c0_54 = arith.constant 0 : index
    %119 = vector.load %arg3[%c1_52, %c0_53, %c0_54] : memref<3x24x1xf32, #tpu.memory_space<vmem>>, vector<1x24x1xf32>
    %120 = vector.shape_cast %119 : vector<1x24x1xf32> to vector<24x1xf32>
    %121 = vector.broadcast %120 : vector<24x1xf32> to vector<24x256xf32>
    %122 = arith.addf %118, %121 : vector<24x256xf32>
    %c0_55 = arith.constant 0 : index
    %c17_56 = arith.constant 17 : index
    %123 = vector.load %arg11[%c0_55, %c17_56] : memref<24x290xf32, #tpu.memory_space<vmem>>, vector<24x256xf32>
    tpu.vector_store %arg11[%c0_55, %c17_56], %122 {strides = array<i32>} : memref<24x290xf32, #tpu.memory_space<vmem>>, vector<24x256xf32>,
    %c1_57 = arith.constant 1 : index
    %c0_58 = arith.constant 0 : index
    %c0_59 = arith.constant 0 : index
    %124 = vector.load %arg4[%c1_57, %c0_58, %c0_59] : memref<3x24x9xf32, #tpu.memory_space<vmem>>, vector<1x24x9xf32>
    %125 = vector.shape_cast %124 : vector<1x24x9xf32> to vector<24x9xf32>
    %cst_60 = arith.constant 0.000000e+00 : f32
    %126 = vector.broadcast %cst_60 : f32 to vector<24x256xf32>
    %c0_61 = arith.constant 0 : index
    %c0_62 = arith.constant 0 : index
    %127 = vector.load %arg11[%c0_61, %c0_62] : memref<24x290xf32, #tpu.memory_space<vmem>>, vector<24x256xf32>
    %128 = vector.extract_strided_slice %125 {offsets = [0, 0], sizes = [24, 1], strides = [1, 1]} : vector<24x9xf32> to vector<24x1xf32>
    %129 = vector.broadcast %128 : vector<24x1xf32> to vector<24x256xf32>
    %130 = arith.mulf %127, %129 : vector<24x256xf32>
    %131 = vector.broadcast %24 : vector<1x256xf32> to vector<24x256xf32>
    %132 = arith.mulf %130, %131 : vector<24x256xf32>
    %133 = arith.addf %126, %132 : vector<24x256xf32>
    %c0_63 = arith.constant 0 : index
    %c1_64 = arith.constant 1 : index
    %134 = vector.load %arg11[%c0_63, %c1_64] : memref<24x290xf32, #tpu.memory_space<vmem>>, vector<24x256xf32>
    %135 = vector.extract_strided_slice %125 {offsets = [0, 1], sizes = [24, 1], strides = [1, 1]} : vector<24x9xf32> to vector<24x1xf32>
    %136 = vector.broadcast %135 : vector<24x1xf32> to vector<24x256xf32>
    %137 = arith.mulf %134, %136 : vector<24x256xf32>
    %138 = arith.addf %133, %137 : vector<24x256xf32>
    %c0_65 = arith.constant 0 : index
    %c2_66 = arith.constant 2 : index
    %139 = vector.load %arg11[%c0_65, %c2_66] : memref<24x290xf32, #tpu.memory_space<vmem>>, vector<24x256xf32>
    %140 = vector.extract_strided_slice %125 {offsets = [0, 2], sizes = [24, 1], strides = [1, 1]} : vector<24x9xf32> to vector<24x1xf32>
    %141 = vector.broadcast %140 : vector<24x1xf32> to vector<24x256xf32>
    %142 = arith.mulf %139, %141 : vector<24x256xf32>
    %143 = vector.broadcast %29 : vector<1x256xf32> to vector<24x256xf32>
    %144 = arith.mulf %142, %143 : vector<24x256xf32>
    %145 = arith.addf %138, %144 : vector<24x256xf32>
    %c0_67 = arith.constant 0 : index
    %c16_68 = arith.constant 16 : index
    %146 = vector.load %arg11[%c0_67, %c16_68] : memref<24x290xf32, #tpu.memory_space<vmem>>, vector<24x256xf32>
    %147 = vector.extract_strided_slice %125 {offsets = [0, 3], sizes = [24, 1], strides = [1, 1]} : vector<24x9xf32> to vector<24x1xf32>
    %148 = vector.broadcast %147 : vector<24x1xf32> to vector<24x256xf32>
    %149 = arith.mulf %146, %148 : vector<24x256xf32>
    %150 = vector.broadcast %24 : vector<1x256xf32> to vector<24x256xf32>
    %151 = arith.mulf %149, %150 : vector<24x256xf32>
    %152 = arith.addf %145, %151 : vector<24x256xf32>
    %c0_69 = arith.constant 0 : index
    %c17_70 = arith.constant 17 : index
    %153 = vector.load %arg11[%c0_69, %c17_70] : memref<24x290xf32, #tpu.memory_space<vmem>>, vector<24x256xf32>
    %154 = vector.extract_strided_slice %125 {offsets = [0, 4], sizes = [24, 1], strides = [1, 1]} : vector<24x9xf32> to vector<24x1xf32>
    %155 = vector.broadcast %154 : vector<24x1xf32> to vector<24x256xf32>
    %156 = arith.mulf %153, %155 : vector<24x256xf32>
    %157 = arith.addf %152, %156 : vector<24x256xf32>
    %c0_71 = arith.constant 0 : index
    %c18_72 = arith.constant 18 : index
    %158 = vector.load %arg11[%c0_71, %c18_72] : memref<24x290xf32, #tpu.memory_space<vmem>>, vector<24x256xf32>
    %159 = vector.extract_strided_slice %125 {offsets = [0, 5], sizes = [24, 1], strides = [1, 1]} : vector<24x9xf32> to vector<24x1xf32>
    %160 = vector.broadcast %159 : vector<24x1xf32> to vector<24x256xf32>
    %161 = arith.mulf %158, %160 : vector<24x256xf32>
    %162 = vector.broadcast %29 : vector<1x256xf32> to vector<24x256xf32>
    %163 = arith.mulf %161, %162 : vector<24x256xf32>
    %164 = arith.addf %157, %163 : vector<24x256xf32>
    %c0_73 = arith.constant 0 : index
    %c32_74 = arith.constant 32 : index
    %165 = vector.load %arg11[%c0_73, %c32_74] : memref<24x290xf32, #tpu.memory_space<vmem>>, vector<24x256xf32>
    %166 = vector.extract_strided_slice %125 {offsets = [0, 6], sizes = [24, 1], strides = [1, 1]} : vector<24x9xf32> to vector<24x1xf32>
    %167 = vector.broadcast %166 : vector<24x1xf32> to vector<24x256xf32>
    %168 = arith.mulf %165, %167 : vector<24x256xf32>
    %169 = vector.broadcast %24 : vector<1x256xf32> to vector<24x256xf32>
    %170 = arith.mulf %168, %169 : vector<24x256xf32>
    %171 = arith.addf %164, %170 : vector<24x256xf32>
    %c0_75 = arith.constant 0 : index
    %c33_76 = arith.constant 33 : index
    %172 = vector.load %arg11[%c0_75, %c33_76] : memref<24x290xf32, #tpu.memory_space<vmem>>, vector<24x256xf32>
    %173 = vector.extract_strided_slice %125 {offsets = [0, 7], sizes = [24, 1], strides = [1, 1]} : vector<24x9xf32> to vector<24x1xf32>
    %174 = vector.broadcast %173 : vector<24x1xf32> to vector<24x256xf32>
    %175 = arith.mulf %172, %174 : vector<24x256xf32>
    %176 = arith.addf %171, %175 : vector<24x256xf32>
    %c0_77 = arith.constant 0 : index
    %c34_78 = arith.constant 34 : index
    %177 = vector.load %arg11[%c0_77, %c34_78] : memref<24x290xf32, #tpu.memory_space<vmem>>, vector<24x256xf32>
    %178 = vector.extract_strided_slice %125 {offsets = [0, 8], sizes = [24, 1], strides = [1, 1]} : vector<24x9xf32> to vector<24x1xf32>
    %179 = vector.broadcast %178 : vector<24x1xf32> to vector<24x256xf32>
    %180 = arith.mulf %177, %179 : vector<24x256xf32>
    %181 = vector.broadcast %29 : vector<1x256xf32> to vector<24x256xf32>
    %182 = arith.mulf %180, %181 : vector<24x256xf32>
    %183 = arith.addf %176, %182 : vector<24x256xf32>
    %c1_79 = arith.constant 1 : index
    %c0_80 = arith.constant 0 : index
    %c0_81 = arith.constant 0 : index
    %184 = vector.load %arg5[%c1_79, %c0_80, %c0_81] : memref<3x24x1xf32, #tpu.memory_space<vmem>>, vector<1x24x1xf32>
    %185 = vector.shape_cast %184 : vector<1x24x1xf32> to vector<24x1xf32>
    %186 = vector.broadcast %185 : vector<24x1xf32> to vector<24x256xf32>
    %187 = arith.addf %183, %186 : vector<24x256xf32>
    %c1_82 = arith.constant 1 : index
    %c0_83 = arith.constant 0 : index
    %c0_84 = arith.constant 0 : index
    %188 = vector.load %arg6[%c1_82, %c0_83, %c0_84] : memref<3x12x24xf32, #tpu.memory_space<vmem>>, vector<1x12x24xf32>
    %189 = vector.shape_cast %188 : vector<1x12x24xf32> to vector<12x24xf32>
    %cst_85 = arith.constant dense<0.000000e+00> : vector<12x256xf32>
    %190 = tpu.matmul %189, %187, %cst_85 {dimension_numbers = #tpu.dot_dimension_numbers<[1], [0], [0], [1], [0, 0, 1, 1], [], []>} : vector<12x24xf32>, vector<24x256xf32>, vector<12x256xf32> -> vector<12x256xf32>
    %c1_86 = arith.constant 1 : index
    %c0_87 = arith.constant 0 : index
    %c0_88 = arith.constant 0 : index
    %191 = vector.load %arg7[%c1_86, %c0_87, %c0_88] : memref<3x12x1xf32, #tpu.memory_space<vmem>>, vector<1x12x1xf32>
    %192 = vector.shape_cast %191 : vector<1x12x1xf32> to vector<12x1xf32>
    %193 = vector.broadcast %192 : vector<12x1xf32> to vector<12x256xf32>
    %194 = arith.addf %190, %193 : vector<12x256xf32>
    %cst_89 = arith.constant 0.000000e+00 : f32
    %195 = vector.broadcast %cst_89 : f32 to vector<12x256xf32>
    %196 = arith.cmpf oge, %194, %195 : vector<12x256xf32>
    %cst_90 = arith.constant 2.000000e-01 : f32
    %197 = vector.broadcast %cst_90 : f32 to vector<12x256xf32>
    %198 = arith.mulf %197, %194 : vector<12x256xf32>
    %199 = arith.select %196, %194, %198 : vector<12x256xi1>, vector<12x256xf32>
    %c2_91 = arith.constant 2 : index
    %c0_92 = arith.constant 0 : index
    %c0_93 = arith.constant 0 : index
    %200 = vector.load %arg2[%c2_91, %c0_92, %c0_93] : memref<3x24x12xf32, #tpu.memory_space<vmem>>, vector<1x24x12xf32>
    %201 = vector.shape_cast %200 : vector<1x24x12xf32> to vector<24x12xf32>
    %cst_94 = arith.constant dense<0.000000e+00> : vector<24x256xf32>
    %202 = tpu.matmul %201, %199, %cst_94 {dimension_numbers = #tpu.dot_dimension_numbers<[1], [0], [0], [1], [0, 0, 1, 1], [], []>} : vector<24x12xf32>, vector<12x256xf32>, vector<24x256xf32> -> vector<24x256xf32>
    %c2_95 = arith.constant 2 : index
    %c0_96 = arith.constant 0 : index
    %c0_97 = arith.constant 0 : index
    %203 = vector.load %arg3[%c2_95, %c0_96, %c0_97] : memref<3x24x1xf32, #tpu.memory_space<vmem>>, vector<1x24x1xf32>
    %204 = vector.shape_cast %203 : vector<1x24x1xf32> to vector<24x1xf32>
    %205 = vector.broadcast %204 : vector<24x1xf32> to vector<24x256xf32>
    %206 = arith.addf %202, %205 : vector<24x256xf32>
    %c0_98 = arith.constant 0 : index
    %c17_99 = arith.constant 17 : index
    %207 = vector.load %arg11[%c0_98, %c17_99] : memref<24x290xf32, #tpu.memory_space<vmem>>, vector<24x256xf32>
    tpu.vector_store %arg11[%c0_98, %c17_99], %206 {strides = array<i32>} : memref<24x290xf32, #tpu.memory_space<vmem>>, vector<24x256xf32>,
    %c2_100 = arith.constant 2 : index
    %c0_101 = arith.constant 0 : index
    %c0_102 = arith.constant 0 : index
    %208 = vector.load %arg4[%c2_100, %c0_101, %c0_102] : memref<3x24x9xf32, #tpu.memory_space<vmem>>, vector<1x24x9xf32>
    %209 = vector.shape_cast %208 : vector<1x24x9xf32> to vector<24x9xf32>
    %cst_103 = arith.constant 0.000000e+00 : f32
    %210 = vector.broadcast %cst_103 : f32 to vector<24x256xf32>
    %c0_104 = arith.constant 0 : index
    %c0_105 = arith.constant 0 : index
    %211 = vector.load %arg11[%c0_104, %c0_105] : memref<24x290xf32, #tpu.memory_space<vmem>>, vector<24x256xf32>
    %212 = vector.extract_strided_slice %209 {offsets = [0, 0], sizes = [24, 1], strides = [1, 1]} : vector<24x9xf32> to vector<24x1xf32>
    %213 = vector.broadcast %212 : vector<24x1xf32> to vector<24x256xf32>
    %214 = arith.mulf %211, %213 : vector<24x256xf32>
    %215 = vector.broadcast %24 : vector<1x256xf32> to vector<24x256xf32>
    %216 = arith.mulf %214, %215 : vector<24x256xf32>
    %217 = arith.addf %210, %216 : vector<24x256xf32>
    %c0_106 = arith.constant 0 : index
    %c1_107 = arith.constant 1 : index
    %218 = vector.load %arg11[%c0_106, %c1_107] : memref<24x290xf32, #tpu.memory_space<vmem>>, vector<24x256xf32>
    %219 = vector.extract_strided_slice %209 {offsets = [0, 1], sizes = [24, 1], strides = [1, 1]} : vector<24x9xf32> to vector<24x1xf32>
    %220 = vector.broadcast %219 : vector<24x1xf32> to vector<24x256xf32>
    %221 = arith.mulf %218, %220 : vector<24x256xf32>
    %222 = arith.addf %217, %221 : vector<24x256xf32>
    %c0_108 = arith.constant 0 : index
    %c2_109 = arith.constant 2 : index
    %223 = vector.load %arg11[%c0_108, %c2_109] : memref<24x290xf32, #tpu.memory_space<vmem>>, vector<24x256xf32>
    %224 = vector.extract_strided_slice %209 {offsets = [0, 2], sizes = [24, 1], strides = [1, 1]} : vector<24x9xf32> to vector<24x1xf32>
    %225 = vector.broadcast %224 : vector<24x1xf32> to vector<24x256xf32>
    %226 = arith.mulf %223, %225 : vector<24x256xf32>
    %227 = vector.broadcast %29 : vector<1x256xf32> to vector<24x256xf32>
    %228 = arith.mulf %226, %227 : vector<24x256xf32>
    %229 = arith.addf %222, %228 : vector<24x256xf32>
    %c0_110 = arith.constant 0 : index
    %c16_111 = arith.constant 16 : index
    %230 = vector.load %arg11[%c0_110, %c16_111] : memref<24x290xf32, #tpu.memory_space<vmem>>, vector<24x256xf32>
    %231 = vector.extract_strided_slice %209 {offsets = [0, 3], sizes = [24, 1], strides = [1, 1]} : vector<24x9xf32> to vector<24x1xf32>
    %232 = vector.broadcast %231 : vector<24x1xf32> to vector<24x256xf32>
    %233 = arith.mulf %230, %232 : vector<24x256xf32>
    %234 = vector.broadcast %24 : vector<1x256xf32> to vector<24x256xf32>
    %235 = arith.mulf %233, %234 : vector<24x256xf32>
    %236 = arith.addf %229, %235 : vector<24x256xf32>
    %c0_112 = arith.constant 0 : index
    %c17_113 = arith.constant 17 : index
    %237 = vector.load %arg11[%c0_112, %c17_113] : memref<24x290xf32, #tpu.memory_space<vmem>>, vector<24x256xf32>
    %238 = vector.extract_strided_slice %209 {offsets = [0, 4], sizes = [24, 1], strides = [1, 1]} : vector<24x9xf32> to vector<24x1xf32>
    %239 = vector.broadcast %238 : vector<24x1xf32> to vector<24x256xf32>
    %240 = arith.mulf %237, %239 : vector<24x256xf32>
    %241 = arith.addf %236, %240 : vector<24x256xf32>
    %c0_114 = arith.constant 0 : index
    %c18_115 = arith.constant 18 : index
    %242 = vector.load %arg11[%c0_114, %c18_115] : memref<24x290xf32, #tpu.memory_space<vmem>>, vector<24x256xf32>
    %243 = vector.extract_strided_slice %209 {offsets = [0, 5], sizes = [24, 1], strides = [1, 1]} : vector<24x9xf32> to vector<24x1xf32>
    %244 = vector.broadcast %243 : vector<24x1xf32> to vector<24x256xf32>
    %245 = arith.mulf %242, %244 : vector<24x256xf32>
    %246 = vector.broadcast %29 : vector<1x256xf32> to vector<24x256xf32>
    %247 = arith.mulf %245, %246 : vector<24x256xf32>
    %248 = arith.addf %241, %247 : vector<24x256xf32>
    %c0_116 = arith.constant 0 : index
    %c32_117 = arith.constant 32 : index
    %249 = vector.load %arg11[%c0_116, %c32_117] : memref<24x290xf32, #tpu.memory_space<vmem>>, vector<24x256xf32>
    %250 = vector.extract_strided_slice %209 {offsets = [0, 6], sizes = [24, 1], strides = [1, 1]} : vector<24x9xf32> to vector<24x1xf32>
    %251 = vector.broadcast %250 : vector<24x1xf32> to vector<24x256xf32>
    %252 = arith.mulf %249, %251 : vector<24x256xf32>
    %253 = vector.broadcast %24 : vector<1x256xf32> to vector<24x256xf32>
    %254 = arith.mulf %252, %253 : vector<24x256xf32>
    %255 = arith.addf %248, %254 : vector<24x256xf32>
    %c0_118 = arith.constant 0 : index
    %c33_119 = arith.constant 33 : index
    %256 = vector.load %arg11[%c0_118, %c33_119] : memref<24x290xf32, #tpu.memory_space<vmem>>, vector<24x256xf32>
    %257 = vector.extract_strided_slice %209 {offsets = [0, 7], sizes = [24, 1], strides = [1, 1]} : vector<24x9xf32> to vector<24x1xf32>
    %258 = vector.broadcast %257 : vector<24x1xf32> to vector<24x256xf32>
    %259 = arith.mulf %256, %258 : vector<24x256xf32>
    %260 = arith.addf %255, %259 : vector<24x256xf32>
    %c0_120 = arith.constant 0 : index
    %c34_121 = arith.constant 34 : index
    %261 = vector.load %arg11[%c0_120, %c34_121] : memref<24x290xf32, #tpu.memory_space<vmem>>, vector<24x256xf32>
    %262 = vector.extract_strided_slice %209 {offsets = [0, 8], sizes = [24, 1], strides = [1, 1]} : vector<24x9xf32> to vector<24x1xf32>
    %263 = vector.broadcast %262 : vector<24x1xf32> to vector<24x256xf32>
    %264 = arith.mulf %261, %263 : vector<24x256xf32>
    %265 = vector.broadcast %29 : vector<1x256xf32> to vector<24x256xf32>
    %266 = arith.mulf %264, %265 : vector<24x256xf32>
    %267 = arith.addf %260, %266 : vector<24x256xf32>
    %c2_122 = arith.constant 2 : index
    %c0_123 = arith.constant 0 : index
    %c0_124 = arith.constant 0 : index
    %268 = vector.load %arg5[%c2_122, %c0_123, %c0_124] : memref<3x24x1xf32, #tpu.memory_space<vmem>>, vector<1x24x1xf32>
    %269 = vector.shape_cast %268 : vector<1x24x1xf32> to vector<24x1xf32>
    %270 = vector.broadcast %269 : vector<24x1xf32> to vector<24x256xf32>
    %271 = arith.addf %267, %270 : vector<24x256xf32>
    %c2_125 = arith.constant 2 : index
    %c0_126 = arith.constant 0 : index
    %c0_127 = arith.constant 0 : index
    %272 = vector.load %arg6[%c2_125, %c0_126, %c0_127] : memref<3x12x24xf32, #tpu.memory_space<vmem>>, vector<1x12x24xf32>
    %273 = vector.shape_cast %272 : vector<1x12x24xf32> to vector<12x24xf32>
    %cst_128 = arith.constant dense<0.000000e+00> : vector<12x256xf32>
    %274 = tpu.matmul %273, %271, %cst_128 {dimension_numbers = #tpu.dot_dimension_numbers<[1], [0], [0], [1], [0, 0, 1, 1], [], []>} : vector<12x24xf32>, vector<24x256xf32>, vector<12x256xf32> -> vector<12x256xf32>
    %c2_129 = arith.constant 2 : index
    %c0_130 = arith.constant 0 : index
    %c0_131 = arith.constant 0 : index
    %275 = vector.load %arg7[%c2_129, %c0_130, %c0_131] : memref<3x12x1xf32, #tpu.memory_space<vmem>>, vector<1x12x1xf32>
    %276 = vector.shape_cast %275 : vector<1x12x1xf32> to vector<12x1xf32>
    %277 = vector.broadcast %276 : vector<12x1xf32> to vector<12x256xf32>
    %278 = arith.addf %274, %277 : vector<12x256xf32>
    %cst_132 = arith.constant 0.000000e+00 : f32
    %279 = vector.broadcast %cst_132 : f32 to vector<12x256xf32>
    %280 = arith.cmpf oge, %278, %279 : vector<12x256xf32>
    %cst_133 = arith.constant 2.000000e-01 : f32
    %281 = vector.broadcast %cst_133 : f32 to vector<12x256xf32>
    %282 = arith.mulf %281, %278 : vector<12x256xf32>
    %283 = arith.select %280, %278, %282 : vector<12x256xi1>, vector<12x256xf32>
    %c0_134 = arith.constant 0 : index
    %c0_135 = arith.constant 0 : index
    %284 = vector.load %arg8[%c0_134, %c0_135] : memref<12x12xf32, #tpu.memory_space<vmem>>, vector<12x12xf32>
    %cst_136 = arith.constant dense<0.000000e+00> : vector<12x256xf32>
    %285 = tpu.matmul %284, %283, %cst_136 {dimension_numbers = #tpu.dot_dimension_numbers<[1], [0], [0], [1], [0, 0, 1, 1], [], []>} : vector<12x12xf32>, vector<12x256xf32>, vector<12x256xf32> -> vector<12x256xf32>
    %c0_137 = arith.constant 0 : index
    %c0_138 = arith.constant 0 : index
    %286 = vector.load %arg9[%c0_137, %c0_138] : memref<12x1xf32, #tpu.memory_space<vmem>>, vector<12x1xf32>
    %287 = vector.broadcast %286 : vector<12x1xf32> to vector<12x256xf32>
    %288 = arith.addf %285, %287 : vector<12x256xf32>
    %289 = arith.addf %288, %31 : vector<12x256xf32>
    %c0_139 = arith.constant 0 : index
    %c0_140 = arith.constant 0 : index
    %c0_141 = arith.constant 0 : index
    %290 = vector.load %arg10[%c0_139, %c0_140, %c0_141] : memref<1x12x256xf32, #tpu.memory_space<vmem>>, vector<1x12x256xf32>
    %291 = vector.shape_cast %290 : vector<1x12x256xf32> to vector<12x256xf32>
    %292 = vector.shape_cast %289 : vector<12x256xf32> to vector<1x12x256xf32>
    tpu.vector_store %arg10[%c0_139, %c0_140, %c0_141], %292 {strides = array<i32>} : memref<1x12x256xf32, #tpu.memory_space<vmem>>, vector<1x12x256xf32>,
    return
  }
  func.func @transform_0(%arg0: i32) -> (i32, i32, i32) {
    %c0_i32 = arith.constant 0 : i32
    %c0_i32_0 = arith.constant 0 : i32
    %c0_i32_1 = arith.constant 0 : i32
    return %arg0, %c0_i32, %c0_i32_0 : i32, i32, i32
  }
  func.func @transform_1(%arg0: i32) -> (i32, i32, i32) {
    %c0_i32 = arith.constant 0 : i32
    %c0_i32_0 = arith.constant 0 : i32
    %c0_i32_1 = arith.constant 0 : i32
    %c0_i32_2 = arith.constant 0 : i32
    return %c0_i32, %c0_i32_0, %c0_i32_1 : i32, i32, i32
  }
  func.func @transform_2(%arg0: i32) -> (i32, i32, i32) {
    %c0_i32 = arith.constant 0 : i32
    %c0_i32_0 = arith.constant 0 : i32
    %c0_i32_1 = arith.constant 0 : i32
    %c0_i32_2 = arith.constant 0 : i32
    return %c0_i32, %c0_i32_0, %c0_i32_1 : i32, i32, i32
  }
  func.func @transform_3(%arg0: i32) -> (i32, i32, i32) {
    %c0_i32 = arith.constant 0 : i32
    %c0_i32_0 = arith.constant 0 : i32
    %c0_i32_1 = arith.constant 0 : i32
    %c0_i32_2 = arith.constant 0 : i32
    return %c0_i32, %c0_i32_0, %c0_i32_1 : i32, i32, i32
  }
  func.func @transform_4(%arg0: i32) -> (i32, i32, i32) {
    %c0_i32 = arith.constant 0 : i32
    %c0_i32_0 = arith.constant 0 : i32
    %c0_i32_1 = arith.constant 0 : i32
    %c0_i32_2 = arith.constant 0 : i32
    return %c0_i32, %c0_i32_0, %c0_i32_1 : i32, i32, i32
  }
  func.func @transform_5(%arg0: i32) -> (i32, i32, i32) {
    %c0_i32 = arith.constant 0 : i32
    %c0_i32_0 = arith.constant 0 : i32
    %c0_i32_1 = arith.constant 0 : i32
    %c0_i32_2 = arith.constant 0 : i32
    return %c0_i32, %c0_i32_0, %c0_i32_1 : i32, i32, i32
  }
  func.func @transform_6(%arg0: i32) -> (i32, i32, i32) {
    %c0_i32 = arith.constant 0 : i32
    %c0_i32_0 = arith.constant 0 : i32
    %c0_i32_1 = arith.constant 0 : i32
    %c0_i32_2 = arith.constant 0 : i32
    return %c0_i32, %c0_i32_0, %c0_i32_1 : i32, i32, i32
  }
  func.func @transform_7(%arg0: i32) -> (i32, i32) {
    %c0_i32 = arith.constant 0 : i32
    %c0_i32_0 = arith.constant 0 : i32
    %c0_i32_1 = arith.constant 0 : i32
    return %c0_i32, %c0_i32_0 : i32, i32
  }
  func.func @transform_8(%arg0: i32) -> (i32, i32) {
    %c0_i32 = arith.constant 0 : i32
    %c0_i32_0 = arith.constant 0 : i32
    %c0_i32_1 = arith.constant 0 : i32
    return %c0_i32, %c0_i32_0 : i32, i32
  }
  func.func @transform_9(%arg0: i32) -> (i32, i32, i32) {
    %c0_i32 = arith.constant 0 : i32
    %c0_i32_0 = arith.constant 0 : i32
    %c0_i32_1 = arith.constant 0 : i32
    return %arg0, %c0_i32, %c0_i32_0 : i32, i32, i32
  }
}

</mosaic_0001>

<bundles_post_ra>
// kernel: tpu_custom_call.1
= control target key start
LH: loop header
LB: loop body
LE: loop exit
PB: predicated region body
PF: predicated region fallthrough
CT: control target
= control target key end

     0   :  { %s3683_s30 = smov 0   ;;  %s5484_s0 = inlined_call_operand.vmem [shape: f32[2,12,256], index: 0, kind: input, shape index: {}]   ;;  %s5485_s1 = inlined_call_operand.vmem [shape: f32[3,24,12], index: 1, kind: input, shape index: {}]   ;;  %s5486_s2 = inlined_call_operand.vmem [shape: f32[3,24,1], index: 2, kind: input, shape index: {}]   ;;  %s5487_s3 = inlined_call_operand.vmem [shape: f32[3,24,9], index: 3, kind: input, shape index: {}]   ;;  %s5488_s4 = inlined_call_operand.vmem [shape: f32[3,24,1], index: 4, kind: input, shape index: {}]   ;;  %s5489_s5 = inlined_call_operand.vmem [shape: f32[3,12,24], index: 5, kind: input, shape index: {}]   ;;  %s5490_s6 = inlined_call_operand.vmem [shape: f32[3,12,1], index: 6, kind: input, shape index: {}]   ;;  %s5491_s7 = inlined_call_operand.vmem [shape: f32[12,12], index: 7, kind: input, shape index: {}]   ;;  %s5492_s8 = inlined_call_operand.vmem [shape: f32[12,1], index: 8, kind: input, shape index: {}]   ;;  %s5493_s9 = inlined_call_operand.vmem [shape: f32[2,12,256], index: 9, kind: output, shape index: {}]  }
   0x1 LB: > { %s3364_s10 = sadd.s32 4294967295, %s3606_s30   ;;  %p3368_p0 = scmp.ge.s32.totalorder %s3606_s30, 1  ;;  %s3606_s30 = sphi %s3683_s30, %s19_s30  }
   0x2   : > { %p287_p1 = scmp.lt.s32.totalorder %s3606_s30, 3 }
   0x4   : > { %p288_p2 = pnand %p3368_p0, %p287_p1 }
   0x6   : > { %291 = sbr.rel (%p288_p2) target bundleno = 2739 (0xab3), region = 56 }
   0xd   : > { %p323_p3 = scmp.lt.s32.totalorder %s3364_s10, 1  ;;  %v5510_v0 = vmov 0.0   ;;  %vm411_vm0 = vcmask 1043456   ;;  %v5514_v1 = vmov 1   ;;  %v3699_v2 = vld [vmem:[%s5487_s3 + $0x8] sm:$0xff]  ;;  %v341_v3 = vlaneseq  ;;  %v385_v6 = vld [vmem:[%s5486_s2 + $0x10] sm:$0xff] }
   0xe   : > { %482 = vmatprep.mubr.f32.mxu0 %v5510_v0  ;;  %1331 = vmatprep.mubr.f32.mxu1 %v5510_v0  ;;  %v5494_v5 = vmov 0   ;;  %vm3611_vm1 = vmmov 1   ;;  %v5572_v7 = vmov 0  ;;  %v3723_v8 = vld [vmem:[%s5487_s3 + $0x10] sm:$0xff]  ;;  %v5506_v14 = vmov 2   ;;  %v3737_v17 = vld [vmem:[%s5487_s3] sm:$0xff] }
   0xf   : > { %s5646_s10 = smov (!%p323_p3, %s3364_s10), 1  ;;  %3509 = vset.pattern.permute.xlu0 %v5514_v1  ;;  %v3703_v4 = vand.u32 127, %v341_v3  ;;  %3507 = vset.pattern.permute.xlu1 %v5494_v5  ;;  %vm3716_vm2 = vmpackc.low %vm411_vm0, %vm3611_vm1  ;;  %v380_v18 = vld [vmem:[%s5485_s1] sm:$0xff]  ;;  %vm401_vm3 = vcmask 97280   ;;  %v5508_v19 = vmov 3   ;;  %v381_v22 = vld [vmem:[%s5485_s1 + $0x8] sm:$0xff] }
  0x10   : > { %597 = vperm.xlu0 %3509, %v3699_v2   ;;  %s3432_s13 = sshll.u32 %s5646_s10, 5  ;;  %v5573_v7 = vsel %vm3716_vm2, 4294967295, %v5572_v7  ;;  %398 = vperm.xlu1 %3507, %v385_v6   ;;  %v382_v23 = vld [vmem:[%s5485_s1 + $0x10] sm:$0xff]  ;;  %v5502_v26 = vmov 5   ;;  %s3615_s29 = smov 16   ;;  %v5500_v28 = vmov 4  }
  0x11   : > { %s3714_s18 = scalar_lea.vmem %s5484_s0, %s3432_s13  ;;  %5574 = vst [vmem:[#allocation3_spill] sm:$0xff] %v5573_v7  ;;  %v343_v16 = vadd.s32 128, %v3703_v4  ;;  %v348_v20 = vand.u32 15, %v3703_v4  ;;  %v5504_v29 = vmov 6   ;;  %v5498_v30 = vmov 8   ;;  %v383_v34 = vld [vmem:[%s5486_s2] sm:$0xff] }
  0x12   : > { %v377_v9 = vld [vmem:[%s3714_s18 + $0x8] sm:$0xff]  ;;  %v379_v10 = vld [vmem:[%s3714_s18 + $0x18] sm:$0xf]  ;;  %v376_v11 = vld [vmem:[%s3714_s18] sm:$0xff]  ;;  %s3619_s14 = smov 2   ;;  %v5496_v38 = vmov 7  }
  0x13   : > { %v3434_v12 = vpack.c.bf16 %v379_v10, %v377_v9  ;;  %v378_v13 = vld [vmem:[%s3714_s18 + $0x10] sm:$0xf]  ;;  %v355_v21 = vand.u32 15, %v343_v16  ;;  %vm368_vm4 = vcmp.gt.s32.totalorder %v348_v20, 0  ;;  %vm372_vm6 = vcmp.lt.s32.totalorder %v348_v20, 15  ;;  %v384_v35 = vld [vmem:[%s5486_s2 + $0x8] sm:$0xff] }
  0x14   : > { %3513 = vset.pattern.permute.xlu0 %v5506_v14  ;;  %v3437_v15 = vpack.c.bf16 %v378_v13, %v376_v11  ;;  %3508 = vset.pattern.permute.xlu1 %v5514_v1  ;;  %v3763_v24 = vsel %vm368_vm4, 1.0, %v5510_v0  ;;  %v374_v31 = vsel %vm372_vm6, 1.0, %v5510_v0  ;;  %v1223_v36 = vld [vmem:[%s5488_s4 + $0x8] sm:$0xff]  ;;  %v1224_v37 = vld [vmem:[%s5488_s4 + $0x10] sm:$0xff]  ;;  %s3621_s22 = smov 18   ;;  %s3622_s23 = smov 32  }
  0x15   : > { %668 = vperm.xlu0 %3513, %v3723_v8   ;;  %3436 = vmatprep.subr.msk.bf16.mxu0 %vm3716_vm2, %v3434_v12  ;;  %vm369_vm5 = vcmp.gt.s32.totalorder %v355_v21, 0  ;;  %vm373_vm7 = vcmp.lt.s32.totalorder %v355_v21, 15  ;;  %s3623_s24 = smov 34   ;;  %v1222_v39 = vld [vmem:[%s5488_s4] sm:$0xff]  ;;  %vm333_vm8 = vcmask 138240   ;;  %vm337_vm9 = vcmask 277640  }
  0x16   : > { %3439 = vmatpush1.bf16.msk.msra.mxu0 %vm3716_vm2, %v3437_v15  ;;  %593 = vperm.xlu1 %3508, %v3737_v17   ;;  %v3766_v25 = vsel %vm369_vm5, 1.0, %v5510_v0  ;;  %v375_v32 = vsel %vm373_vm7, 1.0, %v5510_v0  ;;  %334 = vst.msk [vmem:[#allocation2] sm:$0xff] %vm333_vm8, %v5510_v0  ;;  %335 = vst.msk [vmem:[#allocation2 + $0x18] sm:$0xff] %vm333_vm8, %v5510_v0  ;;  %s3624_s27 = smov 17   ;;  %vm531_vm10 = vcmask 1047688  }
  0x17   : > { %v3524_v27 = vpack.i.bf16 %v3766_v25, %v3763_v24  ;;  %v3517_v33 = vpack.i.bf16 %v375_v32, %v374_v31  ;;  %336 = vst.msk [vmem:[#allocation2 + $0x30] sm:$0xff] %vm333_vm8, %v5510_v0  ;;  %s3625_s28 = smov 111   ;;  %s3627_s11 = smov 95   ;;  %vm686_vm11 = vcmask 15360   ;;  %vm773_vm12 = vcmask 130048  }
  0x18   : > { %338 = vst.msk [vmem:[#allocation2 + $0x10] sm:$0xff] %vm337_vm9, %v5510_v0  ;;  %339 = vst.msk [vmem:[#allocation2 + $0x28] sm:$0xff] %vm337_vm9, %v5510_v0  ;;  %s3628_s12 = smov 96   ;;  %s3630_s15 = smov 94   ;;  %vm925_vm13 = vcmask 146432   ;;  %vm1010_vm14 = vcmask 261120  }
  0x19   : > { %3514 = vset.pattern.permute.xlu0 %v5508_v19  ;;  %3375 = vmatmul.mubr.msk.f32.vlgmr.msra.gmra.mrb[0].mxu0 %vm401_vm3, %v380_v18  ;;  %340 = vst.msk [vmem:[#allocation2 + $0x40] sm:$0xff] %vm337_vm9, %v5510_v0  ;;  %s3631_s16 = smov 112   ;;  %s3632_s17 = smov 110   ;;  %vm1162_vm15 = vcmask 277504   ;;  %vm640_vm0 = vcmask 1039360   ;;  %vm727_vm1 = vcmask 1031168  }
  0x1a   : > { %747 = vperm.xlu0 %3514, %v3737_v17   ;;  %488 = vmatprep.mubr.f32.mxu0 %v5510_v0  ;;  %vm814_vm4 = vcmask 916480   ;;  %vm881_vm5 = vcmask 908288   ;;  %vm966_vm6 = vcmask 900096   ;;  %vm1051_vm7 = vcmask 785408  }
  0x1b   : > { %3510 = vset.pattern.permute.xlu1 %v5506_v14  ;;  %vm1118_vm9 = vcmask 777216  }
  0x1c   : > { %660 = vperm.xlu1 %3510, %v3737_v17  }
  0x1d   : > { %3376 = vmatmul.mubr.msk.f32.gmra.mrb[2].mxu0 %vm401_vm3, %v381_v22 }
  0x1e   : > { %755 = vperm.xlu0 %3514, %v3723_v8   ;;  %494 = vmatprep.mubr.f32.mxu0 %v5510_v0 }
  0x20   : > { %664 = vperm.xlu1 %3510, %v3699_v2  }
  0x21   : > { %3377 = vmatmul.mubr.msk.f32.gmra.mrb[4].mxu0 %vm401_vm3, %v382_v23 }
  0x22   : > { %3522 = vset.pattern.permute.xlu0 %v5502_v26  ;;  %2252 = vmatprep.mubr.f32.mxu0 %v5510_v0 }
  0x23   : > { %901 = vperm.xlu0 %3522, %v3737_v17  }
  0x24   : > { %3511 = vset.pattern.permute.xlu1 %v5508_v19 }
  0x25   : > { %751 = vperm.xlu1 %3511, %v3699_v2  }
  0x27   : > { %3525 = vrot.lane.b32.xlu0 %v3524_v27, %s3615_s29  ;;  %s3626_s29 = smov 127  }
  0x29   : > { %3512 = vset.pattern.permute.xlu1 %v5514_v1 }
  0x2a   : > { %601 = vperm.xlu1 %3512, %v3723_v8  }
  0x2b   : > { %909 = vperm.xlu0 %3522, %v3723_v8  }
  0x2e   : > { %3515 = vset.pattern.permute.xlu1 %v5500_v28 }
  0x2f   : > { %3537 = vset.pattern.permute.xlu0 %v5504_v29  ;;  %834 = vperm.xlu1 %3515, %v3737_v17  }
  0x30   : > { %994 = vperm.xlu0 %3537, %v3723_v8  }
  0x33   : > { %838 = vperm.xlu1 %3515, %v3699_v2  }
  0x34   : > { %3538 = vset.pattern.permute.xlu0 %v5498_v30 }
  0x35   : > { %1138 = vperm.xlu0 %3538, %v3737_v17  }
  0x37   : > { %3516 = vset.pattern.permute.xlu1 %v5502_v26 }
  0x38   : > { %905 = vperm.xlu1 %3516, %v3699_v2  }
  0x39   : > { %1146 = vperm.xlu0 %3538, %v3723_v8  }
  0x3c   : > { %3518 = vrot.lane.b32.xlu1 %v3517_v33, %s3619_s14  ;;  %s3629_s14 = smov 126  }
  0x3d   : > { %3545 = vset.pattern.permute.xlu0 %v5494_v5  ;;  %3523 = vset.pattern.permute.xlu1 %v5504_v29 }
  0x3e   : > { %388 = vperm.xlu0 %3545, %v383_v34  }
  0x40   : > { %986 = vperm.xlu1 %3523, %v3737_v17  }
  0x42   : > { %393 = vperm.xlu0 %3545, %v384_v35  }
  0x44   : > { %990 = vperm.xlu1 %3523, %v3699_v2  }
  0x46   : > { %557 = vperm.xlu0 %3545, %v3699_v2  }
  0x48   : > { %3529 = vset.pattern.permute.xlu1 %v5500_v28 }
  0x49   : > { %842 = vperm.xlu1 %3529, %v3723_v8  }
  0x4a   : > { %1232 = vperm.xlu0 %3545, %v1223_v36  }
  0x4d   : > { %3530 = vset.pattern.permute.xlu1 %v5496_v38 }
  0x4e   : > { %1237 = vperm.xlu0 %3545, %v1224_v37   ;;  %1071 = vperm.xlu1 %3530, %v3737_v17  }
  0x52   : > { %1075 = vperm.xlu1 %3530, %v3699_v2  }
  0x56   : > { %3531 = vset.pattern.permute.xlu1 %v5498_v30 }
  0x57   : > { %1142 = vperm.xlu1 %3531, %v3699_v2  }
  0x5b   : > { %3533 = vrot.lane.b32.xlu1 %v3517_v33, %s3621_s22 }
  0x5c   : > { %3544 = vset.pattern.permute.xlu1 %v5496_v38 }
  0x5f   : > { %3540 = vrot.lane.b32.xlu1 %v3524_v27, %s3622_s23 }
  0x63   : > { %1079 = vperm.xlu1 %3544, %v3723_v8  }
  0x67   : > { %3547 = vrot.lane.b32.xlu1 %v3517_v33, %s3623_s24 }
  0x68   : > { %3551 = vset.pattern.permute.xlu1 %v5494_v5 }
  0x6b   : > { %552 = vperm.xlu1 %3551, %v3737_v17  }
  0x6f   : > { %562 = vperm.xlu1 %3551, %v3723_v8  }
  0x73   : > { %1227 = vperm.xlu1 %3551, %v1222_v39  }
  0x8f   : > { %v3830_v40 = vpop.permute.xlu0 %597  ;;  %v399_v48 = vpop.permute.xlu1 %398 }
  0x94   : > { %v3832_v41 = vpop.permute.xlu0 %668 }
  0x95   : > { %v3851_v50 = vpop.permute.xlu1 %593 }
  0x99   : > { %v3834_v42 = vpop.permute.xlu0 %747 }
  0x9b   : > { %v3855_v52 = vpop.permute.xlu1 %660 }
  0x9d   : > { %v3836_v43 = vpop.permute.xlu0 %755 }
  0x9f   : > { %v3858_v58 = vpop.permute.xlu1 %664 }
  0xa2   : > { %v3838_v44 = vpop.permute.xlu0 %901 }
  0xa4   : > { %v3863_v6 = vpop.permute.xlu1 %751 }
  0xa6   : > { %v3840_v45 = vpop.permute.xlu0 %3525 }
  0xa7   : > { %v3987_v38 = vunpack.i.h.bf16 %v3840_v45 }
  0xa9   : > { %v3867_v9 = vpop.permute.xlu1 %601  ;;  %5580 = vst [vmem:[#allocation9_spill] sm:$0xff] %v3987_v38 }
  0xaa   : > { %v3842_v46 = vpop.permute.xlu0 %909 }
  0xae   : > { %v3869_v10 = vpop.permute.xlu1 %834 }
  0xaf   : > { %v3844_v47 = vpop.permute.xlu0 %994 }
  0xb2   : > { %v3871_v11 = vpop.permute.xlu1 %838 }
  0xb4   : > { %v3846_v49 = vpop.permute.xlu0 %1138 }
  0xb7   : > { %v3873_v12 = vpop.permute.xlu1 %905 }
  0xb8   : > { %v3853_v51 = vpop.permute.xlu0 %1146 }
  0xbb   : > { %v3875_v13 = vpop.permute.xlu1 %3518 }
  0xbc   : > { %v3954_v5 = vunpack.i.l.bf16 %v3875_v13 }
  0xbd   : > { %v389_v53 = vpop.permute.xlu0 %388 }
  0xbe   : > { %5576 = vst [vmem:[#allocation5_spill] sm:$0xff] %v3954_v5 }
  0xbf   : > { %v3877_v15 = vpop.permute.xlu1 %986 }
  0xc1   : > { %v394_v59 = vpop.permute.xlu0 %393 }
  0xc3   : > { %v3879_v16 = vpop.permute.xlu1 %990 }
  0xc5   : > { %v3897_v33 = vpop.permute.xlu0 %557 }
  0xc8   : > { %v3881_v17 = vpop.permute.xlu1 %842 }
  0xc9   : > { %v3901_v35 = vpop.permute.xlu0 %1232 }
  0xcd   : > { %v1072_v18 = vpop.permute.xlu1 %1071  ;;  %v3905_v37 = vpop.permute.xlu0 %1237 }
  0xd1   : > { %v3883_v20 = vpop.permute.xlu1 %1075 }
  0xd6   : > { %v3885_v21 = vpop.permute.xlu1 %1142 }
  0xda   : > { %v3887_v22 = vpop.permute.xlu1 %3533 }
  0xdb   : > { %v3999_v30 = vunpack.i.h.bf16 %v3887_v22 }
  0xdd   : > { %5582 = vst [vmem:[#allocation11_spill] sm:$0xff] %v3999_v30 }
  0xde   : > { %v3889_v23 = vpop.permute.xlu1 %3540 }
  0xe2   : > { %v3891_v27 = vpop.permute.xlu1 %1079 }
  0xe4   : > { %v5608_v7 = vld [vmem:[#allocation11_spill] sm:$0xff] }
  0xe6   : > { %v3893_v31 = vpop.permute.xlu1 %3547 }
  0xea   : > { %v3895_v32 = vpop.permute.xlu1 %552 }
  0xec   : > { %v484_v54 = vpop.f32.mrb[0].mxu0 }
  0xed   : > { %v485_v55 = vadd.f32 %v484_v54, %v389_v53  ;;  %v486_v56 = vpop.f32.mrb[1].mxu0 }
  0xee   : > { %v487_v57 = vadd.f32 %v486_v56, %v389_v53  ;;  %v3899_v34 = vpop.permute.xlu1 %562 }
  0xef   : > { %507 = vrot.lane.b32.xlu1 %v485_v55, %s3624_s27 }
  0xf0   : > { %v490_v60 = vpop.f32.mrb[2].mxu0  ;;  %509 = vrot.lane.b32.xlu0 %v487_v57, %s3624_s27 }
  0xf1   : > { %v491_v61 = vadd.f32 %v490_v60, %v394_v59  ;;  %v492_v62 = vpop.f32.mrb[3].mxu0 }
  0xf2   : > { %v493_v63 = vadd.f32 %v492_v62, %v394_v59  ;;  %v3903_v36 = vpop.permute.xlu1 %1227 }
  0xf3   : > { %511 = vrot.lane.b32.xlu1 %v491_v61, %s3624_s27 }
  0xf4   : > { %v496_v2 = vpop.f32.mrb[4].mxu0  ;;  %513 = vrot.lane.b32.xlu0 %v493_v63, %s3624_s27 }
  0xf5   : > { %v497_v3 = vadd.f32 %v496_v2, %v399_v48  ;;  %v498_v4 = vpop.f32.mrb[5].mxu0 }
  0xf6   : > { %v499_v8 = vadd.f32 %v498_v4, %v399_v48 }
  0xf7   : > { %515 = vrot.lane.b32.xlu1 %v497_v3, %s3624_s27 }
  0xf8   : > { %517 = vrot.lane.b32.xlu0 %v499_v8, %s3624_s27 }
 0x161   : > { %v508_v39 = vpop.permute.xlu1 %507 }
 0x162   : > { %532 = vst.msk [vmem:[#allocation2] sm:$0xff] %vm531_vm10, %v508_v39  ;;  %v510_v48 = vpop.permute.xlu0 %509 }
 0x163   : > { %534 = vst.msk [vmem:[#allocation2 + $0x10] sm:$0xff] %vm333_vm8, %v510_v48  ;;  %v3941_v8 = vsel %vm333_vm8, %v508_v39, %v510_v48 }
 0x164   : > { %v1083_v39 = vmul.f32 %v1072_v18, %v3941_v8 }
 0x165   : > { %v3909_v53 = vpop.permute.xlu1 %511 }
 0x166   : > { %535 = vst.msk [vmem:[#allocation2 + $0x18] sm:$0xff] %vm531_vm10, %v3909_v53  ;;  %v3913_v54 = vpop.permute.xlu0 %513 }
 0x167   : > { %537 = vst.msk [vmem:[#allocation2 + $0x28] sm:$0xff] %vm333_vm8, %v3913_v54 }
 0x169   : > { %v3917_v55 = vpop.permute.xlu1 %515  ;;  %v3919_v56 = vld [vmem:[#allocation2] sm:$0xff] }
 0x16a   : > { %538 = vst.msk [vmem:[#allocation2 + $0x30] sm:$0xff] %vm531_vm10, %v3917_v55  ;;  %v3923_v57 = vpop.permute.xlu0 %517  ;;  %v845_v59 = vmul.f32 %v3869_v10, %v3919_v56  ;;  %v604_v60 = vmul.f32 %v3851_v50, %v3919_v56  ;;  %v585_v61 = vld [vmem:[#allocation2 + $0x10] sm:$0xff]  ;;  %v1082_v63 = vmul.f32 %v1072_v18, %v3919_v56  ;;  %v997_v4 = vmul.f32 %v3877_v15, %v3919_v56 }
 0x16b   : > { %540 = vst.msk [vmem:[#allocation2 + $0x40] sm:$0xff] %vm333_vm8, %v3923_v57  ;;  %v606_v62 = vmul.f32 %v3851_v50, %v585_v61  ;;  %v847_v2 = vmul.f32 %v3869_v10, %v585_v61  ;;  %v1084_v3 = vmul.f32 %v1072_v18, %v585_v61 }
 0x16c   : > { %863 = vrot.lane.b32.xlu0 %v845_v59, %s3625_s28  ;;  %622 = vrot.lane.b32.xlu1 %v604_v60, %s3626_s29  ;;  %v3944_v59 = vunpack.i.l.bf16 %v3889_v23 }
 0x16e   : > { %5575 = vst [vmem:[#allocation4_spill] sm:$0xff] %v3944_v59  ;;  %v1015_v60 = vmul.f32 %v3944_v59, %v997_v4  ;;  %v3968_v4 = vunpack.i.l.bf16 %v3893_v31 }
 0x170   : > { %626 = vrot.lane.b32.xlu0 %v606_v62, %s3626_s29  ;;  %1100 = vrot.lane.b32.xlu1 %v1082_v63, %s3627_s11  ;;  %v605_v62 = vmul.f32 %v3851_v50, %v3941_v8  ;;  %v671_v63 = vmul.f32 %v3855_v52, %v3919_v56  ;;  %v758_v50 = vmul.f32 %v3834_v42, %v3919_v56 }
 0x171   : > { %5578 = vst [vmem:[#allocation7_spill] sm:$0xff] %v3968_v4 }
 0x172   : > { %v691_v48 = vmul.f32 %v3954_v5, %v671_v63  ;;  %v3976_v63 = vunpack.i.h.bf16 %v3875_v13  ;;  %v3990_v13 = vunpack.i.l.bf16 %v3887_v22  ;;  %v4012_v22 = vunpack.i.h.bf16 %v3893_v31 }
 0x174   : > { %867 = vrot.lane.b32.xlu0 %v847_v2, %s3625_s28  ;;  %1104 = vrot.lane.b32.xlu1 %v1084_v3, %s3627_s11  ;;  %v1149_v2 = vmul.f32 %v3846_v49, %v3919_v56  ;;  %v3965_v3 = vunpack.i.l.bf16 %v3840_v45  ;;  %5579 = vst [vmem:[#allocation8_spill] sm:$0xff] %v3976_v63  ;;  %5581 = vst [vmem:[#allocation10_spill] sm:$0xff] %v3990_v13  ;;  %v4002_v45 = vunpack.i.h.bf16 %v3889_v23 }
 0x175   : > { %5584 = vst [vmem:[#allocation13_spill] sm:$0xff] %v4012_v22  ;;  %v4018_v23 = vsel %vm686_vm11, %v3954_v5, %v3976_v63  ;;  %vm1203_vm11 = vcmask 769024  }
 0x176   : > { %5577 = vst [vmem:[#allocation6_spill] sm:$0xff] %v3965_v3  ;;  %v1167_v18 = vmul.f32 %v3968_v4, %v1149_v2  ;;  %v760_v2 = vmul.f32 %v3834_v42, %v585_v61  ;;  %5583 = vst [vmem:[#allocation12_spill] sm:$0xff] %v4002_v45  ;;  %v4030_v31 = vsel %vm773_vm12, %v3965_v3, %v3987_v38  ;;  %vm5544_vm12 = vcmask 195584  }
 0x177   : > { %5585 = vst [vmem:[#allocation14_spill] sm:$0xff] %v4018_v23  ;;  %5586 = vst [vmem:[#allocation15_spill] sm:$0xff] %v4030_v31 }
 0x178   : > { %1033 = vrot.lane.b32.xlu0 %v1015_v60, %s3628_s12  ;;  %624 = vrot.lane.b32.xlu1 %v605_v62, %s3626_s29  ;;  %v778_v60 = vmul.f32 %v3965_v3, %v758_v50  ;;  %v673_v62 = vmul.f32 %v3855_v52, %v585_v61  ;;  %v912_v50 = vmul.f32 %v3838_v44, %v3919_v56 }
 0x17c   : > { %1102 = vrot.lane.b32.xlu0 %v1083_v39, %s3627_s11  ;;  %709 = vrot.lane.b32.xlu1 %v691_v48, %s3629_s14  ;;  %v693_v39 = vmul.f32 %v3976_v63, %v673_v62  ;;  %v846_v48 = vmul.f32 %v3869_v10, %v3941_v8  ;;  %v999_v10 = vmul.f32 %v3877_v15, %v585_v61 }
 0x17d   : > { %v914_v62 = vmul.f32 %v3838_v44, %v585_v61 }
 0x180   : > { %1185 = vrot.lane.b32.xlu0 %v1167_v18, %s3630_s15  ;;  %796 = vrot.lane.b32.xlu1 %v778_v60, %s3631_s16  ;;  %v780_v18 = vmul.f32 %v3987_v38, %v760_v2  ;;  %v930_v60 = vmul.f32 %v3990_v13, %v912_v50  ;;  %v1151_v2 = vmul.f32 %v3846_v49, %v585_v61 }
 0x181   : > { %v672_v50 = vmul.f32 %v3855_v52, %v3941_v8  ;;  %v759_v61 = vmul.f32 %v3834_v42, %v3941_v8  ;;  %v4024_v52 = vld [vmem:[#allocation2 + $0x18] sm:$0xff]  ;;  %v4041_v42 = vsel %vm925_vm13, %v3990_v13, %v3999_v30 }
 0x182   : > { %5587 = vst [vmem:[#allocation16_spill] sm:$0xff] %v4041_v42 }
 0x184   : > { %713 = vrot.lane.b32.xlu0 %v693_v39, %s3629_s14  ;;  %865 = vrot.lane.b32.xlu1 %v846_v48, %s3625_s28  ;;  %v1017_v39 = vmul.f32 %v4002_v45, %v999_v10  ;;  %v932_v48 = vmul.f32 %v3999_v30, %v914_v62  ;;  %v779_v10 = vmul.f32 %v4030_v31, %v759_v61 }
 0x185   : > { %v607_v62 = vmul.f32 %v3830_v40, %v4024_v52  ;;  %v1150_v61 = vmul.f32 %v3846_v49, %v3941_v8 }
 0x188   : > { %800 = vrot.lane.b32.xlu0 %v780_v18, %s3631_s16  ;;  %948 = vrot.lane.b32.xlu1 %v930_v60, %s3632_s17  ;;  %v1169_v18 = vmul.f32 %v4012_v22, %v1151_v2  ;;  %v692_v60 = vmul.f32 %v4018_v23, %v672_v50  ;;  %v998_v50 = vmul.f32 %v3877_v15, %v3941_v8 }
 0x189   : > { %v4063_v15 = vsel %vm1162_vm15, %v3968_v4, %v4012_v22 }
 0x18a   : > { %5589 = vst [vmem:[#allocation18_spill] sm:$0xff] %v4063_v15 }
 0x18c   : > { %1037 = vrot.lane.b32.xlu0 %v1017_v39, %s3628_s12  ;;  %952 = vrot.lane.b32.xlu1 %v932_v48, %s3632_s17  ;;  %v913_v39 = vmul.f32 %v3838_v44, %v3941_v8  ;;  %v848_v48 = vmul.f32 %v3871_v11, %v4024_v52  ;;  %v4052_v44 = vsel %vm1010_vm14, %v3944_v59, %v4002_v45 }
 0x18d   : > { %5588 = vst [vmem:[#allocation17_spill] sm:$0xff] %v4052_v44 }
 0x18e   : > { %v931_v2 = vmul.f32 %v4041_v42, %v913_v39 }
 0x190   : > { %1189 = vrot.lane.b32.xlu0 %v1169_v18, %s3630_s15  ;;  %711 = vrot.lane.b32.xlu1 %v692_v60, %s3629_s14  ;;  %v1016_v18 = vmul.f32 %v4052_v44, %v998_v50  ;;  %v1085_v60 = vmul.f32 %v3883_v20, %v4024_v52  ;;  %v4076_v50 = vsel %vm333_vm8, %v3909_v53, %v3913_v54 }
 0x191   : > { %v849_v53 = vmul.f32 %v3871_v11, %v4076_v50  ;;  %v915_v54 = vmul.f32 %v3873_v12, %v4024_v52 }
 0x194   : > { %798 = vrot.lane.b32.xlu1 %v779_v10, %s3631_s16  ;;  %628 = vrot.lane.b32.xlu0 %v607_v62, %s3626_s29  ;;  %v588_v10 = vld [vmem:[#allocation2 + $0x28] sm:$0xff]  ;;  %v1168_v62 = vmul.f32 %v4063_v15, %v1150_v61  ;;  %v761_v61 = vmul.f32 %v3863_v6, %v4024_v52 }
 0x195   : > { %v609_v39 = vmul.f32 %v3830_v40, %v588_v10  ;;  %v1087_v49 = vmul.f32 %v3883_v20, %v588_v10 }
 0x198   : > { %869 = vrot.lane.b32.xlu1 %v848_v48, %s3625_s28  ;;  %950 = vrot.lane.b32.xlu0 %v931_v2, %s3632_s17  ;;  %v850_v48 = vmul.f32 %v3871_v11, %v588_v10  ;;  %v674_v2 = vmul.f32 %v3858_v58, %v4024_v52  ;;  %v1086_v11 = vmul.f32 %v3883_v20, %v4076_v50 }
 0x19c   : > { %1035 = vrot.lane.b32.xlu1 %v1016_v18, %s3628_s12  ;;  %1106 = vrot.lane.b32.xlu0 %v1085_v60, %s3627_s11  ;;  %v694_v18 = vmul.f32 %v3954_v5, %v674_v2  ;;  %v608_v60 = vmul.f32 %v3830_v40, %v4076_v50  ;;  %v933_v40 = vmul.f32 %v3990_v13, %v915_v54 }
 0x19d   : > { %v675_v54 = vmul.f32 %v3858_v58, %v4076_v50 }
 0x1a0   : > { %1187 = vrot.lane.b32.xlu1 %v1168_v62, %s3630_s15  ;;  %632 = vrot.lane.b32.xlu0 %v609_v39, %s3626_s29  ;;  %v781_v62 = vmul.f32 %v3965_v3, %v761_v61  ;;  %v1000_v39 = vmul.f32 %v3879_v16, %v4024_v52 }
 0x1a4   : > { %1110 = vrot.lane.b32.xlu1 %v1087_v49, %s3627_s11  ;;  %873 = vrot.lane.b32.xlu0 %v850_v48, %s3625_s28  ;;  %v1018_v49 = vmul.f32 %v3944_v59, %v1000_v39  ;;  %v1152_v48 = vmul.f32 %v3885_v21, %v4024_v52  ;;  %v695_v39 = vmul.f32 %v4018_v23, %v675_v54  ;;  %v591_v54 = vld [vmem:[#allocation2 + $0x40] sm:$0xff] }
 0x1a6   : > { %v1170_v2 = vmul.f32 %v3968_v4, %v1152_v48 }
 0x1a8   : > { %715 = vrot.lane.b32.xlu0 %v694_v18, %s3629_s14  ;;  %630 = vrot.lane.b32.xlu1 %v608_v60, %s3626_s29  ;;  %v676_v18 = vmul.f32 %v3858_v58, %v588_v10  ;;  %v917_v60 = vmul.f32 %v3873_v12, %v588_v10 }
 0x1aa   : > { %v696_v61 = vmul.f32 %v3976_v63, %v676_v18 }
 0x1ac   : > { %802 = vrot.lane.b32.xlu0 %v781_v62, %s3631_s16  ;;  %871 = vrot.lane.b32.xlu1 %v849_v53, %s3625_s28  ;;  %v935_v62 = vmul.f32 %v3999_v30, %v917_v60  ;;  %v763_v53 = vmul.f32 %v3863_v6, %v588_v10  ;;  %v916_v60 = vmul.f32 %v3873_v12, %v4076_v50 }
 0x1ae   : > { %v783_v20 = vmul.f32 %v3987_v38, %v763_v53  ;;  %v1153_v53 = vmul.f32 %v3885_v21, %v4076_v50 }
 0x1b0   : > { %954 = vrot.lane.b32.xlu0 %v933_v40, %s3632_s17  ;;  %1039 = vrot.lane.b32.xlu1 %v1018_v49, %s3628_s12  ;;  %v1002_v40 = vmul.f32 %v3879_v16, %v588_v10  ;;  %v762_v49 = vmul.f32 %v3863_v6, %v4076_v50 }
 0x1b2   : > { %v1020_v48 = vmul.f32 %v4002_v45, %v1002_v40  ;;  %v782_v58 = vmul.f32 %v4030_v31, %v762_v49  ;;  %v1090_v49 = vmul.f32 %v3891_v27, %v591_v54 }
 0x1b4   : > { %1108 = vrot.lane.b32.xlu0 %v1086_v11, %s3627_s11  ;;  %1191 = vrot.lane.b32.xlu1 %v1170_v2, %s3630_s15  ;;  %v1154_v11 = vmul.f32 %v3885_v21, %v588_v10  ;;  %v4126_v2 = vld [vmem:[#allocation2 + $0x30] sm:$0xff]  ;;  %v934_v10 = vmul.f32 %v4041_v42, %v916_v60 }
 0x1b5   : > { %v610_v6 = vmul.f32 %v3867_v9, %v4126_v2  ;;  %v851_v12 = vmul.f32 %v3881_v17, %v4126_v2  ;;  %v677_v21 = vmul.f32 %v3832_v41, %v4126_v2 }
 0x1b6   : > { %v1172_v18 = vmul.f32 %v4012_v22, %v1154_v11 }
 0x1b7   : > { %v697_v40 = vmul.f32 %v3954_v5, %v677_v21 }
 0x1b8   : > { %719 = vrot.lane.b32.xlu0 %v696_v61, %s3629_s14  ;;  %958 = vrot.lane.b32.xlu1 %v935_v62, %s3632_s17  ;;  %v1001_v61 = vmul.f32 %v3879_v16, %v4076_v50  ;;  %v1171_v16 = vmul.f32 %v4063_v15, %v1153_v53  ;;  %v1003_v53 = vmul.f32 %v3844_v47, %v4126_v2 }
 0x1ba   : > { %v1019_v62 = vmul.f32 %v4052_v44, %v1001_v61 }
 0x1bc   : > { %806 = vrot.lane.b32.xlu0 %v783_v20, %s3631_s16  ;;  %717 = vrot.lane.b32.xlu1 %v695_v39, %s3629_s14  ;;  %v612_v20 = vmul.f32 %v3867_v9, %v591_v54  ;;  %v853_v39 = vmul.f32 %v3881_v17, %v591_v54 }
 0x1c0   : > { %1043 = vrot.lane.b32.xlu0 %v1020_v48, %s3628_s12  ;;  %804 = vrot.lane.b32.xlu1 %v782_v58, %s3631_s16  ;;  %v4161_v48 = vsel %vm333_vm8, %v3917_v55, %v3923_v57 }
 0x1c1   : > { %v852_v58 = vmul.f32 %v3881_v17, %v4161_v48  ;;  %v611_v11 = vmul.f32 %v3867_v9, %v4161_v48  ;;  %v1089_v55 = vmul.f32 %v3891_v27, %v4161_v48  ;;  %v918_v17 = vmul.f32 %v3842_v46, %v4126_v2 }
 0x1c2   : > { %v678_v21 = vmul.f32 %v3832_v41, %v4161_v48 }
 0x1c4   : > { %1195 = vrot.lane.b32.xlu0 %v1172_v18, %s3630_s15  ;;  %634 = vrot.lane.b32.xlu1 %v610_v6, %s3626_s29  ;;  %v764_v18 = vmul.f32 %v3836_v43, %v4126_v2  ;;  %v766_v6 = vmul.f32 %v3836_v43, %v591_v54 }
 0x1c6   : > { %v784_v57 = vmul.f32 %v3965_v3, %v764_v18  ;;  %v786_v61 = vmul.f32 %v3987_v38, %v766_v6  ;;  %v1088_v6 = vmul.f32 %v3891_v27, %v4126_v2 }
 0x1c8   : > { %956 = vrot.lane.b32.xlu0 %v934_v10, %s3632_s17  ;;  %1041 = vrot.lane.b32.xlu1 %v1019_v62, %s3628_s12  ;;  %v936_v10 = vmul.f32 %v3990_v13, %v918_v17  ;;  %v920_v62 = vmul.f32 %v3842_v46, %v591_v54 }
 0x1cc   : > { %875 = vrot.lane.b32.xlu0 %v851_v12, %s3625_s28  ;;  %1193 = vrot.lane.b32.xlu1 %v1171_v16, %s3630_s15 }
 0x1d0   : > { %638 = vrot.lane.b32.xlu0 %v612_v20, %s3626_s29  ;;  %879 = vrot.lane.b32.xlu1 %v853_v39, %s3625_s28  ;;  %v938_v20 = vmul.f32 %v3999_v30, %v920_v62  ;;  %v1021_v39 = vmul.f32 %v3944_v59, %v1003_v53 }
 0x1d4   : > { %721 = vrot.lane.b32.xlu0 %v697_v40, %s3629_s14  ;;  %1116 = vrot.lane.b32.xlu1 %v1090_v49, %s3627_s11  ;;  %v679_v40 = vmul.f32 %v3832_v41, %v591_v54 }
 0x1d6   : > { %v699_v18 = vmul.f32 %v3976_v63, %v679_v40 }
 0x1d8   : > { %877 = vrot.lane.b32.xlu0 %v852_v58, %s3625_s28  ;;  %636 = vrot.lane.b32.xlu1 %v611_v11, %s3626_s29  ;;  %v698_v11 = vmul.f32 %v4018_v23, %v678_v21 }
 0x1dc   : > { %1114 = vrot.lane.b32.xlu0 %v1089_v55, %s3627_s11  ;;  %808 = vrot.lane.b32.xlu1 %v784_v57, %s3631_s16  ;;  %v1005_v55 = vmul.f32 %v3844_v47, %v591_v54 }
 0x1de   : > { %v4181_v9 = vpop.permute.xlu0 %863  ;;  %v4183_v60 = vpop.permute.xlu1 %622  ;;  %v1023_v17 = vmul.f32 %v4002_v45, %v1005_v55 }
 0x1e0   : > { %812 = vrot.lane.b32.xlu0 %v786_v61, %s3631_s16  ;;  %960 = vrot.lane.b32.xlu1 %v936_v10, %s3632_s17  ;;  %v1004_v61 = vmul.f32 %v3844_v47, %v4161_v48  ;;  %v765_v10 = vmul.f32 %v3836_v43, %v4161_v48  ;;  %v919_v47 = vmul.f32 %v3842_v46, %v4161_v48  ;;  %v1248_v46 = vld [vmem:[%s5490_s6] sm:$0xff] }
 0x1e2   : > { %v4192_v12 = vpop.permute.xlu0 %626  ;;  %v4194_v16 = vpop.permute.xlu1 %1100  ;;  %v785_v27 = vmul.f32 %v4030_v31, %v765_v10  ;;  %v566_v31 = vmul.f32 %v3895_v32, %v3941_v8 }
 0x1e4   : > { %964 = vrot.lane.b32.xlu0 %v938_v20, %s3632_s17  ;;  %1045 = vrot.lane.b32.xlu1 %v1021_v39, %s3628_s12  ;;  %v1022_v20 = vmul.f32 %v4052_v44, %v1004_v61  ;;  %v1157_v39 = vmul.f32 %v3853_v51, %v591_v54 }
 0x1e6   : > { %v4203_v49 = vpop.permute.xlu0 %867  ;;  %v4205_v58 = vpop.permute.xlu1 %1104  ;;  %v1175_v40 = vmul.f32 %v4012_v22, %v1157_v39 }
 0x1e8   : > { %723 = vrot.lane.b32.xlu0 %v698_v11, %s3629_s14  ;;  %725 = vrot.lane.b32.xlu1 %v699_v18, %s3629_s14  ;;  %v937_v11 = vmul.f32 %v4041_v42, %v919_v47  ;;  %v1156_v18 = vmul.f32 %v3853_v51, %v4161_v48  ;;  %v565_v42 = vmul.f32 %v3919_v56, %v3895_v32 }
 0x1e9   : > { %v572_v56 = vmul.f32 %v566_v31, %v3766_v25  ;;  %v568_v31 = vmul.f32 %v3897_v33, %v4076_v50 }
 0x1ea   : > { %v4212_v57 = vpop.permute.xlu0 %1033  ;;  %v4214_v41 = vpop.permute.xlu1 %624  ;;  %v571_v13 = vmul.f32 %v565_v42, %v3763_v24  ;;  %v567_v42 = vmul.f32 %v4024_v52, %v3897_v33 }
 0x1eb   : > { %v641_v30 = vsel %vm640_vm0, %v4183_v60, %v4214_v41  ;;  %v642_v45 = vsel %vm640_vm0, %v4214_v41, %v4192_v12 }
 0x1ec   : > { %1112 = vrot.lane.b32.xlu0 %v1088_v6, %s3627_s11  ;;  %1049 = vrot.lane.b32.xlu1 %v1023_v17, %s3628_s12  ;;  %v1174_v6 = vmul.f32 %v4063_v15, %v1156_v18  ;;  %v1155_v17 = vmul.f32 %v3853_v51, %v4126_v2  ;;  %v3384_v51 = vld [vmem:[%s5486_s2 + $0x20] sm:$0xff]  ;;  %v653_v38 = vadd.f32 %v641_v30, %v571_v13 }
 0x1ed   : > { %v654_v63 = vadd.f32 %v642_v45, %v572_v56 }
 0x1ee   : > { %v4225_v62 = vpop.permute.xlu0 %1102  ;;  %v4227_v53 = vpop.permute.xlu1 %709 }
 0x1f0   : > { %1047 = vrot.lane.b32.xlu0 %v1022_v20, %s3628_s12  ;;  %810 = vrot.lane.b32.xlu1 %v785_v27, %s3631_s16  ;;  %v1173_v20 = vmul.f32 %v3968_v4, %v1155_v17  ;;  %v1249_v27 = vld [vmem:[%s5490_s6 + $0x8] sm:$0xf] }
 0x1f2   : > { %v4236_v43 = vpop.permute.xlu0 %1185  ;;  %v797_v21 = vpop.permute.xlu1 %796 }
 0x1f4   : > { %1201 = vrot.lane.b32.xlu0 %v1175_v40, %s3630_s15  ;;  %962 = vrot.lane.b32.xlu1 %v937_v11, %s3632_s17 }
 0x1f6   : > { %v714_v54 = vpop.permute.xlu0 %713  ;;  %v4247_v55 = vpop.permute.xlu1 %865 }
 0x1f7   : > { %v882_v52 = vsel %vm881_vm5, %v4181_v9, %v4247_v55 }
 0x1f8   : > { %1252 = vperm.xlu0 %3545, %v1248_v46   ;;  %1199 = vrot.lane.b32.xlu1 %v1174_v6, %s3630_s15 }
 0x1fa   : > { %v801_v61 = vpop.permute.xlu0 %800  ;;  %v4253_v10 = vpop.permute.xlu1 %948 }
 0x1fc   : > { %1197 = vrot.lane.b32.xlu1 %v1173_v20, %s3630_s15  ;;  %3553 = vset.pattern.permute.xlu0 %v5514_v1 }
 0x1fe   : > { %v4261_v39 = vpop.permute.xlu0 %1037  ;;  %v4263_v47 = vpop.permute.xlu1 %952 }
 0x200   : > { %1257 = vperm.xlu1 %3551, %v1249_v27  }
 0x202   : > { %v4268_v40 = vpop.permute.xlu0 %1189  ;;  %v712_v11 = vpop.permute.xlu1 %711 }
 0x203   : > { %v728_v32 = vsel %vm727_vm1, %v4227_v53, %v712_v11  ;;  %v729_v8 = vsel %vm727_vm1, %v712_v11, %v714_v54 }
 0x204   : > { %1371 = vperm.xlu1 %3551, %v3384_v51   ;;  %v740_v59 = vadd.f32 %v728_v32, %v653_v38  ;;  %v741_v12 = vadd.f32 %v729_v8, %v654_v63  ;;  %v573_v38 = vmul.f32 %v567_v42, %v3763_v24  ;;  %v574_v63 = vmul.f32 %v568_v31, %v3766_v25 }
 0x206   : > { %v629_v18 = vpop.permute.xlu0 %628  ;;  %v799_v46 = vpop.permute.xlu1 %798 }
 0x207   : > { %v815_v60 = vsel %vm814_vm4, %v797_v21, %v799_v46  ;;  %v816_v5 = vsel %vm814_vm4, %v799_v46, %v801_v61 }
 0x208   : > { %3552 = vset.pattern.permute.xlu1 %v5514_v1  ;;  %v827_v41 = vadd.f32 %v815_v60, %v740_v59  ;;  %v828_v53 = vadd.f32 %v816_v5, %v741_v12  ;;  %v883_v5 = vsel %vm881_vm5, %v4247_v55, %v4203_v49 }
 0x20a   : > { %v951_v6 = vpop.permute.xlu0 %950  ;;  %v4271_v17 = vpop.permute.xlu1 %869  ;;  %v894_v50 = vadd.f32 %v882_v52, %v827_v41  ;;  %v895_v21 = vadd.f32 %v883_v5, %v828_v53  ;;  %v1119_v53 = vsel %vm1118_vm9, %v4194_v16, %v4225_v62 }
 0x20b   : > { %v968_v9 = vsel %vm966_vm6, %v951_v6, %v4263_v47 }
 0x20c   : > { %v980_v8 = vadd.f32 %v968_v9, %v895_v21 }
 0x20e   : > { %v4273_v20 = vpop.permute.xlu0 %1106  ;;  %v4275_v28 = vpop.permute.xlu1 %1035 }
 0x20f   : > { %v1053_v56 = vsel %vm1051_vm7, %v4275_v28, %v4261_v39 }
 0x212   : > { %v633_v27 = vpop.permute.xlu0 %632  ;;  %v4277_v26 = vpop.permute.xlu1 %1187 }
 0x213   : > { %v1205_v16 = vsel %vm1203_vm11, %v4277_v26, %v4268_v40 }
 0x216   : > { %v4279_v29 = vpop.permute.xlu0 %873  ;;  %v4281_v14 = vpop.permute.xlu1 %1110 }
 0x21a   : > { %v716_v19 = vpop.permute.xlu0 %715  ;;  %v631_v51 = vpop.permute.xlu1 %630 }
 0x21b   : > { %v643_v13 = vsel %vm640_vm0, %v629_v18, %v631_v51  ;;  %v644_v45 = vsel %vm640_vm0, %v631_v51, %v633_v27  ;;  %v967_v27 = vsel %vm966_vm6, %v4253_v10, %v951_v6  ;;  %v1065_v6 = vadd.f32 %v1053_v56, %v980_v8 }
 0x21c   : > { %v655_v61 = vadd.f32 %v643_v13, %v573_v38  ;;  %v656_v11 = vadd.f32 %v644_v45, %v574_v63  ;;  %v979_v32 = vadd.f32 %v967_v27, %v894_v50  ;;  %v1204_v38 = vsel %vm1203_vm11, %v4236_v43, %v4277_v26 }
 0x21e   : > { %v803_v0 = vpop.permute.xlu0 %802  ;;  %v4283_v15 = vpop.permute.xlu1 %871 }
 0x21f   : > { %v884_v42 = vsel %vm881_vm5, %v4271_v17, %v4283_v15 }
 0x222   : > { %v4285_v1 = vpop.permute.xlu0 %954  ;;  %v4287_v44 = vpop.permute.xlu1 %1039 }
 0x226   : > { %v4293_v23 = vpop.permute.xlu0 %1108  ;;  %v4295_v22 = vpop.permute.xlu1 %1191 }
 0x227   : > { %v1121_v5 = vsel %vm1118_vm9, %v4273_v20, %v4293_v23  ;;  %v1122_v43 = vsel %vm1118_vm9, %v4293_v23, %v4281_v14 }
 0x22a   : > { %v720_v3 = vpop.permute.xlu0 %719  ;;  %v959_v4 = vpop.permute.xlu1 %958 }
 0x22e   : > { %v807_v54 = vpop.permute.xlu0 %806  ;;  %v718_v30 = vpop.permute.xlu1 %717 }
 0x22f   : > { %v730_v33 = vsel %vm727_vm1, %v716_v19, %v718_v30  ;;  %v731_v59 = vsel %vm727_vm1, %v718_v30, %v720_v3  ;;  %v1052_v3 = vsel %vm1051_vm7, %v4212_v57, %v4275_v28  ;;  %v885_v57 = vsel %vm881_vm5, %v4283_v15, %v4279_v29 }
 0x230   : > { %v742_v55 = vadd.f32 %v730_v33, %v655_v61  ;;  %v743_v19 = vadd.f32 %v731_v59, %v656_v11 }
 0x232   : > { %v1044_v18 = vpop.permute.xlu0 %1043  ;;  %v805_v46 = vpop.permute.xlu1 %804 }
 0x233   : > { %v817_v51 = vsel %vm814_vm4, %v803_v0, %v805_v46  ;;  %v818_v49 = vsel %vm814_vm4, %v805_v46, %v807_v54  ;;  %v1064_v0 = vadd.f32 %v1052_v3, %v979_v32  ;;  %v1120_v54 = vsel %vm1118_vm9, %v4225_v62, %v4205_v58 }
 0x234   : > { %v829_v10 = vadd.f32 %v817_v51, %v742_v55  ;;  %v830_v60 = vadd.f32 %v818_v49, %v743_v19  ;;  %v1132_v45 = vadd.f32 %v1120_v54, %v1065_v6 }
 0x235   : > { %v1131_v13 = vadd.f32 %v1119_v53, %v1064_v0 }
 0x236   : > { %v1196_v12 = vpop.permute.xlu0 %1195  ;;  %v635_v47 = vpop.permute.xlu1 %634  ;;  %v896_v28 = vadd.f32 %v884_v42, %v829_v10  ;;  %v897_v39 = vadd.f32 %v885_v57, %v830_v60  ;;  %v1217_v40 = vadd.f32 %v1205_v16, %v1132_v45  ;;  %v569_v60 = vmul.f32 %v4126_v2, %v3899_v34 }
 0x237   : > { %v1216_v33 = vadd.f32 %v1204_v38, %v1131_v13 }
 0x238   : > { %v1241_v46 = vadd.f32 %v3903_v36, %v1217_v40  ;;  %v575_v42 = vmul.f32 %v569_v60, %v3763_v24  ;;  %v5598_v60 = vmov 7  }
 0x239   : > { %v1240_v27 = vadd.f32 %v3903_v36, %v1216_v33 }
 0x23a   : > { %v957_v31 = vpop.permute.xlu0 %956  ;;  %v1042_v41 = vpop.permute.xlu1 %1041 }
 0x23b   : > { %v969_v17 = vsel %vm966_vm6, %v4285_v1, %v957_v31  ;;  %v970_v30 = vsel %vm966_vm6, %v957_v31, %v959_v4  ;;  %v1054_v58 = vsel %vm1051_vm7, %v4287_v44, %v1042_v41  ;;  %v1055_v62 = vsel %vm1051_vm7, %v1042_v41, %v1044_v18 }
 0x23c   : > { %v981_v29 = vadd.f32 %v969_v17, %v896_v28  ;;  %v982_v15 = vadd.f32 %v970_v30, %v897_v39 }
 0x23e   : > { %v1066_v1 = vadd.f32 %v1054_v58, %v981_v29  ;;  %v1067_v63 = vadd.f32 %v1055_v62, %v982_v15  ;;  %v876_v4 = vpop.permute.xlu0 %875  ;;  %v1194_v52 = vpop.permute.xlu1 %1193 }
 0x23f   : > { %v1206_v44 = vsel %vm1203_vm11, %v4295_v22, %v1194_v52  ;;  %v1207_v50 = vsel %vm1203_vm11, %v1194_v52, %v1196_v12 }
 0x240   : > { %v1133_v59 = vadd.f32 %v1121_v5, %v1066_v1  ;;  %v1134_v26 = vadd.f32 %v1122_v43, %v1067_v63 }
 0x242   : > { %v1218_v21 = vadd.f32 %v1206_v44, %v1133_v59  ;;  %v639_v61 = vpop.permute.xlu0 %638  ;;  %v880_v11 = vpop.permute.xlu1 %879  ;;  %v1219_v18 = vadd.f32 %v1207_v50, %v1134_v26 }
 0x244   : > { %v1243_v20 = vadd.f32 %v3901_v35, %v1219_v18  ;;  %v1242_v14 = vadd.f32 %v3901_v35, %v1218_v21  ;;  %v570_v35 = vmul.f32 %v3899_v34, %v4161_v48 }
 0x246   : > { %v722_v23 = vpop.permute.xlu0 %721  ;;  %v1117_v9 = vpop.permute.xlu1 %1116  ;;  %v3440_v51 = vpack.c.bf16 %v1243_v20, %v1241_v46  ;;  %v3442_v49 = vpack.c.bf16 %v1242_v14, %v1240_v27  ;;  %v576_v57 = vmul.f32 %v570_v35, %v3766_v25  ;;  %v3383_v35 = vld [vmem:[%s5486_s2 + $0x18] sm:$0xff] }
 0x248   : > { %3441 = vmatprep.subr.bf16.mxu1 %v3440_v51  ;;  %v1247_v51 = vld [vmem:[%s5489_s5 + $0x8] sm:$0xf] }
 0x249   : > { %3443 = vmatpush1.bf16.msra.mxu1 %v3442_v49  ;;  %v3391_v49 = vld [vmem:[%s5487_s3 + $0x18] sm:$0xff] }
 0x24a   : > { %v878_v22 = vpop.permute.xlu0 %877  ;;  %v637_v55 = vpop.permute.xlu1 %636  ;;  %1569 = vperm.xlu1 %3552, %v3391_v49  }
 0x24b   : > { %v645_v0 = vsel %vm640_vm0, %v635_v47, %v637_v55  ;;  %v646_v6 = vsel %vm640_vm0, %v637_v55, %v639_v61  ;;  %v886_v29 = vsel %vm881_vm5, %v876_v4, %v878_v22  ;;  %v887_v15 = vsel %vm881_vm5, %v878_v22, %v880_v11 }
 0x24c   : > { %v657_v41 = vadd.f32 %v645_v0, %v575_v42  ;;  %v658_v2 = vadd.f32 %v646_v6, %v576_v57  ;;  %v5591_v22 = vmov 3   ;;  %v5592_v55 = vmov 2   ;;  %v3395_v0 = vld [vmem:[%s5488_s4 + $0x20] sm:$0xff]  ;;  %v3396_v6 = vld [vmem:[%s5488_s4 + $0x28] sm:$0xff]  ;;  %v3394_v42 = vld [vmem:[%s5488_s4 + $0x18] sm:$0xff] }
 0x24e   : > { %v1115_v19 = vpop.permute.xlu0 %1114  ;;  %v809_v3 = vpop.permute.xlu1 %808  ;;  %3554 = vset.pattern.permute.xlu1 %v5592_v55 }
 0x24f   : > { %v1124_v4 = vsel %vm1118_vm9, %v1115_v19, %v1117_v9  ;;  %v5590_v9 = vmov 0.0   ;;  %1635 = vperm.xlu1 %3554, %v3391_v49  }
 0x252   : > { %v813_v56 = vpop.permute.xlu0 %812  ;;  %v961_v32 = vpop.permute.xlu1 %960 }
 0x256   : > { %v965_v8 = vpop.permute.xlu0 %964  ;;  %v1046_v10 = vpop.permute.xlu1 %1045 }
 0x25a   : > { %v724_v36 = vpop.permute.xlu0 %723  ;;  %v726_v12 = vpop.permute.xlu1 %725 }
 0x25b   : > { %v732_v28 = vsel %vm727_vm1, %v722_v23, %v724_v36  ;;  %v733_v39 = vsel %vm727_vm1, %v724_v36, %v726_v12  ;;  %v1246_v23 = vld [vmem:[%s5489_s5] sm:$0xff]  ;;  %v5599_v36 = vmov 0   ;;  %v3385_v12 = vld [vmem:[%s5486_s2 + $0x28] sm:$0xff] }
 0x25c   : > { %v744_v54 = vadd.f32 %v732_v28, %v657_v41  ;;  %v745_v34 = vadd.f32 %v733_v39, %v658_v2 }
 0x25e   : > { %v1050_v31 = vpop.permute.xlu1 %1049  ;;  %v1113_v53 = vpop.permute.xlu0 %1112 }
 0x25f   : > { %v1123_v50 = vsel %vm1118_vm9, %v1113_v53, %v1115_v19  ;;  %v3393_v19 = vld [vmem:[%s5487_s3 + $0x28] sm:$0xff] }
 0x262   : > { %v811_v48 = vpop.permute.xlu1 %810  ;;  %v1048_v45 = vpop.permute.xlu0 %1047 }
 0x263   : > { %v819_v17 = vsel %vm814_vm4, %v809_v3, %v811_v48  ;;  %v820_v47 = vsel %vm814_vm4, %v811_v48, %v813_v56  ;;  %v1056_v5 = vsel %vm1051_vm7, %v1046_v10, %v1048_v45  ;;  %v1057_v43 = vsel %vm1051_vm7, %v1048_v45, %v1050_v31 }
 0x264   : > { %v831_v30 = vadd.f32 %v819_v17, %v744_v54  ;;  %v832_v13 = vadd.f32 %v820_v47, %v745_v34  ;;  %v5593_v3 = vmov 6   ;;  %v5594_v56 = vmov 1  }
 0x265   : > { %v5597_v10 = vmov 8  }
 0x266   : > { %v898_v38 = vadd.f32 %v886_v29, %v831_v30  ;;  %v899_v16 = vadd.f32 %v887_v15, %v832_v13  ;;  %v963_v58 = vpop.permute.xlu1 %962  ;;  %v1202_v40 = vpop.permute.xlu0 %1201 }
 0x267   : > { %v971_v62 = vsel %vm966_vm6, %v961_v32, %v963_v58  ;;  %v972_v1 = vsel %vm966_vm6, %v963_v58, %v965_v8  ;;  %v5595_v32 = vmov 5   ;;  %v5596_v8 = vmov 4  }
 0x268   : > { %v983_v63 = vadd.f32 %v971_v62, %v898_v38  ;;  %v984_v52 = vadd.f32 %v972_v1, %v899_v16  ;;  %v3380_v62 = vld [vmem:[%s5485_s1 + $0x18] sm:$0xff]  ;;  %v3381_v1 = vld [vmem:[%s5485_s1 + $0x20] sm:$0xff] }
 0x26a   : > { %v1068_v33 = vadd.f32 %v1056_v5, %v983_v63  ;;  %v1069_v59 = vadd.f32 %v1057_v43, %v984_v52  ;;  %v1200_v26 = vpop.permute.xlu1 %1199  ;;  %v3382_v63 = vld [vmem:[%s5485_s1 + $0x28] sm:$0xff] }
 0x26b   : > { %v1209_v21 = vsel %vm1203_vm11, %v1200_v26, %v1202_v40 }
 0x26c   : > { %v1136_v44 = vadd.f32 %v1124_v4, %v1069_v59  ;;  %v1135_v11 = vadd.f32 %v1123_v50, %v1068_v33 }
 0x26e   : > { %v1221_v61 = vadd.f32 %v1209_v21, %v1136_v44  ;;  %v1198_v18 = vpop.permute.xlu1 %1197 }
 0x26f   : > { %v1208_v46 = vsel %vm1203_vm11, %v1198_v18, %v1200_v26 }
 0x270   : > { %v1220_v20 = vadd.f32 %v1208_v46, %v1135_v11  ;;  %v1245_v27 = vadd.f32 %v3905_v37, %v1221_v61 }
 0x272   : > { %1271 = vmatprep.subr.mxu1 %v1245_v27  ;;  %v1244_v14 = vadd.f32 %v3905_v37, %v1220_v20  ;;  %v3392_v37 = vld [vmem:[%s5487_s3 + $0x20] sm:$0xff] }
 0x273   : > { %1573 = vperm.xlu0 %3553, %v3392_v37   ;;  %1639 = vperm.xlu1 %3554, %v3392_v37  }
 0x274   : > { %1272 = vmatpush1.msra.mxu1 %v1244_v14 }
 0x275   : > { %3378 = vmatmul.mubr.msk.f32.vlgmr.msra.gmra.mrb[0].mxu1 %vm5544_vm12, %v1246_v23 }
 0x276   : > { %1337 = vmatprep.mubr.f32.mxu1 %v5590_v9 }
 0x277   : > { %3555 = vset.pattern.permute.xlu0 %v5591_v22  ;;  %3556 = vset.pattern.permute.xlu1 %v5591_v22  ;;  %v1253_v57 = vpop.permute.xlu0 %1252 }
 0x278   : > { %1710 = vperm.xlu0 %3555, %v3391_v49   ;;  %1714 = vperm.xlu1 %3556, %v3392_v37  }
 0x279   : > { %3379 = vmatmul.mubr.msk.f32.gmra.mrb[2].mxu1 %vm5544_vm12, %v1247_v51 }
 0x27a   : > { %1458 = vmatprep.mubr.f32.mxu1 %v5590_v9 }
 0x27c   : > { %3558 = vset.pattern.permute.xlu0 %v5592_v55  ;;  %3557 = vset.pattern.permute.xlu1 %v5594_v56 }
 0x27d   : > { %1643 = vperm.xlu0 %3558, %v3393_v19   ;;  %1577 = vperm.xlu1 %3557, %v3393_v19  }
 0x27f   : > { %v1258_v2 = vpop.permute.xlu1 %1257 }
 0x281   : > { %3562 = vset.pattern.permute.xlu0 %v5593_v3  ;;  %3559 = vset.pattern.permute.xlu1 %v5596_v8 }
 0x282   : > { %1926 = vperm.xlu0 %3562, %v3391_v49   ;;  %1785 = vperm.xlu1 %3559, %v3391_v49  }
 0x283   : > { %v1372_v18 = vpop.permute.xlu1 %1371 }
 0x286   : > { %3563 = vset.pattern.permute.xlu0 %v5595_v32  ;;  %1789 = vperm.xlu1 %3559, %v3392_v37  }
 0x287   : > { %1851 = vperm.xlu0 %3563, %v3391_v49  }
 0x28a   : > { %3560 = vset.pattern.permute.xlu1 %v5595_v32 }
 0x28b   : > { %1859 = vperm.xlu0 %3563, %v3393_v19   ;;  %1855 = vperm.xlu1 %3560, %v3392_v37  }
 0x28f   : > { %3567 = vset.pattern.permute.xlu0 %v5597_v10  ;;  %3561 = vset.pattern.permute.xlu1 %v5591_v22 }
 0x290   : > { %2067 = vperm.xlu0 %3567, %v3391_v49   ;;  %1718 = vperm.xlu1 %3561, %v3393_v19  }
 0x294   : > { %3570 = vset.pattern.permute.xlu0 %v5598_v60  ;;  %3564 = vset.pattern.permute.xlu1 %v5593_v3 }
 0x295   : > { %2009 = vperm.xlu0 %3570, %v3393_v19   ;;  %1930 = vperm.xlu1 %3564, %v3392_v37  }
 0x299   : > { %3571 = vset.pattern.permute.xlu0 %v5599_v36  ;;  %3565 = vset.pattern.permute.xlu1 %v5596_v8 }
 0x29a   : > { %1366 = vperm.xlu0 %3571, %v3383_v35   ;;  %1793 = vperm.xlu1 %3565, %v3393_v19  }
 0x29e   : > { %1376 = vperm.xlu0 %3571, %v3385_v12   ;;  %3566 = vset.pattern.permute.xlu1 %v5598_v60  ;;  %v5610_v60 = vld [vmem:[#allocation14_spill] sm:$0xff] }
 0x29f   : > { %2001 = vperm.xlu1 %3566, %v3391_v49  }
 0x2a2   : > { %1533 = vperm.xlu0 %3571, %v3392_v37  }
 0x2a3   : > { %2005 = vperm.xlu1 %3566, %v3392_v37  }
 0x2a6   : > { %2152 = vperm.xlu0 %3571, %v3395_v0  }
 0x2a7   : > { %3568 = vset.pattern.permute.xlu1 %v5597_v10 }
 0x2a8   : > { %2071 = vperm.xlu1 %3568, %v3392_v37  }
 0x2aa   : > { %2157 = vperm.xlu0 %3571, %v3396_v6  }
 0x2ac   : > { %3569 = vset.pattern.permute.xlu1 %v5593_v3 }
 0x2ad   : > { %1934 = vperm.xlu1 %3569, %v3393_v19  }
 0x2b1   : > { %3572 = vset.pattern.permute.xlu1 %v5597_v10 }
 0x2b2   : > { %2075 = vperm.xlu1 %3572, %v3393_v19  }
 0x2b6   : > { %3573 = vset.pattern.permute.xlu1 %v5599_v36 }
 0x2b7   : > { %1528 = vperm.xlu1 %3573, %v3391_v49  }
 0x2bb   : > { %1538 = vperm.xlu1 %3573, %v3393_v19  }
 0x2bf   : > { %2147 = vperm.xlu1 %3573, %v3394_v42  }
 0x2c9   : > { %v1570_v19 = vpop.permute.xlu1 %1569 }
 0x2ce   : > { %v4494_v12 = vpop.permute.xlu1 %1635 }
 0x2f2   : > { %v4472_v52 = vpop.permute.xlu0 %1573  ;;  %v4496_v0 = vpop.permute.xlu1 %1639 }
 0x2f7   : > { %v4474_v5 = vpop.permute.xlu0 %1710  ;;  %v4498_v6 = vpop.permute.xlu1 %1714 }
 0x2fc   : > { %v4476_v43 = vpop.permute.xlu0 %1643  ;;  %v4500_v42 = vpop.permute.xlu1 %1577 }
 0x301   : > { %v4478_v33 = vpop.permute.xlu0 %1926 }
 0x306   : > { %v4480_v59 = vpop.permute.xlu0 %1851 }
 0x30a   : > { %v4482_v26 = vpop.permute.xlu0 %1859 }
 0x30f   : > { %v4484_v4 = vpop.permute.xlu0 %2067 }
 0x314   : > { %v4486_v40 = vpop.permute.xlu0 %2009 }
 0x319   : > { %v1367_v44 = vpop.permute.xlu0 %1366 }
 0x31d   : > { %v1377_v23 = vpop.permute.xlu0 %1376 }
 0x348   : > { %v1333_v31 = vpop.f32.mrb[0].mxu1 }
 0x349   : > { %v1334_v28 = vadd.f32 %v1333_v31, %v1253_v57  ;;  %v1335_v39 = vpop.f32.mrb[1].mxu1 }
 0x34a   : > { %v1336_v41 = vadd.f32 %v1335_v39, %v1253_v57  ;;  %v1786_v57 = vpop.permute.xlu1 %1785 }
 0x34b   : > { %v1348_v54 = vmul.f32 0.2, %v1334_v28  ;;  %vm1344_vm13 = vcmp.ge.f32.partialorder %v1334_v28, 0.0 }
 0x34c   : > { %v1339_v53 = vpop.f32.mrb[2].mxu1  ;;  %v1349_v17 = vmul.f32 0.2, %v1336_v41  ;;  %vm1345_vm14 = vcmp.ge.f32.partialorder %v1336_v41, 0.0 }
 0x34d   : > { %v1340_v34 = vadd.f32 %v1339_v53, %v1258_v2  ;;  %v1341_v48 = vpop.f32.mrb[3].mxu1  ;;  %v1352_v29 = vsel %vm1344_vm13, %v1334_v28, %v1348_v54 }
 0x34e   : > { %v1342_v47 = vadd.f32 %v1341_v48, %v1258_v2  ;;  %v1353_v45 = vsel %vm1345_vm14, %v1336_v41, %v1349_v17  ;;  %v4502_v31 = vpop.permute.xlu1 %1789 }
 0x34f   : > { %vm1346_vm15 = vcmp.ge.f32.partialorder %v1340_v34, 0.0  ;;  %v1350_v30 = vmul.f32 0.2, %v1340_v34 }
 0x350   : > { %vm1347_vm12 = vcmp.ge.f32.partialorder %v1342_v47, 0.0  ;;  %v1351_v13 = vmul.f32 0.2, %v1342_v47 }
 0x351   : > { %v1354_v15 = vsel %vm1346_vm15, %v1340_v34, %v1350_v30  ;;  %v4522_v30 = vpop.permute.xlu0 %1533 }
 0x352   : > { %v3447_v38 = vpack.c.bf16 %v1354_v15, %v1352_v29  ;;  %v1355_v16 = vsel %vm1347_vm12, %v1342_v47, %v1351_v13  ;;  %v4504_v28 = vpop.permute.xlu1 %1855  ;;  %vm5615_vm12 = vcmask 195584  }
 0x353   : > { %v3444_v58 = vpack.c.bf16 %v1355_v16, %v1353_v45  ;;  %vm5617_vm13 = vmmov %vm5615_vm12 }
 0x355   : > { %3446 = vmatprep.subr.msk.bf16.mxu1 %vm3716_vm2, %v3444_v58  ;;  %v4526_v29 = vpop.permute.xlu0 %2152 }
 0x356   : > { %3449 = vmatpush1.bf16.msk.msra.mxu1 %vm3716_vm2, %v3447_v38  ;;  %v4506_v39 = vpop.permute.xlu1 %1718 }
 0x359   : > { %3388 = vmatmul.mubr.msk.f32.vlgmr.msra.gmra.mrb[4].mxu1 %vm401_vm3, %v3380_v62  ;;  %v4530_v45 = vpop.permute.xlu0 %2157 }
 0x35a   : > { %1464 = vmatprep.mubr.f32.mxu1 %v5590_v9  ;;  %v4508_v41 = vpop.permute.xlu1 %1930 }
 0x35d   : > { %3389 = vmatmul.mubr.msk.f32.gmra.mrb[6].mxu1 %vm401_vm3, %v3381_v1 }
 0x35e   : > { %1470 = vmatprep.mubr.f32.mxu1 %v5590_v9  ;;  %v4510_v2 = vpop.permute.xlu1 %1793 }
 0x361   : > { %3390 = vmatmul.mubr.msk.f32.gmra.mrb[8].mxu1 %vm401_vm3, %v3382_v63 }
 0x362   : > { %3179 = vmatprep.mubr.f32.mxu1 %v5590_v9  ;;  %v2002_v53 = vpop.permute.xlu1 %2001 }
 0x366   : > { %v4512_v54 = vpop.permute.xlu1 %2005 }
 0x36a   : > { %v4514_v34 = vpop.permute.xlu1 %2071 }
 0x36e   : > { %v4516_v48 = vpop.permute.xlu1 %1934 }
 0x372   : > { %v4518_v17 = vpop.permute.xlu1 %2075 }
 0x376   : > { %v4520_v47 = vpop.permute.xlu1 %1528 }
 0x37a   : > { %v4524_v13 = vpop.permute.xlu1 %1538 }
 0x37e   : > { %v4528_v15 = vpop.permute.xlu1 %2147 }
 0x42c   : > { %v1460_v50 = vpop.f32.mrb[4].mxu1 }
 0x42d   : > { %v1461_v21 = vadd.f32 %v1460_v50, %v1367_v44  ;;  %v1462_v61 = vpop.f32.mrb[5].mxu1 }
 0x42e   : > { %v1463_v11 = vadd.f32 %v1462_v61, %v1367_v44 }
 0x42f   : > { %1483 = vrot.lane.b32.xlu1 %v1461_v21, %s3624_s27 }
 0x430   : > { %v1466_v46 = vpop.f32.mrb[6].mxu1  ;;  %1485 = vrot.lane.b32.xlu0 %v1463_v11, %s3624_s27 }
 0x431   : > { %v1467_v20 = vadd.f32 %v1466_v46, %v1372_v18  ;;  %v1468_v27 = vpop.f32.mrb[7].mxu1 }
 0x432   : > { %v1469_v14 = vadd.f32 %v1468_v27, %v1372_v18 }
 0x433   : > { %1487 = vrot.lane.b32.xlu1 %v1467_v20, %s3624_s27 }
 0x434   : > { %v1472_v51 = vpop.f32.mrb[8].mxu1  ;;  %1489 = vrot.lane.b32.xlu0 %v1469_v14, %s3624_s27 }
 0x435   : > { %v1473_v37 = vadd.f32 %v1472_v51, %v1377_v23  ;;  %v1474_v49 = vpop.f32.mrb[9].mxu1 }
 0x436   : > { %v1475_v35 = vadd.f32 %v1474_v49, %v1377_v23  ;;  %v5600_v23 = vld [vmem:[#allocation4_spill] sm:$0xff] }
 0x437   : > { %1491 = vrot.lane.b32.xlu1 %v1473_v37, %s3624_s27 }
 0x438   : > { %1493 = vrot.lane.b32.xlu0 %v1475_v35, %s3624_s27 }
 0x4a1   : > { %v1484_v38 = vpop.permute.xlu1 %1483 }
 0x4a2   : > { %1507 = vst.msk [vmem:[#allocation2] sm:$0xff] %vm531_vm10, %v1484_v38  ;;  %v1486_v16 = vpop.permute.xlu0 %1485 }
 0x4a3   : > { %1509 = vst.msk [vmem:[#allocation2 + $0x10] sm:$0xff] %vm333_vm8, %v1486_v16  ;;  %v4562_v14 = vsel %vm333_vm8, %v1484_v38, %v1486_v16 }
 0x4a4   : > { %v1581_v37 = vmul.f32 %v1570_v19, %v4562_v14  ;;  %v2013_v35 = vmul.f32 %v2002_v53, %v4562_v14 }
 0x4a5   : > { %v4534_v58 = vpop.permute.xlu1 %1487 }
 0x4a6   : > { %1510 = vst.msk [vmem:[#allocation2 + $0x18] sm:$0xff] %vm531_vm10, %v4534_v58  ;;  %v4538_v62 = vpop.permute.xlu0 %1489 }
 0x4a7   : > { %1512 = vst.msk [vmem:[#allocation2 + $0x28] sm:$0xff] %vm333_vm8, %v4538_v62 }
 0x4a9   : > { %v4542_v1 = vpop.permute.xlu1 %1491  ;;  %v4544_v63 = vld [vmem:[#allocation2] sm:$0xff] }
 0x4aa   : > { %1513 = vst.msk [vmem:[#allocation2 + $0x30] sm:$0xff] %vm531_vm10, %v4542_v1  ;;  %v4548_v44 = vpop.permute.xlu0 %1493  ;;  %v1796_v50 = vmul.f32 %v1786_v57, %v4544_v63  ;;  %v1580_v21 = vmul.f32 %v1570_v19, %v4544_v63  ;;  %v1561_v61 = vld [vmem:[#allocation2 + $0x10] sm:$0xff]  ;;  %v2012_v18 = vmul.f32 %v2002_v53, %v4544_v63  ;;  %v1937_v27 = vmul.f32 %v4478_v33, %v4544_v63 }
 0x4ab   : > { %1515 = vst.msk [vmem:[#allocation2 + $0x40] sm:$0xff] %vm333_vm8, %v4548_v44  ;;  %v1582_v11 = vmul.f32 %v1570_v19, %v1561_v61  ;;  %v1798_v46 = vmul.f32 %v1786_v57, %v1561_v61  ;;  %v2014_v20 = vmul.f32 %v2002_v53, %v1561_v61  ;;  %v1646_v49 = vmul.f32 %v4494_v12, %v4544_v63  ;;  %v5602_v19 = vld [vmem:[#allocation7_spill] sm:$0xff]  ;;  %v5604_v53 = vld [vmem:[#allocation8_spill] sm:$0xff] }
 0x4ac   : > { %1814 = vrot.lane.b32.xlu0 %v1796_v50, %s3625_s28  ;;  %1598 = vrot.lane.b32.xlu1 %v1580_v21, %s3626_s29  ;;  %v1946_v51 = vmul.f32 %v5600_v23, %v1937_v27  ;;  %v5601_v50 = vld [vmem:[#allocation5_spill] sm:$0xff]  ;;  %v2078_v16 = vmul.f32 %v4484_v4, %v4544_v63  ;;  %v1721_v21 = vmul.f32 %v4474_v5, %v4544_v63 }
 0x4ad   : > { %v1655_v38 = vmul.f32 %v5601_v50, %v1646_v49  ;;  %v1862_v49 = vmul.f32 %v4480_v59, %v4544_v63 }
 0x4b0   : > { %1602 = vrot.lane.b32.xlu0 %v1582_v11, %s3626_s29  ;;  %2030 = vrot.lane.b32.xlu1 %v2012_v18, %s3627_s11  ;;  %v2087_v11 = vmul.f32 %v5602_v19, %v2078_v16  ;;  %v5603_v18 = vld [vmem:[#allocation6_spill] sm:$0xff] }
 0x4b1   : > { %v5606_v16 = vld [vmem:[#allocation10_spill] sm:$0xff] }
 0x4b4   : > { %1818 = vrot.lane.b32.xlu0 %v1798_v46, %s3625_s28  ;;  %2034 = vrot.lane.b32.xlu1 %v2014_v20, %s3627_s11  ;;  %v1730_v46 = vmul.f32 %v5603_v18, %v1721_v21  ;;  %v1648_v20 = vmul.f32 %v4494_v12, %v1561_v61  ;;  %v1871_v21 = vmul.f32 %v5606_v16, %v1862_v49 }
 0x4b6   : > { %v1657_v27 = vmul.f32 %v5604_v53, %v1648_v20 }
 0x4b8   : > { %1964 = vrot.lane.b32.xlu0 %v1946_v51, %s3628_s12  ;;  %1600 = vrot.lane.b32.xlu1 %v1581_v37, %s3626_s29  ;;  %v1797_v51 = vmul.f32 %v1786_v57, %v4562_v14  ;;  %v1723_v37 = vmul.f32 %v4474_v5, %v1561_v61  ;;  %v5607_v57 = vld [vmem:[#allocation12_spill] sm:$0xff] }
 0x4bc   : > { %2032 = vrot.lane.b32.xlu0 %v2013_v35, %s3627_s11  ;;  %1673 = vrot.lane.b32.xlu1 %v1655_v38, %s3629_s14  ;;  %v5605_v35 = vld [vmem:[#allocation9_spill] sm:$0xff] }
 0x4bd   : > { %v1732_v38 = vmul.f32 %v5605_v35, %v1723_v37  ;;  %v5609_v37 = vld [vmem:[#allocation13_spill] sm:$0xff] }
 0x4c0   : > { %2105 = vrot.lane.b32.xlu0 %v2087_v11, %s3630_s15  ;;  %1748 = vrot.lane.b32.xlu1 %v1730_v46, %s3631_s16  ;;  %v1939_v11 = vmul.f32 %v4478_v33, %v1561_v61  ;;  %v1864_v46 = vmul.f32 %v4480_v59, %v1561_v61 }
 0x4c2   : > { %v1948_v20 = vmul.f32 %v5607_v57, %v1939_v11  ;;  %v1873_v36 = vmul.f32 %v5608_v7, %v1864_v46  ;;  %v5612_v46 = vld [vmem:[#allocation16_spill] sm:$0xff] }
 0x4c4   : > { %1677 = vrot.lane.b32.xlu0 %v1657_v27, %s3629_s14  ;;  %1816 = vrot.lane.b32.xlu1 %v1797_v51, %s3625_s28  ;;  %v2080_v27 = vmul.f32 %v4484_v4, %v1561_v61  ;;  %v1647_v51 = vmul.f32 %v4494_v12, %v4562_v14  ;;  %v5611_v61 = vld [vmem:[#allocation15_spill] sm:$0xff] }
 0x4c6   : > { %v2089_v49 = vmul.f32 %v5609_v37, %v2080_v27  ;;  %v1656_v10 = vmul.f32 %v1647_v51, %v5610_v60  ;;  %v5613_v27 = vld [vmem:[#allocation17_spill] sm:$0xff] }
 0x4c8   : > { %1752 = vrot.lane.b32.xlu0 %v1732_v38, %s3631_s16  ;;  %1889 = vrot.lane.b32.xlu1 %v1871_v21, %s3632_s17  ;;  %v1722_v38 = vmul.f32 %v4474_v5, %v4562_v14  ;;  %v4609_v21 = vld [vmem:[#allocation2 + $0x18] sm:$0xff] }
 0x4c9   : > { %v1583_v12 = vmul.f32 %v4472_v52, %v4609_v21  ;;  %v1799_v5 = vmul.f32 %v4502_v31, %v4609_v21 }
 0x4ca   : > { %v1731_v11 = vmul.f32 %v1722_v38, %v5611_v61  ;;  %v1564_v38 = vld [vmem:[#allocation2 + $0x28] sm:$0xff] }
 0x4cc   : > { %1968 = vrot.lane.b32.xlu0 %v1948_v20, %s3628_s12  ;;  %1893 = vrot.lane.b32.xlu1 %v1873_v36, %s3632_s17  ;;  %v1863_v36 = vmul.f32 %v4480_v59, %v4562_v14  ;;  %v2015_v59 = vmul.f32 %v4512_v54, %v4609_v21 }
 0x4ce   : > { %v1872_v20 = vmul.f32 %v1863_v36, %v5612_v46  ;;  %v2017_v36 = vmul.f32 %v4512_v54, %v1564_v38 }
 0x4d0   : > { %2109 = vrot.lane.b32.xlu0 %v2089_v49, %s3630_s15  ;;  %1675 = vrot.lane.b32.xlu1 %v1656_v10, %s3629_s14  ;;  %v1938_v10 = vmul.f32 %v4478_v33, %v4562_v14  ;;  %v2079_v49 = vmul.f32 %v4484_v4, %v4562_v14  ;;  %v1585_v33 = vmul.f32 %v4472_v52, %v1564_v38 }
 0x4d1   : > { %v1649_v4 = vmul.f32 %v4496_v0, %v4609_v21 }
 0x4d2   : > { %v1947_v51 = vmul.f32 %v1938_v10, %v5613_v27 }
 0x4d3   : > { %v1658_v10 = vmul.f32 %v5601_v50, %v1649_v4  ;;  %v1651_v4 = vmul.f32 %v4496_v0, %v1564_v38 }
 0x4d4   : > { %1750 = vrot.lane.b32.xlu1 %v1731_v11, %s3631_s16  ;;  %1604 = vrot.lane.b32.xlu0 %v1583_v12, %s3626_s29  ;;  %v5614_v11 = vld [vmem:[#allocation18_spill] sm:$0xff] }
 0x4d5   : > { %v2088_v12 = vmul.f32 %v2079_v49, %v5614_v11 }
 0x4d8   : > { %1820 = vrot.lane.b32.xlu1 %v1799_v5, %s3625_s28  ;;  %1891 = vrot.lane.b32.xlu0 %v1872_v20, %s3632_s17  ;;  %v1801_v5 = vmul.f32 %v4502_v31, %v1564_v38  ;;  %v4645_v20 = vsel %vm333_vm8, %v4534_v58, %v4538_v62  ;;  %v1865_v62 = vmul.f32 %v4504_v28, %v4609_v21 }
 0x4d9   : > { %v1800_v58 = vmul.f32 %v4502_v31, %v4645_v20  ;;  %v2016_v31 = vmul.f32 %v4512_v54, %v4645_v20 }
 0x4dc   : > { %1966 = vrot.lane.b32.xlu1 %v1947_v51, %s3628_s12  ;;  %2036 = vrot.lane.b32.xlu0 %v2015_v59, %s3627_s11  ;;  %v1584_v51 = vmul.f32 %v4472_v52, %v4645_v20  ;;  %v1724_v59 = vmul.f32 %v4498_v6, %v4609_v21  ;;  %v1874_v52 = vmul.f32 %v5606_v16, %v1865_v62 }
 0x4de   : > { %v1733_v49 = vmul.f32 %v5603_v18, %v1724_v59 }
 0x4e0   : > { %2107 = vrot.lane.b32.xlu1 %v2088_v12, %s3630_s15  ;;  %1608 = vrot.lane.b32.xlu0 %v1585_v33, %s3626_s29  ;;  %v1940_v12 = vmul.f32 %v4508_v41, %v4609_v21 }
 0x4e2   : > { %v1949_v33 = vmul.f32 %v5600_v23, %v1940_v12  ;;  %v1942_v12 = vmul.f32 %v4508_v41, %v1564_v38 }
 0x4e4   : > { %2040 = vrot.lane.b32.xlu1 %v2017_v36, %s3627_s11  ;;  %1824 = vrot.lane.b32.xlu0 %v1801_v5, %s3625_s28  ;;  %v2081_v36 = vmul.f32 %v4514_v34, %v4609_v21 }
 0x4e6   : > { %v2090_v5 = vmul.f32 %v5602_v19, %v2081_v36  ;;  %v2083_v36 = vmul.f32 %v4514_v34, %v1564_v38 }
 0x4e8   : > { %1679 = vrot.lane.b32.xlu0 %v1658_v10, %s3629_s14  ;;  %1606 = vrot.lane.b32.xlu1 %v1584_v51, %s3626_s29  ;;  %v1867_v10 = vmul.f32 %v4504_v28, %v1564_v38  ;;  %v1660_v51 = vmul.f32 %v5604_v53, %v1651_v4  ;;  %v1866_v4 = vmul.f32 %v4504_v28, %v4645_v20 }
 0x4ea   : > { %v1876_v59 = vmul.f32 %v5608_v7, %v1867_v10  ;;  %v1941_v10 = vmul.f32 %v4508_v41, %v4645_v20 }
 0x4ec   : > { %1754 = vrot.lane.b32.xlu0 %v1733_v49, %s3631_s16  ;;  %1822 = vrot.lane.b32.xlu1 %v1800_v58, %s3625_s28  ;;  %v1726_v49 = vmul.f32 %v4498_v6, %v1564_v38  ;;  %v1650_v58 = vmul.f32 %v4496_v0, %v4645_v20  ;;  %v1875_v38 = vmul.f32 %v1866_v4, %v5612_v46 }
 0x4ee   : > { %v1735_v54 = vmul.f32 %v5605_v35, %v1726_v49  ;;  %v1659_v62 = vmul.f32 %v1650_v58, %v5610_v60  ;;  %v1567_v49 = vld [vmem:[#allocation2 + $0x40] sm:$0xff] }
 0x4ef   : > { %v1588_v58 = vmul.f32 %v4500_v42, %v1567_v49 }
 0x4f0   : > { %1895 = vrot.lane.b32.xlu0 %v1874_v52, %s3632_s17  ;;  %1970 = vrot.lane.b32.xlu1 %v1949_v33, %s3628_s12  ;;  %v1725_v52 = vmul.f32 %v4498_v6, %v4645_v20  ;;  %v1951_v33 = vmul.f32 %v5607_v57, %v1942_v12  ;;  %v2020_v12 = vmul.f32 %v4486_v40, %v1567_v49 }
 0x4f2   : > { %v1734_v0 = vmul.f32 %v1725_v52, %v5611_v61  ;;  %v4730_v52 = vsel %vm333_vm8, %v4542_v1, %v4548_v44 }
 0x4f3   : > { %v2019_v1 = vmul.f32 %v4486_v40, %v4730_v52 }
 0x4f4   : > { %2038 = vrot.lane.b32.xlu0 %v2016_v31, %s3627_s11  ;;  %2111 = vrot.lane.b32.xlu1 %v2090_v5, %s3630_s15  ;;  %v4695_v31 = vld [vmem:[#allocation2 + $0x30] sm:$0xff]  ;;  %v2092_v5 = vmul.f32 %v5609_v37, %v2083_v36 }
 0x4f5   : > { %v1586_v6 = vmul.f32 %v4500_v42, %v4695_v31  ;;  %v1802_v28 = vmul.f32 %v4510_v2, %v4695_v31  ;;  %v1727_v36 = vmul.f32 %v4506_v39, %v4695_v31 }
 0x4f7   : > { %v1736_v44 = vmul.f32 %v5603_v18, %v1727_v36  ;;  %v1945_v36 = vmul.f32 %v4516_v48, %v1567_v49 }
 0x4f8   : > { %1683 = vrot.lane.b32.xlu0 %v1660_v51, %s3629_s14  ;;  %1899 = vrot.lane.b32.xlu1 %v1876_v59, %s3632_s17  ;;  %v1950_v51 = vmul.f32 %v1941_v10, %v5613_v27  ;;  %v2082_v59 = vmul.f32 %v4514_v34, %v4645_v20  ;;  %v1652_v34 = vmul.f32 %v4476_v43, %v4695_v31 }
 0x4fa   : > { %v2091_v41 = vmul.f32 %v2082_v59, %v5614_v11 }
 0x4fc   : > { %1758 = vrot.lane.b32.xlu0 %v1735_v54, %s3631_s16  ;;  %1681 = vrot.lane.b32.xlu1 %v1659_v62, %s3629_s14  ;;  %v1804_v54 = vmul.f32 %v4510_v2, %v1567_v49  ;;  %v1661_v62 = vmul.f32 %v5601_v50, %v1652_v34  ;;  %v1654_v34 = vmul.f32 %v4476_v43, %v1567_v49 }
 0x500   : > { %1974 = vrot.lane.b32.xlu0 %v1951_v33, %s3628_s12  ;;  %1756 = vrot.lane.b32.xlu1 %v1734_v0, %s3631_s16  ;;  %v1803_v33 = vmul.f32 %v4510_v2, %v4730_v52  ;;  %v1587_v0 = vmul.f32 %v4500_v42, %v4730_v52  ;;  %v1868_v2 = vmul.f32 %v4482_v26, %v4695_v31 }
 0x502   : > { %v1877_v10 = vmul.f32 %v5606_v16, %v1868_v2  ;;  %v1944_v2 = vmul.f32 %v4516_v48, %v4730_v52  ;;  %v1541_v16 = vmul.f32 %v4544_v63, %v4520_v47 }
 0x504   : > { %2115 = vrot.lane.b32.xlu0 %v2092_v5, %s3630_s15  ;;  %1610 = vrot.lane.b32.xlu1 %v1586_v6, %s3626_s29  ;;  %v1729_v5 = vmul.f32 %v4506_v39, %v1567_v49 }
 0x506   : > { %v1738_v4 = vmul.f32 %v5605_v35, %v1729_v5  ;;  %v1954_v5 = vmul.f32 %v5607_v57, %v1945_v36  ;;  %v1542_v35 = vmul.f32 %v4520_v47, %v4562_v14 }
 0x508   : > { %1897 = vrot.lane.b32.xlu0 %v1875_v38, %s3632_s17  ;;  %1972 = vrot.lane.b32.xlu1 %v1950_v51, %s3628_s12  ;;  %v1870_v38 = vmul.f32 %v4482_v26, %v1567_v49  ;;  %v1943_v51 = vmul.f32 %v4516_v48, %v4695_v31  ;;  %v1548_v8 = vmul.f32 %v1542_v35, %v3766_v25 }
 0x509   : > { %v1544_v35 = vmul.f32 %v4522_v30, %v4645_v20 }
 0x50c   : > { %1826 = vrot.lane.b32.xlu0 %v1802_v28, %s3625_s28  ;;  %2113 = vrot.lane.b32.xlu1 %v2091_v41, %s3630_s15  ;;  %v1879_v41 = vmul.f32 %v5608_v7, %v1870_v38 }
 0x510   : > { %1614 = vrot.lane.b32.xlu0 %v1588_v58, %s3626_s29  ;;  %1830 = vrot.lane.b32.xlu1 %v1804_v54, %s3625_s28  ;;  %v1952_v58 = vmul.f32 %v5600_v23, %v1943_v51  ;;  %v1653_v54 = vmul.f32 %v4476_v43, %v4730_v52  ;;  %v1953_v51 = vmul.f32 %v1944_v2, %v5613_v27 }
 0x511   : > { %v1547_v23 = vmul.f32 %v1541_v16, %v3763_v24 }
 0x514   : > { %1685 = vrot.lane.b32.xlu0 %v1661_v62, %s3629_s14  ;;  %2046 = vrot.lane.b32.xlu1 %v2020_v12, %s3627_s11 }
 0x518   : > { %1828 = vrot.lane.b32.xlu0 %v1803_v33, %s3625_s28  ;;  %1612 = vrot.lane.b32.xlu1 %v1587_v0, %s3626_s29  ;;  %v1662_v33 = vmul.f32 %v1653_v54, %v5610_v60  ;;  %v1663_v0 = vmul.f32 %v5604_v53, %v1654_v34 }
 0x51c   : > { %2044 = vrot.lane.b32.xlu0 %v2019_v1, %s3627_s11  ;;  %1760 = vrot.lane.b32.xlu1 %v1736_v44, %s3631_s16  ;;  %v2018_v44 = vmul.f32 %v4486_v40, %v4695_v31  ;;  %v2086_v40 = vmul.f32 %v4518_v17, %v1567_v49 }
 0x51e   : > { %v4750_v42 = vpop.permute.xlu0 %1814  ;;  %v4752_v6 = vpop.permute.xlu1 %1598  ;;  %v2095_v54 = vmul.f32 %v5609_v37, %v2086_v40 }
 0x520   : > { %1764 = vrot.lane.b32.xlu0 %v1738_v4, %s3631_s16  ;;  %1901 = vrot.lane.b32.xlu1 %v1877_v10, %s3632_s17  ;;  %v1728_v4 = vmul.f32 %v4506_v39, %v4730_v52 }
 0x522   : > { %v4761_v59 = vpop.permute.xlu0 %1602  ;;  %v4763_v28 = vpop.permute.xlu1 %2030 }
 0x524   : > { %1905 = vrot.lane.b32.xlu0 %v1879_v41, %s3632_s17  ;;  %1976 = vrot.lane.b32.xlu1 %v1952_v58, %s3628_s12  ;;  %v1737_v41 = vmul.f32 %v1728_v4, %v5611_v61  ;;  %v1869_v58 = vmul.f32 %v4482_v26, %v4730_v52  ;;  %v3399_v26 = vld [vmem:[%s5490_s6 + $0x10] sm:$0xff] }
 0x526   : > { %v4772_v62 = vpop.permute.xlu0 %1818  ;;  %v4774_v12 = vpop.permute.xlu1 %2034  ;;  %v1878_v34 = vmul.f32 %v1869_v58, %v5612_v46 }
 0x528   : > { %1687 = vrot.lane.b32.xlu0 %v1662_v33, %s3629_s14  ;;  %1689 = vrot.lane.b32.xlu1 %v1663_v0, %s3629_s14  ;;  %v2085_v33 = vmul.f32 %v4518_v17, %v4730_v52 }
 0x52a   : > { %v4781_v1 = vpop.permute.xlu0 %1964  ;;  %v4783_v43 = vpop.permute.xlu1 %1600  ;;  %v2094_v36 = vmul.f32 %v2085_v33, %v5614_v11 }
 0x52b   : > { %v1617_v50 = vsel %vm640_vm0, %v4783_v43, %v4761_v59  ;;  %v1543_v59 = vmul.f32 %v4609_v21, %v4522_v30 }
 0x52c   : > { %2042 = vrot.lane.b32.xlu0 %v2018_v44, %s3627_s11  ;;  %1980 = vrot.lane.b32.xlu1 %v1954_v5, %s3628_s12  ;;  %v2084_v44 = vmul.f32 %v4518_v17, %v4695_v31  ;;  %v3407_v17 = vld [vmem:[%s5486_s2 + $0x38] sm:$0xff]  ;;  %v1629_v32 = vadd.f32 %v1617_v50, %v1548_v8 }
 0x52d   : > { %v1549_v50 = vmul.f32 %v1543_v59, %v3763_v24 }
 0x52e   : > { %v4794_v10 = vpop.permute.xlu0 %2032  ;;  %v1674_v38 = vpop.permute.xlu1 %1673  ;;  %v2093_v4 = vmul.f32 %v5602_v19, %v2084_v44  ;;  %v1616_v19 = vsel %vm640_vm0, %v4752_v6, %v4783_v43 }
 0x52f   : > { %v1628_v14 = vadd.f32 %v1616_v19, %v1547_v23  ;;  %v1550_v19 = vmul.f32 %v1544_v35, %v3766_v25 }
 0x530   : > { %1978 = vrot.lane.b32.xlu0 %v1953_v51, %s3628_s12  ;;  %1762 = vrot.lane.b32.xlu1 %v1737_v41, %s3631_s16  ;;  %v3400_v51 = vld [vmem:[%s5490_s6 + $0x18] sm:$0xf] }
 0x532   : > { %v4803_v39 = vpop.permute.xlu0 %2105  ;;  %v1749_v48 = vpop.permute.xlu1 %1748 }
 0x534   : > { %2121 = vrot.lane.b32.xlu0 %v2095_v54, %s3630_s15  ;;  %1903 = vrot.lane.b32.xlu1 %v1878_v34, %s3632_s17 }
 0x536   : > { %v1678_v49 = vpop.permute.xlu0 %1677  ;;  %v4814_v0 = vpop.permute.xlu1 %1816 }
 0x537   : > { %v1833_v30 = vsel %vm881_vm5, %v4814_v0, %v4772_v62 }
 0x538   : > { %2174 = vperm.xlu0 %3571, %v3399_v26   ;;  %2119 = vrot.lane.b32.xlu1 %v2094_v36, %s3630_s15 }
 0x53a   : > { %v1753_v5 = vpop.permute.xlu0 %1752  ;;  %v4820_v2 = vpop.permute.xlu1 %1889 }
 0x53c   : > { %2117 = vrot.lane.b32.xlu1 %v2093_v4, %s3630_s15  ;;  %3575 = vset.pattern.permute.xlu0 %v5594_v56 }
 0x53e   : > { %v4828_v41 = vpop.permute.xlu0 %1968  ;;  %v4830_v40 = vpop.permute.xlu1 %1893 }
 0x540   : > { %2179 = vperm.xlu1 %3573, %v3400_v51  }
 0x542   : > { %v4835_v58 = vpop.permute.xlu0 %2109  ;;  %v1676_v54 = vpop.permute.xlu1 %1675 }
 0x543   : > { %v1691_v63 = vsel %vm727_vm1, %v1674_v38, %v1676_v54  ;;  %v1692_v47 = vsel %vm727_vm1, %v1676_v54, %v1678_v49 }
 0x544   : > { %2292 = vperm.xlu1 %3573, %v3407_v17   ;;  %v1703_v22 = vadd.f32 %v1691_v63, %v1628_v14  ;;  %v1704_v9 = vadd.f32 %v1692_v47, %v1629_v32  ;;  %v1832_v32 = vsel %vm881_vm5, %v4750_v42, %v4814_v0 }
 0x546   : > { %v1605_v34 = vpop.permute.xlu0 %1604  ;;  %v1751_v33 = vpop.permute.xlu1 %1750 }
 0x547   : > { %v1766_v55 = vsel %vm814_vm4, %v1749_v48, %v1751_v33  ;;  %v1767_v6 = vsel %vm814_vm4, %v1751_v33, %v1753_v5 }
 0x548   : > { %3574 = vset.pattern.permute.xlu1 %v5594_v56  ;;  %v1778_v16 = vadd.f32 %v1766_v55, %v1703_v22  ;;  %v1779_v43 = vadd.f32 %v1767_v6, %v1704_v9 }
 0x54a   : > { %v1892_v26 = vpop.permute.xlu0 %1891  ;;  %v4838_v36 = vpop.permute.xlu1 %1820  ;;  %v1844_v55 = vadd.f32 %v1832_v32, %v1778_v16  ;;  %v1845_v21 = vadd.f32 %v1833_v30, %v1779_v43 }
 0x54b   : > { %v1907_v5 = vsel %vm966_vm6, %v4820_v2, %v1892_v26  ;;  %v1908_v42 = vsel %vm966_vm6, %v1892_v26, %v4830_v40 }
 0x54c   : > { %v1919_v33 = vadd.f32 %v1907_v5, %v1844_v55  ;;  %v1920_v63 = vadd.f32 %v1908_v42, %v1845_v21 }
 0x54e   : > { %v4840_v44 = vpop.permute.xlu0 %2036  ;;  %v1967_v4 = vpop.permute.xlu1 %1966 }
 0x552   : > { %v1609_v11 = vpop.permute.xlu0 %1608  ;;  %v4842_v51 = vpop.permute.xlu1 %2107 }
 0x556   : > { %v4844_v27 = vpop.permute.xlu0 %1824  ;;  %v4846_v46 = vpop.permute.xlu1 %2040 }
 0x55a   : > { %v1680_v61 = vpop.permute.xlu0 %1679  ;;  %v1607_v60 = vpop.permute.xlu1 %1606 }
 0x55b   : > { %v1618_v8 = vsel %vm640_vm0, %v1605_v34, %v1607_v60  ;;  %v1619_v23 = vsel %vm640_vm0, %v1607_v60, %v1609_v11  ;;  %v1983_v34 = vsel %vm1051_vm7, %v1967_v4, %v4828_v41  ;;  %v2048_v41 = vsel %vm1118_vm9, %v4763_v28, %v4794_v10 }
 0x55c   : > { %v1630_v20 = vadd.f32 %v1618_v8, %v1549_v50  ;;  %v1631_v60 = vadd.f32 %v1619_v23, %v1550_v19  ;;  %v1995_v40 = vadd.f32 %v1983_v34, %v1920_v63  ;;  %v2123_v23 = vsel %vm1203_vm11, %v4803_v39, %v4842_v51 }
 0x55d   : > { %v2124_v28 = vsel %vm1203_vm11, %v4842_v51, %v4835_v58 }
 0x55e   : > { %v1755_v17 = vpop.permute.xlu0 %1754  ;;  %v1823_v37 = vpop.permute.xlu1 %1822 }
 0x55f   : > { %v1834_v26 = vsel %vm881_vm5, %v4838_v36, %v1823_v37 }
 0x562   : > { %v4848_v7 = vpop.permute.xlu0 %1895  ;;  %v4850_v57 = vpop.permute.xlu1 %1970 }
 0x566   : > { %v4856_v53 = vpop.permute.xlu0 %2038  ;;  %v4858_v18 = vpop.permute.xlu1 %2111 }
 0x567   : > { %v2050_v32 = vsel %vm1118_vm9, %v4840_v44, %v4856_v53  ;;  %v2051_v39 = vsel %vm1118_vm9, %v4856_v53, %v4846_v46 }
 0x56a   : > { %v1684_v56 = vpop.permute.xlu0 %1683  ;;  %v1900_v3 = vpop.permute.xlu1 %1899 }
 0x56e   : > { %v1759_v38 = vpop.permute.xlu0 %1758  ;;  %v1682_v49 = vpop.permute.xlu1 %1681 }
 0x56f   : > { %v1693_v9 = vsel %vm727_vm1, %v1680_v61, %v1682_v49  ;;  %v1694_v22 = vsel %vm727_vm1, %v1682_v49, %v1684_v56  ;;  %v1982_v56 = vsel %vm1051_vm7, %v4781_v1, %v1967_v4  ;;  %v2049_v4 = vsel %vm1118_vm9, %v4794_v10, %v4774_v12 }
 0x570   : > { %v1705_v0 = vadd.f32 %v1693_v9, %v1630_v20  ;;  %v1706_v61 = vadd.f32 %v1694_v22, %v1631_v60  ;;  %v1994_v59 = vadd.f32 %v1982_v56, %v1919_v33  ;;  %v2061_v8 = vadd.f32 %v2049_v4, %v1995_v40 }
 0x572   : > { %v1975_v11 = vpop.permute.xlu0 %1974  ;;  %v1757_v48 = vpop.permute.xlu1 %1756  ;;  %v2060_v49 = vadd.f32 %v2048_v41, %v1994_v59  ;;  %v2136_v9 = vadd.f32 %v2124_v28, %v2061_v8 }
 0x573   : > { %v1768_v54 = vsel %vm814_vm4, %v1755_v17, %v1757_v48  ;;  %v1769_v62 = vsel %vm814_vm4, %v1757_v48, %v1759_v38  ;;  %v1835_v17 = vsel %vm881_vm5, %v1823_v37, %v4844_v27 }
 0x574   : > { %v1780_v47 = vadd.f32 %v1768_v54, %v1705_v0  ;;  %v1781_v14 = vadd.f32 %v1769_v62, %v1706_v61  ;;  %v2135_v30 = vadd.f32 %v2123_v23, %v2060_v49  ;;  %v2161_v48 = vadd.f32 %v4528_v15, %v2136_v9 }
 0x576   : > { %v2116_v2 = vpop.permute.xlu0 %2115  ;;  %v1611_v6 = vpop.permute.xlu1 %1610  ;;  %v1846_v16 = vadd.f32 %v1834_v26, %v1780_v47  ;;  %v1847_v1 = vadd.f32 %v1835_v17, %v1781_v14  ;;  %v1545_v47 = vmul.f32 %v4695_v31, %v4524_v13 }
 0x578   : > { %v1551_v40 = vmul.f32 %v1545_v47, %v3763_v24  ;;  %v3406_v47 = vld [vmem:[%s5486_s2 + $0x30] sm:$0xff] }
 0x57a   : > { %v1898_v35 = vpop.permute.xlu0 %1897  ;;  %v1973_v43 = vpop.permute.xlu1 %1972 }
 0x57b   : > { %v1909_v38 = vsel %vm966_vm6, %v4848_v7, %v1898_v35  ;;  %v1910_v36 = vsel %vm966_vm6, %v1898_v35, %v1900_v3  ;;  %v1984_v12 = vsel %vm1051_vm7, %v4850_v57, %v1973_v43  ;;  %v1985_v10 = vsel %vm1051_vm7, %v1973_v43, %v1975_v11 }
 0x57c   : > { %v1921_v37 = vadd.f32 %v1909_v38, %v1846_v16  ;;  %v1922_v27 = vadd.f32 %v1910_v36, %v1847_v1  ;;  %v2160_v11 = vadd.f32 %v4528_v15, %v2135_v30 }
 0x57e   : > { %v1996_v7 = vadd.f32 %v1984_v12, %v1921_v37  ;;  %v1997_v50 = vadd.f32 %v1985_v10, %v1922_v27  ;;  %v1827_v3 = vpop.permute.xlu0 %1826  ;;  %v2114_v19 = vpop.permute.xlu1 %2113 }
 0x57f   : > { %v2125_v57 = vsel %vm1203_vm11, %v4858_v18, %v2114_v19  ;;  %v2126_v22 = vsel %vm1203_vm11, %v2114_v19, %v2116_v2 }
 0x580   : > { %v2062_v58 = vadd.f32 %v2050_v32, %v1996_v7  ;;  %v2063_v51 = vadd.f32 %v2051_v39, %v1997_v50 }
 0x582   : > { %v2137_v55 = vadd.f32 %v2125_v57, %v2062_v58  ;;  %v2138_v21 = vadd.f32 %v2126_v22, %v2063_v51  ;;  %v1615_v20 = vpop.permute.xlu0 %1614  ;;  %v1831_v60 = vpop.permute.xlu1 %1830 }
 0x584   : > { %v2162_v44 = vadd.f32 %v4526_v29, %v2137_v55  ;;  %v2163_v53 = vadd.f32 %v4526_v29, %v2138_v21  ;;  %v1546_v29 = vmul.f32 %v4524_v13, %v4730_v52 }
 0x586   : > { %v1686_v46 = vpop.permute.xlu0 %1685  ;;  %v2047_v5 = vpop.permute.xlu1 %2046  ;;  %v3450_v42 = vpack.c.bf16 %v2163_v53, %v2161_v48  ;;  %v3452_v54 = vpack.c.bf16 %v2162_v44, %v2160_v11  ;;  %v1552_v26 = vmul.f32 %v1546_v29, %v3766_v25  ;;  %v3397_v53 = vld [vmem:[%s5489_s5 + $0x10] sm:$0xff]  ;;  %v5626_v29 = vmov 0  }
 0x588   : > { %3451 = vmatprep.subr.bf16.mxu0 %v3450_v42  ;;  %v3414_v42 = vld [vmem:[%s5487_s3 + $0x30] sm:$0xff] }
 0x589   : > { %3453 = vmatpush1.bf16.msra.mxu0 %v3452_v54  ;;  %2490 = vperm.xlu1 %3574, %v3414_v42   ;;  %v5618_v54 = vmov 3  }
 0x58a   : > { %v1829_v18 = vpop.permute.xlu0 %1828  ;;  %v1613_v62 = vpop.permute.xlu1 %1612 }
 0x58b   : > { %v1620_v2 = vsel %vm640_vm0, %v1611_v6, %v1613_v62  ;;  %v1621_v59 = vsel %vm640_vm0, %v1613_v62, %v1615_v20  ;;  %v1836_v49 = vsel %vm881_vm5, %v1827_v3, %v1829_v18  ;;  %v1837_v8 = vsel %vm881_vm5, %v1829_v18, %v1831_v60  ;;  %v3416_v62 = vld [vmem:[%s5487_s3 + $0x40] sm:$0xff] }
 0x58c   : > { %v1632_v1 = vadd.f32 %v1620_v2, %v1551_v40  ;;  %v1633_v31 = vadd.f32 %v1621_v59, %v1552_v26  ;;  %v5619_v18 = vmov 2   ;;  %v3419_v2 = vld [vmem:[%s5488_s4 + $0x40] sm:$0xff]  ;;  %v3417_v59 = vld [vmem:[%s5488_s4 + $0x30] sm:$0xff] }
 0x58d   : > { %3576 = vset.pattern.permute.xlu1 %v5619_v18 }
 0x58e   : > { %v2045_v0 = vpop.permute.xlu0 %2044  ;;  %v1761_v61 = vpop.permute.xlu1 %1760  ;;  %2556 = vperm.xlu1 %3576, %v3414_v42  }
 0x58f   : > { %v2053_v3 = vsel %vm1118_vm9, %v2045_v0, %v2047_v5  ;;  %v3398_v5 = vld [vmem:[%s5489_s5 + $0x18] sm:$0xf] }
 0x592   : > { %v1765_v56 = vpop.permute.xlu0 %1764  ;;  %v1902_v34 = vpop.permute.xlu1 %1901 }
 0x596   : > { %v1906_v33 = vpop.permute.xlu0 %1905  ;;  %v1977_v63 = vpop.permute.xlu1 %1976 }
 0x59a   : > { %v1688_v15 = vpop.permute.xlu0 %1687  ;;  %v1690_v14 = vpop.permute.xlu1 %1689 }
 0x59b   : > { %v1695_v35 = vsel %vm727_vm1, %v1686_v46, %v1688_v15  ;;  %v1696_v16 = vsel %vm727_vm1, %v1688_v15, %v1690_v14  ;;  %v5616_v46 = vmov 0.0   ;;  %v3408_v15 = vld [vmem:[%s5486_s2 + $0x40] sm:$0xff]  ;;  %v3418_v14 = vld [vmem:[%s5488_s4 + $0x38] sm:$0xff] }
 0x59c   : > { %v1707_v41 = vadd.f32 %v1695_v35, %v1632_v1  ;;  %v1708_v13 = vadd.f32 %v1696_v16, %v1633_v31 }
 0x59e   : > { %v1981_v17 = vpop.permute.xlu1 %1980  ;;  %v2043_v43 = vpop.permute.xlu0 %2042 }
 0x59f   : > { %v2052_v57 = vsel %vm1118_vm9, %v2043_v43, %v2045_v0  ;;  %v5620_v0 = vmov 6  }
 0x5a2   : > { %v1763_v52 = vpop.permute.xlu1 %1762  ;;  %v1979_v37 = vpop.permute.xlu0 %1978 }
 0x5a3   : > { %v1770_v4 = vsel %vm814_vm4, %v1761_v61, %v1763_v52  ;;  %v1771_v6 = vsel %vm814_vm4, %v1763_v52, %v1765_v56  ;;  %v1986_v19 = vsel %vm1051_vm7, %v1977_v63, %v1979_v37  ;;  %v1987_v32 = vsel %vm1051_vm7, %v1979_v37, %v1981_v17 }
 0x5a4   : > { %v1782_v38 = vadd.f32 %v1770_v4, %v1707_v41  ;;  %v1783_v36 = vadd.f32 %v1771_v6, %v1708_v13  ;;  %v5621_v61 = vmov 1   ;;  %v5622_v56 = vmov 5  }
 0x5a5   : > { %v5625_v63 = vmov 7  }
 0x5a6   : > { %v1848_v27 = vadd.f32 %v1836_v49, %v1782_v38  ;;  %v1849_v23 = vadd.f32 %v1837_v8, %v1783_v36  ;;  %v1904_v28 = vpop.permute.xlu1 %1903  ;;  %v2122_v58 = vpop.permute.xlu0 %2121 }
 0x5a7   : > { %v1911_v12 = vsel %vm966_vm6, %v1902_v34, %v1904_v28  ;;  %v1912_v10 = vsel %vm966_vm6, %v1904_v28, %v1906_v33  ;;  %v5623_v34 = vmov 4   ;;  %v5624_v33 = vmov 8  }
 0x5a8   : > { %v1923_v7 = vadd.f32 %v1911_v12, %v1848_v27  ;;  %v1924_v50 = vadd.f32 %v1912_v10, %v1849_v23  ;;  %v3403_v12 = vld [vmem:[%s5485_s1 + $0x30] sm:$0xff]  ;;  %v3404_v10 = vld [vmem:[%s5485_s1 + $0x38] sm:$0xff] }
 0x5aa   : > { %v1998_v39 = vadd.f32 %v1986_v19, %v1923_v7  ;;  %v1999_v30 = vadd.f32 %v1987_v32, %v1924_v50  ;;  %v2120_v9 = vpop.permute.xlu1 %2119  ;;  %v3405_v7 = vld [vmem:[%s5485_s1 + $0x40] sm:$0xff] }
 0x5ab   : > { %v2128_v22 = vsel %vm1203_vm11, %v2120_v9, %v2122_v58 }
 0x5ac   : > { %v2065_v51 = vadd.f32 %v2053_v3, %v1999_v30  ;;  %v2064_v21 = vadd.f32 %v2052_v57, %v1998_v39 }
 0x5ae   : > { %v2140_v55 = vadd.f32 %v2128_v22, %v2065_v51  ;;  %v2118_v20 = vpop.permute.xlu1 %2117 }
 0x5af   : > { %v2127_v60 = vsel %vm1203_vm11, %v2118_v20, %v2120_v9 }
 0x5b0   : > { %v2139_v11 = vadd.f32 %v2127_v60, %v2064_v21  ;;  %v2165_v44 = vadd.f32 %v4530_v45, %v2140_v55 }
 0x5b2   : > { %v2164_v48 = vadd.f32 %v4530_v45, %v2139_v11  ;;  %2192 = vmatprep.subr.mxu0 %v2165_v44  ;;  %v3415_v45 = vld [vmem:[%s5487_s3 + $0x38] sm:$0xff] }
 0x5b3   : > { %2494 = vperm.xlu0 %3575, %v3415_v45   ;;  %2560 = vperm.xlu1 %3576, %v3415_v45  }
 0x5b4   : > { %2193 = vmatpush1.msra.mxu0 %v2164_v48 }
 0x5b5   : > { %3401 = vmatmul.mubr.msk.f32.vlgmr.msra.gmra.mrb[6].mxu0 %vm5615_vm12, %v3397_v53 }
 0x5b6   : > { %2258 = vmatprep.mubr.f32.mxu0 %v5616_v46 }
 0x5b7   : > { %3577 = vset.pattern.permute.xlu0 %v5618_v54  ;;  %3578 = vset.pattern.permute.xlu1 %v5618_v54  ;;  %v2175_v40 = vpop.permute.xlu0 %2174 }
 0x5b8   : > { %2631 = vperm.xlu0 %3577, %v3414_v42   ;;  %2635 = vperm.xlu1 %3578, %v3415_v45  }
 0x5b9   : > { %3402 = vmatmul.mubr.msk.f32.gmra.mrb[8].mxu0 %vm5617_vm13, %v3398_v5 }
 0x5ba   : > { %2379 = vmatprep.mubr.f32.mxu0 %v5616_v46 }
 0x5bc   : > { %3580 = vset.pattern.permute.xlu0 %v5619_v18  ;;  %3579 = vset.pattern.permute.xlu1 %v5621_v61 }
 0x5bd   : > { %2564 = vperm.xlu0 %3580, %v3416_v62   ;;  %2498 = vperm.xlu1 %3579, %v3416_v62  }
 0x5bf   : > { %v2180_v1 = vpop.permute.xlu1 %2179 }
 0x5c1   : > { %3584 = vset.pattern.permute.xlu0 %v5620_v0  ;;  %3581 = vset.pattern.permute.xlu1 %v5623_v34 }
 0x5c2   : > { %2847 = vperm.xlu0 %3584, %v3414_v42   ;;  %2706 = vperm.xlu1 %3581, %v3414_v42  }
 0x5c3   : > { %v2293_v20 = vpop.permute.xlu1 %2292 }
 0x5c6   : > { %3585 = vset.pattern.permute.xlu0 %v5622_v56  ;;  %2710 = vperm.xlu1 %3581, %v3415_v45  }
 0x5c7   : > { %2772 = vperm.xlu0 %3585, %v3414_v42  }
 0x5ca   : > { %3582 = vset.pattern.permute.xlu1 %v5622_v56 }
 0x5cb   : > { %2780 = vperm.xlu0 %3585, %v3416_v62   ;;  %2776 = vperm.xlu1 %3582, %v3415_v45  }
 0x5cf   : > { %3589 = vset.pattern.permute.xlu0 %v5624_v33  ;;  %3583 = vset.pattern.permute.xlu1 %v5618_v54 }
 0x5d0   : > { %2988 = vperm.xlu0 %3589, %v3414_v42   ;;  %2639 = vperm.xlu1 %3583, %v3416_v62  }
 0x5d4   : > { %3592 = vset.pattern.permute.xlu0 %v5625_v63  ;;  %3586 = vset.pattern.permute.xlu1 %v5620_v0 }
 0x5d5   : > { %2930 = vperm.xlu0 %3592, %v3416_v62   ;;  %2851 = vperm.xlu1 %3586, %v3415_v45  }
 0x5d9   : > { %3593 = vset.pattern.permute.xlu0 %v5626_v29  ;;  %3587 = vset.pattern.permute.xlu1 %v5623_v34 }
 0x5da   : > { %2287 = vperm.xlu0 %3593, %v3406_v47   ;;  %2714 = vperm.xlu1 %3587, %v3416_v62  }
 0x5de   : > { %2297 = vperm.xlu0 %3593, %v3408_v15   ;;  %3588 = vset.pattern.permute.xlu1 %v5625_v63 }
 0x5df   : > { %2922 = vperm.xlu1 %3588, %v3414_v42  }
 0x5e2   : > { %2454 = vperm.xlu0 %3593, %v3415_v45  }
 0x5e3   : > { %2926 = vperm.xlu1 %3588, %v3415_v45  }
 0x5e6   : > { %3073 = vperm.xlu0 %3593, %v3418_v14  }
 0x5e7   : > { %3590 = vset.pattern.permute.xlu1 %v5624_v33 }
 0x5e8   : > { %2992 = vperm.xlu1 %3590, %v3415_v45  }
 0x5ea   : > { %3078 = vperm.xlu0 %3593, %v3419_v2  }
 0x5ec   : > { %3591 = vset.pattern.permute.xlu1 %v5620_v0 }
 0x5ed   : > { %2855 = vperm.xlu1 %3591, %v3416_v62  }
 0x5f1   : > { %3594 = vset.pattern.permute.xlu1 %v5624_v33 }
 0x5f2   : > { %2996 = vperm.xlu1 %3594, %v3416_v62  }
 0x5f6   : > { %3595 = vset.pattern.permute.xlu1 %v5626_v29 }
 0x5f7   : > { %2449 = vperm.xlu1 %3595, %v3414_v42  }
 0x5fb   : > { %2459 = vperm.xlu1 %3595, %v3416_v62  }
 0x5ff   : > { %3068 = vperm.xlu1 %3595, %v3417_v59  }
 0x608   : > { %v2491_v54 = vpop.permute.xlu1 %2490 }
 0x60d   : > { %v5052_v62 = vpop.permute.xlu1 %2556 }
 0x632   : > { %v5030_v50 = vpop.permute.xlu0 %2494  ;;  %v5054_v0 = vpop.permute.xlu1 %2560 }
 0x637   : > { %v5032_v19 = vpop.permute.xlu0 %2631  ;;  %v5056_v61 = vpop.permute.xlu1 %2635 }
 0x63c   : > { %v5034_v32 = vpop.permute.xlu0 %2564  ;;  %v5058_v56 = vpop.permute.xlu1 %2498 }
 0x641   : > { %v5036_v39 = vpop.permute.xlu0 %2847  ;;  %v5060_v34 = vpop.permute.xlu1 %2706 }
 0x645   : > { %v5062_v33 = vpop.permute.xlu1 %2710 }
 0x646   : > { %v5038_v30 = vpop.permute.xlu0 %2772 }
 0x64a   : > { %v5040_v9 = vpop.permute.xlu0 %2780  ;;  %v5064_v63 = vpop.permute.xlu1 %2776 }
 0x64f   : > { %v5042_v3 = vpop.permute.xlu0 %2988  ;;  %v5066_v47 = vpop.permute.xlu1 %2639 }
 0x654   : > { %v5044_v58 = vpop.permute.xlu0 %2930  ;;  %v5068_v29 = vpop.permute.xlu1 %2851 }
 0x659   : > { %v2288_v51 = vpop.permute.xlu0 %2287  ;;  %v5070_v15 = vpop.permute.xlu1 %2714 }
 0x65d   : > { %v2298_v53 = vpop.permute.xlu0 %2297 }
 0x65e   : > { %v2923_v14 = vpop.permute.xlu1 %2922 }
 0x662   : > { %v5072_v2 = vpop.permute.xlu1 %2926 }
 0x667   : > { %v5074_v59 = vpop.permute.xlu1 %2992 }
 0x688   : > { %v2254_v26 = vpop.f32.mrb[6].mxu0 }
 0x689   : > { %v2255_v17 = vadd.f32 %v2254_v26, %v2175_v40  ;;  %v2256_v35 = vpop.f32.mrb[7].mxu0 }
 0x68a   : > { %v2257_v16 = vadd.f32 %v2256_v35, %v2175_v40  ;;  %v5076_v40 = vpop.permute.xlu1 %2855  ;;  %v5082_v35 = vpop.permute.xlu0 %2454 }
 0x68b   : > { %v2269_v43 = vmul.f32 0.2, %v2255_v17  ;;  %vm2265_vm14 = vcmp.ge.f32.partialorder %v2255_v17, 0.0 }
 0x68c   : > { %v2260_v31 = vpop.f32.mrb[8].mxu0  ;;  %v2270_v52 = vmul.f32 0.2, %v2257_v16  ;;  %vm2266_vm15 = vcmp.ge.f32.partialorder %v2257_v16, 0.0 }
 0x68d   : > { %v2261_v41 = vadd.f32 %v2260_v31, %v2180_v1  ;;  %v2262_v13 = vpop.f32.mrb[9].mxu0  ;;  %v2273_v36 = vsel %vm2265_vm14, %v2255_v17, %v2269_v43 }
 0x68e   : > { %v2263_v4 = vadd.f32 %v2262_v13, %v2180_v1  ;;  %v2274_v8 = vsel %vm2266_vm15, %v2257_v16, %v2270_v52  ;;  %v5078_v26 = vpop.permute.xlu1 %2996  ;;  %v5086_v1 = vpop.permute.xlu0 %3073 }
 0x68f   : > { %vm2267_vm12 = vcmp.ge.f32.partialorder %v2261_v41, 0.0  ;;  %v2271_v6 = vmul.f32 0.2, %v2261_v41 }
 0x690   : > { %vm2268_vm13 = vcmp.ge.f32.partialorder %v2263_v4, 0.0  ;;  %v2272_v38 = vmul.f32 0.2, %v2263_v4 }
 0x691   : > { %v2275_v49 = vsel %vm2267_vm12, %v2261_v41, %v2271_v6 }
 0x692   : > { %v3457_v37 = vpack.c.bf16 %v2275_v49, %v2273_v36  ;;  %v2276_v27 = vsel %vm2268_vm13, %v2263_v4, %v2272_v38  ;;  %v5080_v17 = vpop.permute.xlu1 %2449  ;;  %v5090_v43 = vpop.permute.xlu0 %3078 }
 0x693   : > { %v3454_v23 = vpack.c.bf16 %v2276_v27, %v2274_v8 }
 0x695   : > { %3456 = vmatprep.subr.msk.bf16.mxu0 %vm3716_vm2, %v3454_v23 }
 0x696   : > { %3459 = vmatpush1.bf16.msk.msra.mxu0 %vm3716_vm2, %v3457_v37  ;;  %v5084_v16 = vpop.permute.xlu1 %2459 }
 0x699   : > { %3411 = vmatmul.mubr.msk.f32.vlgmr.msra.gmra.mrb[10].mxu0 %vm401_vm3, %v3403_v12 }
 0x69a   : > { %2385 = vmatprep.mubr.f32.mxu0 %v5616_v46  ;;  %v5088_v31 = vpop.permute.xlu1 %3068 }
 0x69d   : > { %3412 = vmatmul.mubr.msk.f32.gmra.mrb[12].mxu0 %vm401_vm3, %v3404_v10 }
 0x69e   : > { %2391 = vmatprep.mubr.f32.mxu0 %v5616_v46 }
 0x6a1   : > { %3413 = vmatmul.mubr.msk.f32.gmra.mrb[14].mxu0 %vm401_vm3, %v3405_v7 }
 0x6a2   : > { %3173 = vmatprep.mubr.f32.mxu0 %v5616_v46 }
 0x76c   : > { %v2381_v57 = vpop.f32.mrb[10].mxu0 }
 0x76d   : > { %v2382_v22 = vadd.f32 %v2381_v57, %v2288_v51  ;;  %v2383_v55 = vpop.f32.mrb[11].mxu0 }
 0x76e   : > { %v2384_v21 = vadd.f32 %v2383_v55, %v2288_v51  ;;  %v5628_v55 = vld [vmem:[#allocation4_spill] sm:$0xff] }
 0x76f   : > { %2404 = vrot.lane.b32.xlu1 %v2382_v22, %s3624_s27 }
 0x770   : > { %v2387_v60 = vpop.f32.mrb[12].mxu0  ;;  %2406 = vrot.lane.b32.xlu0 %v2384_v21, %s3624_s27 }
 0x771   : > { %v2388_v11 = vadd.f32 %v2387_v60, %v2293_v20  ;;  %v2389_v44 = vpop.f32.mrb[13].mxu0 }
 0x772   : > { %v2390_v48 = vadd.f32 %v2389_v44, %v2293_v20  ;;  %v5629_v44 = vld [vmem:[#allocation5_spill] sm:$0xff] }
 0x773   : > { %2408 = vrot.lane.b32.xlu1 %v2388_v11, %s3624_s27 }
 0x774   : > { %v2393_v5 = vpop.f32.mrb[14].mxu0  ;;  %2410 = vrot.lane.b32.xlu0 %v2390_v48, %s3624_s27 }
 0x775   : > { %v2394_v45 = vadd.f32 %v2393_v5, %v2298_v53  ;;  %v2395_v42 = vpop.f32.mrb[15].mxu0 }
 0x776   : > { %v2396_v18 = vadd.f32 %v2395_v42, %v2298_v53 }
 0x777   : > { %2412 = vrot.lane.b32.xlu1 %v2394_v45, %s3624_s27  ;;  %v5630_v45 = vld [vmem:[#allocation7_spill] sm:$0xff] }
 0x778   : > { %2414 = vrot.lane.b32.xlu0 %v2396_v18, %s3624_s27 }
 0x7e1   : > { %v2405_v41 = vpop.permute.xlu1 %2404 }
 0x7e2   : > { %2428 = vst.msk [vmem:[#allocation2] sm:$0xff] %vm531_vm10, %v2405_v41  ;;  %v2407_v13 = vpop.permute.xlu0 %2406 }
 0x7e3   : > { %v5094_v52 = vsel %vm333_vm8, %v2405_v41, %v2407_v13  ;;  %2430 = vst.msk [vmem:[#allocation2 + $0x10] sm:$0xff] %vm333_vm8, %v2407_v13 }
 0x7e4   : > { %v2502_v20 = vmul.f32 %v2491_v54, %v5094_v52  ;;  %v2934_v11 = vmul.f32 %v2923_v14, %v5094_v52 }
 0x7e5   : > { %v2409_v4 = vpop.permute.xlu1 %2408 }
 0x7e6   : > { %2431 = vst.msk [vmem:[#allocation2 + $0x18] sm:$0xff] %vm531_vm10, %v2409_v4  ;;  %v2411_v6 = vpop.permute.xlu0 %2410 }
 0x7e7   : > { %v5099_v38 = vsel %vm333_vm8, %v2409_v4, %v2411_v6  ;;  %2433 = vst.msk [vmem:[#allocation2 + $0x28] sm:$0xff] %vm333_vm8, %v2411_v6  ;;  %v2718_v4 = vmul.f32 %v5060_v34, %v5094_v52 }
 0x7e9   : > { %v2413_v36 = vpop.permute.xlu1 %2412  ;;  %v5102_v49 = vld [vmem:[#allocation2] sm:$0xff] }
 0x7ea   : > { %2434 = vst.msk [vmem:[#allocation2 + $0x30] sm:$0xff] %vm531_vm10, %v2413_v36  ;;  %v2415_v8 = vpop.permute.xlu0 %2414  ;;  %v2717_v37 = vmul.f32 %v5060_v34, %v5102_v49  ;;  %v2501_v27 = vmul.f32 %v2491_v54, %v5102_v49  ;;  %v2482_v12 = vld [vmem:[#allocation2 + $0x10] sm:$0xff]  ;;  %v2933_v7 = vmul.f32 %v2923_v14, %v5102_v49  ;;  %v2858_v22 = vmul.f32 %v5036_v39, %v5102_v49 }
 0x7eb   : > { %v5109_v23 = vsel %vm333_vm8, %v2413_v36, %v2415_v8  ;;  %2436 = vst.msk [vmem:[#allocation2 + $0x40] sm:$0xff] %vm333_vm8, %v2415_v8  ;;  %v2503_v10 = vmul.f32 %v2491_v54, %v2482_v12  ;;  %v2719_v51 = vmul.f32 %v5060_v34, %v2482_v12  ;;  %v2935_v57 = vmul.f32 %v2923_v14, %v2482_v12  ;;  %v5631_v54 = vld [vmem:[#allocation6_spill] sm:$0xff]  ;;  %v5632_v14 = vld [vmem:[#allocation8_spill] sm:$0xff]  ;;  %v5633_v8 = vld [vmem:[#allocation9_spill] sm:$0xff] }
 0x7ec   : > { %2735 = vrot.lane.b32.xlu0 %v2717_v37, %s3625_s28  ;;  %2519 = vrot.lane.b32.xlu1 %v2501_v27, %s3626_s29  ;;  %v2867_v21 = vmul.f32 %v5628_v55, %v2858_v22  ;;  %v2567_v60 = vmul.f32 %v5052_v62, %v5102_v49  ;;  %v2999_v53 = vmul.f32 %v5042_v3, %v5102_v49  ;;  %v5634_v27 = vld [vmem:[#allocation10_spill] sm:$0xff]  ;;  %v5635_v34 = vld [vmem:[#allocation12_spill] sm:$0xff]  ;;  %v5636_v22 = vld [vmem:[#allocation11_spill] sm:$0xff]  ;;  %vm5643_vm8 = vcmask 195584  }
 0x7ed   : > { %v2642_v5 = vmul.f32 %v5032_v19, %v5102_v49  ;;  %v2569_v41 = vmul.f32 %v5052_v62, %v2482_v12  ;;  %v2644_v6 = vmul.f32 %v5032_v19, %v2482_v12  ;;  %v2783_v36 = vmul.f32 %v5038_v30, %v5102_v49  ;;  %vm5644_vm10 = vmmov %vm5643_vm8 }
 0x7ee   : > { %v2576_v48 = vmul.f32 %v5629_v44, %v2567_v60  ;;  %v3008_v42 = vmul.f32 %v5630_v45, %v2999_v53  ;;  %v2568_v60 = vmul.f32 %v5052_v62, %v5094_v52  ;;  %v5638_v53 = vld [vmem:[#allocation14_spill] sm:$0xff] }
 0x7ef   : > { %v2651_v18 = vmul.f32 %v5631_v54, %v2642_v5  ;;  %v2578_v13 = vmul.f32 %v5632_v14, %v2569_v41  ;;  %v2653_v37 = vmul.f32 %v5633_v8, %v2644_v6 }
 0x7f0   : > { %2523 = vrot.lane.b32.xlu0 %v2503_v10, %s3626_s29  ;;  %2951 = vrot.lane.b32.xlu1 %v2933_v7, %s3627_s11  ;;  %v2792_v10 = vmul.f32 %v5634_v27, %v2783_v36  ;;  %v2860_v7 = vmul.f32 %v5036_v39, %v2482_v12  ;;  %v2577_v5 = vmul.f32 %v2568_v60, %v5638_v53 }
 0x7f1   : > { %v2859_v36 = vmul.f32 %v5036_v39, %v5094_v52 }
 0x7f4   : > { %2739 = vrot.lane.b32.xlu0 %v2719_v51, %s3625_s28  ;;  %2955 = vrot.lane.b32.xlu1 %v2935_v57, %s3627_s11  ;;  %v2785_v51 = vmul.f32 %v5038_v30, %v2482_v12  ;;  %v2869_v57 = vmul.f32 %v5635_v34, %v2860_v7  ;;  %v3000_v7 = vmul.f32 %v5042_v3, %v5094_v52 }
 0x7f8   : > { %2885 = vrot.lane.b32.xlu0 %v2867_v21, %s3628_s12  ;;  %2521 = vrot.lane.b32.xlu1 %v2502_v20, %s3626_s29  ;;  %v2794_v21 = vmul.f32 %v5636_v22, %v2785_v51  ;;  %v3001_v20 = vmul.f32 %v5042_v3, %v2482_v12  ;;  %v5639_v12 = vld [vmem:[#allocation15_spill] sm:$0xff] }
 0x7f9   : > { %v2485_v51 = vld [vmem:[#allocation2 + $0x28] sm:$0xff] }
 0x7fa   : > { %v2506_v39 = vmul.f32 %v5030_v50, %v2485_v51  ;;  %v2722_v60 = vmul.f32 %v5062_v33, %v2485_v51 }
 0x7fc   : > { %2953 = vrot.lane.b32.xlu0 %v2934_v11, %s3627_s11  ;;  %2594 = vrot.lane.b32.xlu1 %v2576_v48, %s3629_s14  ;;  %v5637_v11 = vld [vmem:[#allocation13_spill] sm:$0xff] }
 0x7fd   : > { %v3010_v48 = vmul.f32 %v5637_v11, %v3001_v20  ;;  %v2938_v20 = vmul.f32 %v5072_v2, %v2485_v51 }
 0x800   : > { %3026 = vrot.lane.b32.xlu0 %v3008_v42, %s3630_s15  ;;  %2669 = vrot.lane.b32.xlu1 %v2651_v18, %s3631_s16  ;;  %v2643_v42 = vmul.f32 %v5032_v19, %v5094_v52  ;;  %v5166_v18 = vld [vmem:[#allocation2 + $0x18] sm:$0xff] }
 0x801   : > { %v2504_v62 = vmul.f32 %v5030_v50, %v5166_v18  ;;  %v2720_v19 = vmul.f32 %v5062_v33, %v5166_v18  ;;  %v2570_v3 = vmul.f32 %v5054_v0, %v5166_v18 }
 0x802   : > { %v2652_v41 = vmul.f32 %v2643_v42, %v5639_v12  ;;  %v2645_v42 = vmul.f32 %v5056_v61, %v5166_v18 }
 0x804   : > { %2598 = vrot.lane.b32.xlu0 %v2578_v13, %s3629_s14  ;;  %2737 = vrot.lane.b32.xlu1 %v2718_v4, %s3625_s28  ;;  %v2784_v13 = vmul.f32 %v5038_v30, %v5094_v52  ;;  %v5640_v4 = vld [vmem:[#allocation16_spill] sm:$0xff]  ;;  %v2936_v30 = vmul.f32 %v5072_v2, %v5166_v18 }
 0x806   : > { %v2793_v6 = vmul.f32 %v2784_v13, %v5640_v4  ;;  %v2786_v13 = vmul.f32 %v5064_v63, %v5166_v18 }
 0x808   : > { %2673 = vrot.lane.b32.xlu0 %v2653_v37, %s3631_s16  ;;  %2810 = vrot.lane.b32.xlu1 %v2792_v10, %s3632_s17  ;;  %v5641_v37 = vld [vmem:[#allocation17_spill] sm:$0xff] }
 0x809   : > { %v2868_v10 = vmul.f32 %v2859_v36, %v5641_v37  ;;  %v3002_v36 = vmul.f32 %v5074_v59, %v5166_v18 }
 0x80c   : > { %2889 = vrot.lane.b32.xlu0 %v2869_v57, %s3628_s12  ;;  %2814 = vrot.lane.b32.xlu1 %v2794_v21, %s3632_s17  ;;  %v5642_v57 = vld [vmem:[#allocation18_spill] sm:$0xff] }
 0x80d   : > { %v3009_v21 = vmul.f32 %v3000_v7, %v5642_v57  ;;  %v2788_v7 = vmul.f32 %v5064_v63, %v2485_v51 }
 0x810   : > { %3030 = vrot.lane.b32.xlu0 %v3010_v48, %s3630_s15  ;;  %2596 = vrot.lane.b32.xlu1 %v2577_v5, %s3629_s14  ;;  %v2579_v48 = vmul.f32 %v5629_v44, %v2570_v3  ;;  %v2505_v5 = vmul.f32 %v5030_v50, %v5099_v38  ;;  %v2795_v50 = vmul.f32 %v5634_v27, %v2786_v13 }
 0x814   : > { %2671 = vrot.lane.b32.xlu1 %v2652_v41, %s3631_s16  ;;  %2525 = vrot.lane.b32.xlu0 %v2504_v62, %s3626_s29  ;;  %v2654_v41 = vmul.f32 %v5631_v54, %v2645_v42  ;;  %v2721_v62 = vmul.f32 %v5062_v33, %v5099_v38  ;;  %v2937_v33 = vmul.f32 %v5072_v2, %v5099_v38 }
 0x818   : > { %2741 = vrot.lane.b32.xlu1 %v2720_v19, %s3625_s28  ;;  %2812 = vrot.lane.b32.xlu0 %v2793_v6, %s3632_s17  ;;  %v2861_v19 = vmul.f32 %v5068_v29, %v5166_v18 }
 0x81a   : > { %v2870_v6 = vmul.f32 %v5628_v55, %v2861_v19  ;;  %v2787_v19 = vmul.f32 %v5064_v63, %v5099_v38 }
 0x81c   : > { %2887 = vrot.lane.b32.xlu1 %v2868_v10, %s3628_s12  ;;  %2957 = vrot.lane.b32.xlu0 %v2936_v30, %s3627_s11  ;;  %v3011_v10 = vmul.f32 %v5630_v45, %v3002_v36  ;;  %v2572_v30 = vmul.f32 %v5054_v0, %v2485_v51  ;;  %v3003_v36 = vmul.f32 %v5074_v59, %v5099_v38 }
 0x820   : > { %3028 = vrot.lane.b32.xlu1 %v3009_v21, %s3630_s15  ;;  %2529 = vrot.lane.b32.xlu0 %v2506_v39, %s3626_s29  ;;  %v2581_v21 = vmul.f32 %v5632_v14, %v2572_v30  ;;  %v2797_v39 = vmul.f32 %v5636_v22, %v2788_v7 }
 0x824   : > { %2961 = vrot.lane.b32.xlu1 %v2938_v20, %s3627_s11  ;;  %2745 = vrot.lane.b32.xlu0 %v2722_v60, %s3625_s28  ;;  %v2647_v20 = vmul.f32 %v5056_v61, %v2485_v51  ;;  %v2571_v60 = vmul.f32 %v5054_v0, %v5099_v38 }
 0x826   : > { %v2656_v2 = vmul.f32 %v5633_v8, %v2647_v20  ;;  %v2580_v3 = vmul.f32 %v2571_v60, %v5638_v53  ;;  %v2508_v20 = vmul.f32 %v5058_v56, %v5109_v23 }
 0x828   : > { %2600 = vrot.lane.b32.xlu0 %v2579_v48, %s3629_s14  ;;  %2527 = vrot.lane.b32.xlu1 %v2505_v5, %s3626_s29  ;;  %v2863_v48 = vmul.f32 %v5068_v29, %v2485_v51  ;;  %v2646_v5 = vmul.f32 %v5056_v61, %v5099_v38 }
 0x82a   : > { %v2872_v42 = vmul.f32 %v5635_v34, %v2863_v48  ;;  %v2655_v0 = vmul.f32 %v2646_v5, %v5639_v12 }
 0x82c   : > { %2675 = vrot.lane.b32.xlu0 %v2654_v41, %s3631_s16  ;;  %2743 = vrot.lane.b32.xlu1 %v2721_v62, %s3625_s28  ;;  %v3004_v41 = vmul.f32 %v5074_v59, %v2485_v51  ;;  %v5247_v62 = vld [vmem:[#allocation2 + $0x30] sm:$0xff]  ;;  %v2796_v51 = vmul.f32 %v2787_v19, %v5640_v4 }
 0x82d   : > { %v2507_v61 = vmul.f32 %v5058_v56, %v5247_v62  ;;  %v2723_v63 = vmul.f32 %v5070_v15, %v5247_v62  ;;  %v2573_v30 = vmul.f32 %v5034_v32, %v5247_v62  ;;  %v2648_v60 = vmul.f32 %v5066_v47, %v5247_v62 }
 0x82e   : > { %v3013_v13 = vmul.f32 %v5637_v11, %v3004_v41 }
 0x82f   : > { %v2582_v7 = vmul.f32 %v5629_v44, %v2573_v30  ;;  %v2940_v44 = vmul.f32 %v5044_v58, %v5109_v23 }
 0x830   : > { %2816 = vrot.lane.b32.xlu0 %v2795_v50, %s3632_s17  ;;  %2891 = vrot.lane.b32.xlu1 %v2870_v6, %s3628_s12  ;;  %v2862_v50 = vmul.f32 %v5068_v29, %v5099_v38  ;;  %v3012_v29 = vmul.f32 %v3003_v36, %v5642_v57 }
 0x832   : > { %v2871_v6 = vmul.f32 %v2862_v50, %v5641_v37  ;;  %v2462_v50 = vmul.f32 %v5102_v49, %v5080_v17 }
 0x834   : > { %2959 = vrot.lane.b32.xlu0 %v2937_v33, %s3627_s11  ;;  %3032 = vrot.lane.b32.xlu1 %v3011_v10, %s3630_s15  ;;  %v5269_v33 = vld [vmem:[#allocation2 + $0x40] sm:$0xff] }
 0x835   : > { %v2509_v10 = vmul.f32 %v5058_v56, %v5269_v33  ;;  %v2725_v59 = vmul.f32 %v5070_v15, %v5269_v33 }
 0x838   : > { %2604 = vrot.lane.b32.xlu0 %v2581_v21, %s3629_s14  ;;  %2820 = vrot.lane.b32.xlu1 %v2797_v39, %s3632_s17  ;;  %v2941_v21 = vmul.f32 %v5044_v58, %v5269_v33  ;;  %v2724_v39 = vmul.f32 %v5070_v15, %v5109_v23  ;;  %v2789_v15 = vmul.f32 %v5040_v9, %v5247_v62 }
 0x83c   : > { %2679 = vrot.lane.b32.xlu0 %v2656_v2, %s3631_s16  ;;  %2602 = vrot.lane.b32.xlu1 %v2580_v3, %s3629_s14  ;;  %v2657_v2 = vmul.f32 %v5631_v54, %v2648_v60  ;;  %v2650_v3 = vmul.f32 %v5066_v47, %v5269_v33  ;;  %v2864_v54 = vmul.f32 %v5076_v40, %v5247_v62 }
 0x83e   : > { %v2659_v5 = vmul.f32 %v5633_v8, %v2650_v3  ;;  %v2873_v19 = vmul.f32 %v5628_v55, %v2864_v54  ;;  %v2574_v8 = vmul.f32 %v5034_v32, %v5109_v23 }
 0x840   : > { %2895 = vrot.lane.b32.xlu0 %v2872_v42, %s3628_s12  ;;  %2677 = vrot.lane.b32.xlu1 %v2655_v0, %s3631_s16  ;;  %v2798_v42 = vmul.f32 %v5634_v27, %v2789_v15  ;;  %v2791_v0 = vmul.f32 %v5040_v9, %v5269_v33  ;;  %v2575_v27 = vmul.f32 %v5034_v32, %v5269_v33 }
 0x841   : > { %v2583_v55 = vmul.f32 %v2574_v8, %v5638_v53  ;;  %v2468_v32 = vmul.f32 %v2462_v50, %v3763_v24 }
 0x842   : > { %v2584_v36 = vmul.f32 %v5632_v14, %v2575_v27  ;;  %v2865_v14 = vmul.f32 %v5076_v40, %v5109_v23 }
 0x844   : > { %3036 = vrot.lane.b32.xlu0 %v3013_v13, %s3630_s15  ;;  %2531 = vrot.lane.b32.xlu1 %v2507_v61, %s3626_s29  ;;  %v2800_v61 = vmul.f32 %v5636_v22, %v2791_v0  ;;  %v3200_v0 = vld [vmem:[%s5492_s8] sm:$0xff] }
 0x848   : > { %2818 = vrot.lane.b32.xlu0 %v2796_v51, %s3632_s17  ;;  %2893 = vrot.lane.b32.xlu1 %v2871_v6, %s3628_s12  ;;  %v2463_v51 = vmul.f32 %v5080_v17, %v5094_v52  ;;  %v2939_v52 = vmul.f32 %v5044_v58, %v5247_v62 }
 0x84a   : > { %v2469_v49 = vmul.f32 %v2463_v51, %v3766_v25 }
 0x84c   : > { %2747 = vrot.lane.b32.xlu0 %v2723_v63, %s3625_s28  ;;  %3034 = vrot.lane.b32.xlu1 %v3012_v29, %s3630_s15  ;;  %v2866_v63 = vmul.f32 %v5076_v40, %v5269_v33  ;;  %v3007_v40 = vmul.f32 %v5078_v26, %v5269_v33  ;;  %v3006_v33 = vmul.f32 %v5078_v26, %v5109_v23 }
 0x84e   : > { %v2875_v53 = vmul.f32 %v5635_v34, %v2866_v63  ;;  %v2874_v34 = vmul.f32 %v2865_v14, %v5641_v37  ;;  %v3016_v37 = vmul.f32 %v5637_v11, %v3007_v40  ;;  %v3005_v11 = vmul.f32 %v5078_v26, %v5247_v62  ;;  %v3423_v26 = vld [vmem:[%s5490_s6 + $0x28] sm:$0xf] }
 0x850   : > { %2535 = vrot.lane.b32.xlu0 %v2509_v10, %s3626_s29  ;;  %2751 = vrot.lane.b32.xlu1 %v2725_v59, %s3625_s28  ;;  %v2649_v10 = vmul.f32 %v5066_v47, %v5109_v23  ;;  %v2790_v47 = vmul.f32 %v5040_v9, %v5109_v23  ;;  %v3422_v9 = vld [vmem:[%s5490_s6 + $0x20] sm:$0xff] }
 0x854   : > { %2606 = vrot.lane.b32.xlu0 %v2582_v7, %s3629_s14  ;;  %2967 = vrot.lane.b32.xlu1 %v2941_v21, %s3627_s11 }
 0x858   : > { %2749 = vrot.lane.b32.xlu0 %v2724_v39, %s3625_s28  ;;  %2533 = vrot.lane.b32.xlu1 %v2508_v20, %s3626_s29  ;;  %v2658_v20 = vmul.f32 %v2649_v10, %v5639_v12  ;;  %v2799_v12 = vmul.f32 %v2790_v47, %v5640_v4  ;;  %s332_s28 = scalar_lea.vmem %s5493_s9, %s3432_s13 }
 0x85c   : > { %2965 = vrot.lane.b32.xlu0 %v2940_v44, %s3627_s11  ;;  %2681 = vrot.lane.b32.xlu1 %v2657_v2, %s3631_s16 }
 0x85e   : > { %v2736_v56 = vpop.permute.xlu0 %2735  ;;  %v2520_v48 = vpop.permute.xlu1 %2519 }
 0x860   : > { %2685 = vrot.lane.b32.xlu0 %v2659_v5, %s3631_s16  ;;  %2822 = vrot.lane.b32.xlu1 %v2798_v42, %s3632_s17  ;;  %v3015_v5 = vmul.f32 %v3006_v33, %v5642_v57 }
 0x862   : > { %v2524_v41 = vpop.permute.xlu0 %2523  ;;  %v2952_v13 = vpop.permute.xlu1 %2951 }
 0x864   : > { %2826 = vrot.lane.b32.xlu0 %v2800_v61, %s3632_s17  ;;  %2897 = vrot.lane.b32.xlu1 %v2873_v19, %s3628_s12  ;;  %v3201_v61 = vld [vmem:[%s5492_s8 + $0x8] sm:$0xf] }
 0x866   : > { %v2740_v6 = vpop.permute.xlu0 %2739  ;;  %v2956_v22 = vpop.permute.xlu1 %2955 }
 0x868   : > { %2608 = vrot.lane.b32.xlu0 %v2583_v55, %s3629_s14  ;;  %2610 = vrot.lane.b32.xlu1 %v2584_v36, %s3629_s14 }
 0x86a   : > { %v5331_v29 = vpop.permute.xlu0 %2885  ;;  %v2522_v17 = vpop.permute.xlu1 %2521 }
 0x86b   : > { %v2537_v59 = vsel %vm640_vm0, %v2520_v48, %v2522_v17  ;;  %v2538_v30 = vsel %vm640_vm0, %v2522_v17, %v2524_v41 }
 0x86c   : > { %v2549_v7 = vadd.f32 %v2537_v59, %v2468_v32  ;;  %v2550_v21 = vadd.f32 %v2538_v30, %v2469_v49  ;;  %2963 = vrot.lane.b32.xlu0 %v2939_v52, %s3627_s11  ;;  %2901 = vrot.lane.b32.xlu1 %v2875_v53, %s3628_s12 }
 0x86e   : > { %v2954_v39 = vpop.permute.xlu0 %2953  ;;  %v2595_v58 = vpop.permute.xlu1 %2594 }
 0x86f   : > { %v2969_v60 = vsel %vm1118_vm9, %v2952_v13, %v2954_v39  ;;  %v2970_v44 = vsel %vm1118_vm9, %v2954_v39, %v2956_v22  ;;  %v3014_v13 = vmul.f32 %v5630_v45, %v3005_v11 }
 0x870   : > { %2899 = vrot.lane.b32.xlu0 %v2874_v34, %s3628_s12  ;;  %2683 = vrot.lane.b32.xlu1 %v2658_v20, %s3631_s16 }
 0x872   : > { %v3027_v2 = vpop.permute.xlu0 %3026  ;;  %v2670_v3 = vpop.permute.xlu1 %2669 }
 0x874   : > { %3042 = vrot.lane.b32.xlu0 %v3016_v37, %s3630_s15  ;;  %2824 = vrot.lane.b32.xlu1 %v2799_v12, %s3632_s17 }
 0x876   : > { %v2599_v15 = vpop.permute.xlu0 %2598  ;;  %v2738_v48 = vpop.permute.xlu1 %2737 }
 0x877   : > { %v2753_v4 = vsel %vm881_vm5, %v2736_v56, %v2738_v48  ;;  %v2754_v42 = vsel %vm881_vm5, %v2738_v48, %v2740_v6 }
 0x878   : > { %3095 = vperm.xlu0 %3593, %v3422_v9   ;;  %3040 = vrot.lane.b32.xlu1 %v3015_v5, %s3630_s15 }
 0x87a   : > { %v2674_v54 = vpop.permute.xlu0 %2673  ;;  %v2811_v41 = vpop.permute.xlu1 %2810 }
 0x87c   : > { %3204 = vperm.xlu0 %3593, %v3200_v0   ;;  %3038 = vrot.lane.b32.xlu1 %v3014_v13, %s3630_s15 }
 0x87e   : > { %v2890_v57 = vpop.permute.xlu0 %2889  ;;  %v2815_v56 = vpop.permute.xlu1 %2814 }
 0x880   : > { %3100 = vperm.xlu1 %3595, %v3423_v26  }
 0x882   : > { %v5380_v19 = vpop.permute.xlu0 %3030  ;;  %v2597_v8 = vpop.permute.xlu1 %2596 }
 0x883   : > { %v2612_v27 = vsel %vm727_vm1, %v2595_v58, %v2597_v8  ;;  %v2613_v45 = vsel %vm727_vm1, %v2597_v8, %v2599_v15 }
 0x884   : > { %v2624_v50 = vadd.f32 %v2612_v27, %v2549_v7  ;;  %3209 = vperm.xlu1 %3595, %v3201_v61   ;;  %v2625_v51 = vadd.f32 %v2613_v45, %v2550_v21 }
 0x886   : > { %v2526_v6 = vpop.permute.xlu0 %2525  ;;  %v2672_v22 = vpop.permute.xlu1 %2671 }
 0x887   : > { %v2687_v55 = vsel %vm814_vm4, %v2670_v3, %v2672_v22  ;;  %v2688_v36 = vsel %vm814_vm4, %v2672_v22, %v2674_v54 }
 0x888   : > { %v2699_v63 = vadd.f32 %v2687_v55, %v2624_v50  ;;  %v2700_v32 = vadd.f32 %v2688_v36, %v2625_v51 }
 0x88a   : > { %v2813_v49 = vpop.permute.xlu0 %2812  ;;  %v2765_v17 = vadd.f32 %v2753_v4, %v2699_v63  ;;  %v2766_v52 = vadd.f32 %v2754_v42, %v2700_v32  ;;  %v2742_v53 = vpop.permute.xlu1 %2741 }
 0x88b   : > { %v2828_v14 = vsel %vm966_vm6, %v2811_v41, %v2813_v49  ;;  %v2829_v10 = vsel %vm966_vm6, %v2813_v49, %v2815_v56 }
 0x88c   : > { %v2840_v59 = vadd.f32 %v2828_v14, %v2765_v17  ;;  %v2841_v30 = vadd.f32 %v2829_v10, %v2766_v52 }
 0x88e   : > { %v5388_v7 = vpop.permute.xlu0 %2957  ;;  %v2888_v21 = vpop.permute.xlu1 %2887 }
 0x88f   : > { %v2903_v39 = vsel %vm1051_vm7, %v5331_v29, %v2888_v21  ;;  %v2904_v58 = vsel %vm1051_vm7, %v2888_v21, %v2890_v57 }
 0x890   : > { %v2915_v34 = vadd.f32 %v2903_v39, %v2840_v59  ;;  %v2916_v20 = vadd.f32 %v2904_v58, %v2841_v30 }
 0x892   : > { %v2530_v40 = vpop.permute.xlu0 %2529  ;;  %v2981_v47 = vadd.f32 %v2969_v60, %v2915_v34  ;;  %v2982_v3 = vadd.f32 %v2970_v44, %v2916_v20  ;;  %v3029_v37 = vpop.permute.xlu1 %3028  ;;  %v2464_v60 = vmul.f32 %v5166_v18, %v5082_v35  ;;  %v2465_v44 = vmul.f32 %v5082_v35, %v5099_v38 }
 0x893   : > { %v3044_v12 = vsel %vm1203_vm11, %v3027_v2, %v3029_v37  ;;  %v3045_v20 = vsel %vm1203_vm11, %v3029_v37, %v5380_v19 }
 0x894   : > { %v5394_v33 = vadd.f32 %v3044_v12, %v2981_v47  ;;  %v2470_v61 = vmul.f32 %v2464_v60, %v3763_v24  ;;  %v2471_v8 = vmul.f32 %v2465_v44, %v3766_v25 }
 0x896   : > { %v2746_v9 = vpop.permute.xlu0 %2745  ;;  %v2962_v15 = vpop.permute.xlu1 %2961 }
 0x89a   : > { %v2601_v48 = vpop.permute.xlu0 %2600  ;;  %v2528_v5 = vpop.permute.xlu1 %2527 }
 0x89b   : > { %v2539_v57 = vsel %vm640_vm0, %v2526_v6, %v2528_v5  ;;  %v2540_v56 = vsel %vm640_vm0, %v2528_v5, %v2530_v40 }
 0x89c   : > { %v2551_v50 = vadd.f32 %v2539_v57, %v2470_v61  ;;  %v2552_v51 = vadd.f32 %v2540_v56, %v2471_v8 }
 0x89e   : > { %v2676_v11 = vpop.permute.xlu0 %2675  ;;  %v2744_v4 = vpop.permute.xlu1 %2743 }
 0x89f   : > { %v2755_v17 = vsel %vm881_vm5, %v2742_v53, %v2744_v4  ;;  %v2756_v52 = vsel %vm881_vm5, %v2744_v4, %v2746_v9  ;;  %v3057_v4 = vadd.f32 %v3045_v20, %v2982_v3 }
 0x8a2   : > { %v2817_v42 = vpop.permute.xlu0 %2816  ;;  %v2892_v29 = vpop.permute.xlu1 %2891 }
 0x8a6   : > { %v2960_v0 = vpop.permute.xlu0 %2959  ;;  %v3033_v54 = vpop.permute.xlu1 %3032 }
 0x8a7   : > { %v2971_v5 = vsel %vm1118_vm9, %v5388_v7, %v2960_v0 }
 0x8aa   : > { %v2605_v41 = vpop.permute.xlu0 %2604  ;;  %v2821_v13 = vpop.permute.xlu1 %2820 }
 0x8ae   : > { %v2680_v2 = vpop.permute.xlu0 %2679  ;;  %v2603_v26 = vpop.permute.xlu1 %2602 }
 0x8af   : > { %v2614_v27 = vsel %vm727_vm1, %v2601_v48, %v2603_v26  ;;  %v2615_v45 = vsel %vm727_vm1, %v2603_v26, %v2605_v41  ;;  %v3082_v26 = vadd.f32 %v5088_v31, %v3057_v4 }
 0x8b0   : > { %v2626_v55 = vadd.f32 %v2614_v27, %v2551_v50  ;;  %v2627_v6 = vadd.f32 %v2615_v45, %v2552_v51  ;;  %v2466_v51 = vmul.f32 %v5247_v62, %v5084_v16 }
 0x8b2   : > { %v2896_v18 = vpop.permute.xlu0 %2895  ;;  %v2678_v22 = vpop.permute.xlu1 %2677 }
 0x8b3   : > { %v2689_v35 = vsel %vm814_vm4, %v2676_v11, %v2678_v22  ;;  %v2690_v38 = vsel %vm814_vm4, %v2678_v22, %v2680_v2  ;;  %v2972_v11 = vsel %vm1118_vm9, %v2960_v0, %v2962_v15  ;;  %v3081_v2 = vadd.f32 %v5088_v31, %v5394_v33 }
 0x8b4   : > { %v2701_v36 = vadd.f32 %v2689_v35, %v2626_v55  ;;  %v2702_v63 = vadd.f32 %v2690_v38, %v2627_v6  ;;  %v2472_v55 = vmul.f32 %v2466_v51, %v3763_v24 }
 0x8b6   : > { %v3037_v32 = vpop.permute.xlu0 %3036  ;;  %v2532_v49 = vpop.permute.xlu1 %2531  ;;  %v2767_v10 = vadd.f32 %v2755_v17, %v2701_v36  ;;  %v2768_v59 = vadd.f32 %v2756_v52, %v2702_v63 }
 0x8ba   : > { %v2819_v14 = vpop.permute.xlu0 %2818  ;;  %v2894_v30 = vpop.permute.xlu1 %2893 }
 0x8bb   : > { %v2830_v21 = vsel %vm966_vm6, %v2817_v42, %v2819_v14  ;;  %v2831_v39 = vsel %vm966_vm6, %v2819_v14, %v2821_v13  ;;  %v2905_v40 = vsel %vm1051_vm7, %v2892_v29, %v2894_v30  ;;  %v2906_v47 = vsel %vm1051_vm7, %v2894_v30, %v2896_v18 }
 0x8bc   : > { %v2842_v58 = vadd.f32 %v2830_v21, %v2767_v10  ;;  %v2843_v34 = vadd.f32 %v2831_v39, %v2768_v59 }
 0x8be   : > { %v2917_v53 = vadd.f32 %v2905_v40, %v2842_v58  ;;  %v2918_v12 = vadd.f32 %v2906_v47, %v2843_v34  ;;  %v2748_v9 = vpop.permute.xlu0 %2747  ;;  %v3035_v48 = vpop.permute.xlu1 %3034 }
 0x8bf   : > { %v3046_v13 = vsel %vm1203_vm11, %v3033_v54, %v3035_v48  ;;  %v3047_v19 = vsel %vm1203_vm11, %v3035_v48, %v3037_v32 }
 0x8c0   : > { %v2983_v42 = vadd.f32 %v2971_v5, %v2917_v53  ;;  %v2984_v41 = vadd.f32 %v2972_v11, %v2918_v12 }
 0x8c2   : > { %v3058_v37 = vadd.f32 %v3046_v13, %v2983_v42  ;;  %v3059_v29 = vadd.f32 %v3047_v19, %v2984_v41  ;;  %v2536_v60 = vpop.permute.xlu0 %2535  ;;  %v2752_v44 = vpop.permute.xlu1 %2751 }
 0x8c4   : > { %v3083_v7 = vadd.f32 %v5086_v1, %v3058_v37  ;;  %v3084_v15 = vadd.f32 %v5086_v1, %v3059_v29  ;;  %v2467_v1 = vmul.f32 %v5084_v16, %v5109_v23 }
 0x8c6   : > { %v3462_v3 = vpack.c.bf16 %v3083_v7, %v3081_v2  ;;  %v2607_v0 = vpop.permute.xlu0 %2606  ;;  %v2968_v57 = vpop.permute.xlu1 %2967  ;;  %v3460_v56 = vpack.c.bf16 %v3084_v15, %v3082_v26  ;;  %v2473_v6 = vmul.f32 %v2467_v1, %v3766_v25  ;;  %v3420_v15 = vld [vmem:[%s5489_s5 + $0x20] sm:$0xff] }
 0x8c8   : > { %3461 = vmatprep.subr.bf16.mxu0 %v3460_v56  ;;  %3470 = vmatprep.subr.bf16.mxu1 %v3460_v56 }
 0x8c9   : > { %3463 = vmatpush1.bf16.msra.mxu0 %v3462_v3  ;;  %3472 = vmatpush1.bf16.msra.mxu1 %v3462_v3  ;;  %v3421_v3 = vld [vmem:[%s5489_s5 + $0x28] sm:$0xf] }
 0x8ca   : > { %v2750_v54 = vpop.permute.xlu0 %2749  ;;  %v2534_v61 = vpop.permute.xlu1 %2533 }
 0x8cb   : > { %v2541_v35 = vsel %vm640_vm0, %v2532_v49, %v2534_v61  ;;  %v2542_v38 = vsel %vm640_vm0, %v2534_v61, %v2536_v60  ;;  %v2757_v24 = vsel %vm881_vm5, %v2748_v9, %v2750_v54  ;;  %v2758_v25 = vsel %vm881_vm5, %v2750_v54, %v2752_v44 }
 0x8cc   : > { %v2553_v17 = vadd.f32 %v2541_v35, %v2472_v55  ;;  %v2554_v62 = vadd.f32 %v2542_v38, %v2473_v6 }
 0x8ce   : > { %v2966_v8 = vpop.permute.xlu0 %2965  ;;  %v2682_v27 = vpop.permute.xlu1 %2681 }
 0x8cf   : > { %v2974_v9 = vsel %vm1118_vm9, %v2966_v8, %v2968_v57 }
 0x8d2   : > { %v2686_v45 = vpop.permute.xlu0 %2685  ;;  %v2823_v33 = vpop.permute.xlu1 %2822 }
 0x8d6   : > { %v2827_v50 = vpop.permute.xlu0 %2826  ;;  %v2898_v31 = vpop.permute.xlu1 %2897 }
 0x8da   : > { %v2609_v18 = vpop.permute.xlu0 %2608  ;;  %v2611_v22 = vpop.permute.xlu1 %2610 }
 0x8db   : > { %v2616_v63 = vsel %vm727_vm1, %v2607_v0, %v2609_v18  ;;  %v2617_v32 = vsel %vm727_vm1, %v2609_v18, %v2611_v22 }
 0x8dc   : > { %v2628_v14 = vadd.f32 %v2616_v63, %v2553_v17  ;;  %v2629_v16 = vadd.f32 %v2617_v32, %v2554_v62  ;;  %v3199_v63 = vld [vmem:[%s5491_s7 + $0x8] sm:$0xf] }
 0x8de   : > { %v2902_v36 = vpop.permute.xlu1 %2901  ;;  %v2964_v52 = vpop.permute.xlu0 %2963 }
 0x8df   : > { %v2973_v13 = vsel %vm1118_vm9, %v2964_v52, %v2966_v8 }
 0x8e2   : > { %v2684_v23 = vpop.permute.xlu1 %2683  ;;  %v2900_v21 = vpop.permute.xlu0 %2899 }
 0x8e3   : > { %v2691_v10 = vsel %vm814_vm4, %v2682_v27, %v2684_v23  ;;  %v2692_v49 = vsel %vm814_vm4, %v2684_v23, %v2686_v45  ;;  %v2907_v12 = vsel %vm1051_vm7, %v2898_v31, %v2900_v21  ;;  %v2908_v48 = vsel %vm1051_vm7, %v2900_v21, %v2902_v36  ;;  %v3198_v36 = vld [vmem:[%s5491_s7] sm:$0xff]  ;;  %v3597_v23 = vld [vmem:[%s3714_s18 + $0x8] sm:$0xff] }
 0x8e4   : > { %v2703_v59 = vadd.f32 %v2691_v10, %v2628_v14  ;;  %v2704_v30 = vadd.f32 %v2692_v49, %v2629_v16  ;;  %v3596_v14 = vld [vmem:[%s3714_s18] sm:$0xff] }
 0x8e6   : > { %v2769_v39 = vadd.f32 %v2757_v24, %v2703_v59  ;;  %v2770_v58 = vadd.f32 %v2758_v25, %v2704_v30  ;;  %v2825_v34 = vpop.permute.xlu1 %2824  ;;  %v3043_v42 = vpop.permute.xlu0 %3042  ;;  %v3598_v25 = vld [vmem:[%s3714_s18 + $0x10] sm:$0xf] }
 0x8e7   : > { %v2832_v20 = vsel %vm966_vm6, %v2823_v33, %v2825_v34  ;;  %v2833_v40 = vsel %vm966_vm6, %v2825_v34, %v2827_v50 }
 0x8e8   : > { %v2844_v47 = vadd.f32 %v2832_v20, %v2769_v39  ;;  %v2845_v53 = vadd.f32 %v2833_v40, %v2770_v58  ;;  %v3599_v39 = vld [vmem:[%s3714_s18 + $0x18] sm:$0xf] }
 0x8ea   : > { %v2919_v5 = vadd.f32 %v2907_v12, %v2844_v47  ;;  %v2920_v11 = vadd.f32 %v2908_v48, %v2845_v53  ;;  %v3041_v4 = vpop.permute.xlu1 %3040 }
 0x8eb   : > { %v3049_v19 = vsel %vm1203_vm11, %v3041_v4, %v3043_v42 }
 0x8ec   : > { %v2986_v41 = vadd.f32 %v2974_v9, %v2920_v11  ;;  %v2985_v29 = vadd.f32 %v2973_v13, %v2919_v5 }
 0x8ee   : > { %v3061_v37 = vadd.f32 %v3049_v19, %v2986_v41  ;;  %v3039_v60 = vpop.permute.xlu1 %3038 }
 0x8ef   : > { %v3048_v44 = vsel %vm1203_vm11, %v3039_v60, %v3041_v4 }
 0x8f0   : > { %v3060_v2 = vadd.f32 %v3048_v44, %v2985_v29  ;;  %v3086_v26 = vadd.f32 %v5090_v43, %v3061_v37 }
 0x8f2   : > { %v3085_v7 = vadd.f32 %v5090_v43, %v3060_v2  ;;  %3113 = vmatprep.subr.mxu0 %v3086_v26  ;;  %3471 = vmatprep.subr.mxu1 %v3086_v26 }
 0x8f4   : > { %3114 = vmatpush1.msra.mxu0 %v3085_v7  ;;  %3473 = vmatpush1.msra.mxu1 %v3085_v7 }
 0x8f5   : > { %3424 = vmatmul.mubr.msk.f32.vlgmr.msra.gmra.mrb[16].mxu0 %vm5643_vm8, %v3420_v15  ;;  %3425 = vmatmul.mubr.msk.f32.vlgmr.msra.gmra.mrb[10].mxu1 %vm5644_vm10, %v3421_v3 }
 0x8f6   : > { %3288 = vmatprep.mubr.f32.mxu1 %v5616_v46 }
 0x8f7   : > { %v3096_v0 = vpop.permute.xlu0 %3095 }
 0x8fb   : > { %v3205_v32 = vpop.permute.xlu0 %3204 }
 0x8ff   : > { %v3101_v43 = vpop.permute.xlu1 %3100 }
 0x903   : > { %v3210_v16 = vpop.permute.xlu1 %3209 }
 0x9c8   : > { %v3175_v57 = vpop.f32.mrb[16].mxu0  ;;  %v3181_v56 = vpop.f32.mrb[10].mxu1 }
 0x9c9   : > { %v3176_v54 = vadd.f32 %v3175_v57, %v3096_v0  ;;  %v3182_v61 = vadd.f32 %v3181_v56, %v3101_v43  ;;  %v3177_v8 = vpop.f32.mrb[17].mxu0  ;;  %v3183_v27 = vpop.f32.mrb[11].mxu1 }
 0x9ca   : > { %v3178_v45 = vadd.f32 %v3177_v8, %v3096_v0  ;;  %v3184_v33 = vadd.f32 %v3183_v27, %v3101_v43 }
 0x9cb   : > { %vm3186_vm0 = vcmp.ge.f32.partialorder %v3176_v54, 0.0  ;;  %v3190_v50 = vmul.f32 0.2, %v3176_v54  ;;  %vm3188_vm1 = vcmp.ge.f32.partialorder %v3182_v61, 0.0  ;;  %v3192_v31 = vmul.f32 0.2, %v3182_v61 }
 0x9cc   : > { %vm3187_vm4 = vcmp.ge.f32.partialorder %v3178_v45, 0.0  ;;  %v3191_v51 = vmul.f32 0.2, %v3178_v45  ;;  %vm3189_vm5 = vcmp.ge.f32.partialorder %v3184_v33, 0.0  ;;  %v3193_v1 = vmul.f32 0.2, %v3184_v33 }
 0x9cd   : > { %v3194_v18 = vsel %vm3186_vm0, %v3176_v54, %v3190_v50  ;;  %v3196_v22 = vsel %vm3188_vm1, %v3182_v61, %v3192_v31 }
 0x9ce   : > { %v3467_v35 = vpack.c.bf16 %v3196_v22, %v3194_v18  ;;  %v3195_v38 = vsel %vm3187_vm4, %v3178_v45, %v3191_v51  ;;  %v3197_v55 = vsel %vm3189_vm5, %v3184_v33, %v3193_v1 }
 0x9cf   : > { %v3464_v6 = vpack.c.bf16 %v3197_v55, %v3195_v38 }
 0x9d1   : > { %3466 = vmatprep.subr.msk.bf16.mxu1 %vm3716_vm2, %v3464_v6 }
 0x9d2   : > { %3469 = vmatpush1.bf16.msk.msra.mxu1 %vm3716_vm2, %v3467_v35 }
 0x9d5   : > { %3428 = vmatmul.mubr.msk.f32.vlgmr.msra.gmra.mrb[12].mxu1 %vm401_vm3, %v3198_v36 }
 0x9d6   : > { %3294 = vmatprep.mubr.f32.mxu1 %v5616_v46 }
 0x9d9   : > { %3429 = vmatmul.mubr.msk.f32.gmra.mrb[14].mxu1 %vm401_vm3, %v3199_v63 }
 0xaa8   : > { %v3290_v17 = vpop.f32.mrb[12].mxu1 }
 0xaa9   : > { %v3291_v28 = vadd.f32 %v3290_v17, %v3205_v32  ;;  %v3292_v62 = vpop.f32.mrb[13].mxu1 }
 0xaaa   : > { %v3293_v52 = vadd.f32 %v3292_v62, %v3205_v32 }
 0xaab   : > { %v3301_v46 = vadd.f32 %v3596_v14, %v3291_v28 }
 0xaac   : > { %v3302_v10 = vadd.f32 %v3597_v23, %v3293_v52  ;;  %v3296_v49 = vpop.f32.mrb[14].mxu1 }
 0xaad   : > { %3305 = vst [vmem:[%s332_s28] sm:$0xff] %v3301_v46  ;;  %v3297_v59 = vadd.f32 %v3296_v49, %v3210_v16  ;;  %v3298_v30 = vpop.f32.mrb[15].mxu1 }
 0xaae   : > { %3306 = vst [vmem:[%s332_s28 + $0x8] sm:$0xff] %v3302_v10  ;;  %v3299_v24 = vadd.f32 %v3298_v30, %v3210_v16 }
 0xaaf   : > { %v3303_v21 = vadd.f32 %v3598_v25, %v3297_v59 }
 0xab0   : > { %v3304_v58 = vadd.f32 %v3599_v39, %v3299_v24 }
 0xab1   : > { %3307 = vst [vmem:[%s332_s28 + $0x10] sm:$0xf] %v3303_v21 }
 0xab2   : > { %3308 = vst [vmem:[%s332_s28 + $0x18] sm:$0xf] %v3304_v58 }
 0xab3 PF: > { %s19_s30 = sadd.s32 1, %s3606_s30  }
 0xab4   : > { %p16_p4 = scmp.ge.s32.totalorder %s19_s30, 4  }
 0xab6   :  { %18 = sbr.rel (!%p16_p4) target bundleno = 1 (0x1), region = 98 }

</bundles_post_ra>
